<compile_context>
chip_gen: v7x
topology: tpu7x:2x2x1
jax: 0.10.0
libtpu: 0.0.40
codegen_flags: <defaults>
</compile_context>

<pallas_src>
import functools

import jax
import jax.numpy as jnp
from jax.experimental import pallas as pl
from jax.experimental.pallas import tpu as pltpu

FEAT_DIM = 2048      # inception_v3 with model.fc = Identity -> 2048-d features
RESIZE_TO = 299
EPS = 1e-8


def _round_up(a, b):
    return ((a + b - 1) // b) * b


def _vmem_capacity():
    try:
        return int(pltpu.get_tpu_info().vmem_capacity_bytes)
    except Exception:
        return 64 << 20   # assume the smallest (v7x per-TC) if query unavailable


# ---------------- trace-time glue: folded bilinear-resize + GAP weights ------
def _bilinear_matrix(in_size, out_size, align_corners):
    i = jnp.arange(out_size, dtype=jnp.float32)
    if align_corners:
        if out_size > 1:
            src = i * (in_size - 1) / (out_size - 1)
        else:
            src = jnp.zeros_like(i)
    else:
        src = jnp.clip((i + 0.5) * (in_size / out_size) - 0.5, 0.0, in_size - 1.0)
    i0 = jnp.clip(jnp.floor(src).astype(jnp.int32), 0, in_size - 1)
    i1 = jnp.clip(i0 + 1, 0, in_size - 1)
    frac = src - i0.astype(jnp.float32)
    rows = jnp.arange(out_size)
    w = jnp.zeros((out_size, in_size), jnp.float32)
    w = w.at[rows, i0].add(1.0 - frac)
    w = w.at[rows, i1].add(frac)
    return w                                            # (out_size, in_size)


def _make_pool_matrix(h, w, align_corners):
    """(H, W) weights s.t. sum(x * pm) == mean over the 299x299 bilinear resize."""
    if align_corners is None:                           # dim == 299: no resize
        return jnp.full((h, w), 1.0 / (h * w), jnp.float32)
    wr = _bilinear_matrix(h, RESIZE_TO, align_corners)  # (299, H)
    wc = _bilinear_matrix(w, RESIZE_TO, align_corners)  # (299, W)
    rv = jnp.sum(wr, axis=0) / RESIZE_TO                # (H,)
    cv = jnp.sum(wc, axis=0) / RESIZE_TO                # (W,)
    return rv[:, None] * cv[None, :]                    # (H, W)


# ---------------- in-kernel helpers: streaming IS accumulators ---------------
def _accumulate_is(feats, step, tn, n_valid, pysum_ref, plogp_ref):
    """pysum += sum_n px ; plogp += sum_n sum_f px*log(px+eps); pad rows masked."""
    rows = step * tn + jax.lax.broadcasted_iota(jnp.int32, (tn, 1), 0)
    valid = rows < n_valid                              # (tn, 1) bool
    validf = valid.astype(jnp.float32)
    feats = jnp.where(valid, feats, 0.0)                # neutralize garbage pad rows
    m = jnp.max(feats, axis=1, keepdims=True)
    e = jnp.exp(feats - m)
    px = e / jnp.sum(e, axis=1, keepdims=True)          # softmax over dim 1
    pysum_ref[...] += jnp.sum(px * validf, axis=0, keepdims=True)
    plogp_ref[...] += jnp.sum(px * jnp.log(px + EPS) * validf, keepdims=True)


def _finalize_is(o_ref, pysum_ref, plogp_ref, n_valid):
    inv_n = 1.0 / float(n_valid)
    pysum = pysum_ref[...]                              # (1, F)
    py = pysum * inv_n                                  # marginal
    cross = jnp.sum(pysum * jnp.log(py + EPS), axis=1, keepdims=True)   # (1, 1)
    o_ref[...] = jnp.exp((plogp_ref[...] - cross) * inv_n)


# ---------------- fused kernels ----------------------------------------------
def _is_kernel_folded(x_ref, wf_ref, b_ref, o_ref, pysum_ref, plogp_ref,
                      *, n_valid, tn):
    # x_ref: (tn, C*H*W), wf_ref: (C*H*W, F), b_ref: (1, F), o_ref: (1, 1)
    i = pl.program_id(0)

    @pl.when(i == 0)
    def _():
        pysum_ref[...] = jnp.zeros_like(pysum_ref)
        plogp_ref[...] = jnp.zeros_like(plogp_ref)
        o_ref[...] = jnp.zeros_like(o_ref)

    x = x_ref[...].astype(jnp.float32)
    feats = jnp.dot(x, wf_ref[...], preferred_element_type=jnp.float32) + b_ref[...]
    _accumulate_is(feats, i, tn, n_valid, pysum_ref, plogp_ref)

    @pl.when(i == pl.num_programs(0) - 1)
    def _():
        _finalize_is(o_ref, pysum_ref, plogp_ref, n_valid)


def _is_kernel_pooled(x_ref, pm_ref, w_ref, b_ref, o_ref, pysum_ref, plogp_ref,
                      *, n_valid, tn):
    # x_ref: (tn, C, H*W), pm_ref: (1, H*W), w_ref: (C, F), b_ref: (1, F)
    i = pl.program_id(0)

    @pl.when(i == 0)
    def _():
        pysum_ref[...] = jnp.zeros_like(pysum_ref)
        plogp_ref[...] = jnp.zeros_like(plogp_ref)
        o_ref[...] = jnp.zeros_like(o_ref)

    x = x_ref[...].astype(jnp.float32)
    pm = pm_ref[...]
    pooled = jnp.sum(x * pm[None, :, :], axis=2)        # (tn, C): fused resize+GAP
    w = w_ref[...]
    feats = pooled[:, 0:1] * w[0:1, :]
    for c in range(1, x.shape[1]):                       # degenerate K=C projection
        feats = feats + pooled[:, c:c + 1] * w[c:c + 1, :]
    feats = feats + b_ref[...]
    _accumulate_is(feats, i, tn, n_valid, pysum_ref, plogp_ref)

    @pl.when(i == pl.num_programs(0) - 1)
    def _():
        _finalize_is(o_ref, pysum_ref, plogp_ref, n_valid)


# ---------------- wrapper -----------------------------------------------------
def inception_score_pallas(x, w_enc, b_enc):
    n, c, h, w = x.shape
    f = w_enc.shape[1]
    dim = h
    if dim < RESIZE_TO:
        align = True          # nn.Upsample(align_corners=True)
    elif dim > RESIZE_TO:
        align = False         # F.interpolate default (half-pixel)
    else:
        align = None          # no resize
    pool_mat = _make_pool_matrix(h, w, align)            # (H, W)

    vmem_cap = _vmem_capacity()
    limit_cap = max(32 << 20, vmem_cap - (12 << 20))     # scoped cap w/ headroom
    itemsize = jnp.dtype(x.dtype).itemsize
    hw = h * w
    chw = c * hw
    wf_bytes = chw * f * 4
    fold_limit = min((limit_cap - (20 << 20)) // 2, 32 << 20)

    scratch = [pltpu.VMEM((1, f), jnp.float32),           # pysum
               pltpu.VMEM((1, 1), jnp.float32)]           # plogp

    if wf_bytes <= fold_limit:
        # Folded MXU path: resize + GAP + projection == one (C*H*W, F) matmul.
        w_fold = (pool_mat.reshape(1, hw, 1) * w_enc.reshape(c, 1, f)).reshape(chw, f)
        x2 = x.reshape(n, chw)                            # contiguous flatten (free)
        per_row = 2 * chw * itemsize + chw * 4 + 8 * f * 4
        tn_cap = 512 if vmem_cap >= (96 << 20) else 256
        tn = int(max(8, min(tn_cap, (limit_cap - 2 * wf_bytes - (8 << 20)) // per_row)))
        tn = (tn // 8) * 8
        tn = min(tn, _round_up(n, 8))
        nb = pl.cdiv(n, tn)
        vmem_limit = int(min(limit_cap,
                             max(32 << 20, 2 * wf_bytes + tn * per_row + (12 << 20))))
        kernel = functools.partial(_is_kernel_folded, n_valid=n, tn=tn)
        out = pl.pallas_call(
            kernel,
            out_shape=jax.ShapeDtypeStruct((1, 1), jnp.float32),
            grid=(nb,),
            in_specs=[
                pl.BlockSpec((tn, chw), lambda i: (i, 0)),
                pl.BlockSpec((chw, f), lambda i: (0, 0)),
                pl.BlockSpec((1, f), lambda i: (0, 0)),
            ],
            out_specs=pl.BlockSpec((1, 1), lambda i: (0, 0)),
            scratch_shapes=scratch,
            compiler_params=pltpu.CompilerParams(
                dimension_semantics=("arbitrary",),       # N is a reduction axis
                vmem_limit_bytes=vmem_limit),
        )(x2, w_fold, b_enc)
    else:
        # Pooled VPU path for large images (folded weight would not fit VMEM).
        x3 = x.reshape(n, c, hw)                          # lane-dense H*W last dim
        pm_flat = pool_mat.reshape(1, hw)
        per_row = 2 * c * hw * itemsize + 2 * c * hw * 4 + 8 * f * 4
        fixed = 2 * (hw * 4 + c * f * 4 + f * 4)
        tn_cap = 128 if vmem_cap >= (96 << 20) else 64
        tn = int(max(1, min(tn_cap, (limit_cap - fixed - (8 << 20)) // per_row)))
        if tn >= 8:
            tn = (tn // 8) * 8
        tn = min(tn, n)
        nb = pl.cdiv(n, tn)
        vmem_limit = int(min(limit_cap,
                             max(32 << 20, fixed + tn * per_row + (12 << 20))))
        kernel = functools.partial(_is_kernel_pooled, n_valid=n, tn=tn)
        out = pl.pallas_call(
            kernel,
            out_shape=jax.ShapeDtypeStruct((1, 1), jnp.float32),
            grid=(nb,),
            in_specs=[
                pl.BlockSpec((tn, c, hw), lambda i: (i, 0, 0)),
                pl.BlockSpec((1, hw), lambda i: (0, 0)),
                pl.BlockSpec((c, f), lambda i: (0, 0)),
                pl.BlockSpec((1, f), lambda i: (0, 0)),
            ],
            out_specs=pl.BlockSpec((1, 1), lambda i: (0, 0)),
            scratch_shapes=scratch,
            compiler_params=pltpu.CompilerParams(
                dimension_semantics=("arbitrary",),
                vmem_limit_bytes=vmem_limit),
        )(x3, pm_flat, w_enc, b_enc)
    return out[0, 0]


class InceptionScorePallas:
    def __init__(self, key):
        k1, k2 = jax.random.split(key)
        # TODO(synk): pretrained inception_v3 backbone not reproduced; stand-in
        # encoder = global average pool + linear projection to 2048 features.
        self.w_enc = jax.random.normal(k1, (3, FEAT_DIM), jnp.float32) * 0.05
        self.b_enc = jax.random.normal(k2, (1, FEAT_DIM), jnp.float32) * 0.01

    def __call__(self, x):
        assert x.ndim == 4
        assert x.shape[1] == self.w_enc.shape[0]
        return inception_score_pallas(x, self.w_enc, self.b_enc)


# ---------------- pure-JAX reference (same stand-in encoder) ------------------
def _reference_inception_score(x, w_enc, b_enc):
    n, c, h, w = x.shape
    dim = h
    align = True if dim < RESIZE_TO else (False if dim > RESIZE_TO else None)
    pm = _make_pool_matrix(h, w, align)
    pooled = jnp.einsum('nchw,hw->nc', x.astype(jnp.float32), pm)
    feats = pooled @ w_enc + b_enc
    px = jax.nn.softmax(feats, axis=1)
    py = jnp.mean(px, axis=0, keepdims=True)
    kl = px * (jnp.log(px + EPS) - jnp.log(py + EPS))
    return jnp.exp(jnp.mean(jnp.sum(kl, axis=1)))


if __name__ == "__main__":
    key = jax.random.PRNGKey(0)
    k_params, k_x = jax.random.split(key)
    # Small NCHW input consistent with the module (3-channel images, 16x16).
    x = jax.random.uniform(k_x, (2, 3, 16, 16), dtype=jnp.float32)

    model = InceptionScorePallas(k_params)
    iscore = jax.block_until_ready(model(x))
    assert iscore.shape == () and bool(jnp.isfinite(iscore))

    ref = jax.block_until_ready(_reference_inception_score(x, model.w_enc, model.b_enc))
    assert jnp.allclose(iscore, ref, rtol=1e-3, atol=1e-5), (iscore, ref)
    print("KERNEL_OK")
</pallas_src>

<mosaic_0001>
module attributes {stable_mosaic.version = 11 : i64} {
  func.func @_is_kernel_folded(%arg0: i32, %arg1: memref<8x768xf32, #tpu.memory_space<vmem>>, %arg2: memref<768x2048xf32, #tpu.memory_space<vmem>>, %arg3: memref<1x2048xf32, #tpu.memory_space<vmem>>, %arg4: memref<1x1xf32, #tpu.memory_space<vmem>>, %arg5: memref<1x2048xf32, #tpu.memory_space<vmem>>, %arg6: memref<1x1xf32, #tpu.memory_space<vmem>>) attributes {dimension_semantics = [#tpu.dimension_semantics<arbitrary>], iteration_bounds = array<i64: 1>, scalar_prefetch = 0 : i64, scratch_operands = 2 : i64, tpu.core_type = #tpu.core_type<tc>, window_params = [{transform_indices = @transform_0, window_bounds = array<i64: 8, 768>}, {pipeline_mode = #tpu.pipeline_mode<synchronous>, transform_indices = @transform_1, window_bounds = array<i64: 768, 2048>}, {pipeline_mode = #tpu.pipeline_mode<synchronous>, transform_indices = @transform_2, window_bounds = array<i64: 1, 2048>}, {pipeline_mode = #tpu.pipeline_mode<synchronous>, transform_indices = @transform_3, window_bounds = array<i64: 1, 1>}]} {
    %c0_i32 = arith.constant 0 : i32
    %0 = arith.cmpi eq, %arg0, %c0_i32 : i32
    %1 = arith.extui %0 : i1 to i32
    %c0_i32_0 = arith.constant 0 : i32
    %2 = arith.cmpi ne, %1, %c0_i32_0 : i32
    scf.if %2 {
      %cst_22 = arith.constant 0.000000e+00 : f32
      %54 = vector.broadcast %cst_22 : f32 to vector<1x2048xf32>
      %c0_23 = arith.constant 0 : index
      %c0_24 = arith.constant 0 : index
      %55 = vector.load %arg5[%c0_23, %c0_24] : memref<1x2048xf32, #tpu.memory_space<vmem>>, vector<1x2048xf32>
      tpu.vector_store %arg5[%c0_23, %c0_24], %54 {strides = array<i32>} : memref<1x2048xf32, #tpu.memory_space<vmem>>, vector<1x2048xf32>,
      %cst_25 = arith.constant 0.000000e+00 : f32
      %56 = vector.broadcast %cst_25 : f32 to vector<1x1xf32>
      %c0_26 = arith.constant 0 : index
      %c0_27 = arith.constant 0 : index
      %57 = vector.load %arg6[%c0_26, %c0_27] : memref<1x1xf32, #tpu.memory_space<vmem>>, vector<1x1xf32>
      tpu.vector_store %arg6[%c0_26, %c0_27], %56 {strides = array<i32>} : memref<1x1xf32, #tpu.memory_space<vmem>>, vector<1x1xf32>,
      %cst_28 = arith.constant 0.000000e+00 : f32
      %58 = vector.broadcast %cst_28 : f32 to vector<1x1xf32>
      %c0_29 = arith.constant 0 : index
      %c0_30 = arith.constant 0 : index
      %59 = vector.load %arg4[%c0_29, %c0_30] : memref<1x1xf32, #tpu.memory_space<vmem>>, vector<1x1xf32>
      tpu.vector_store %arg4[%c0_29, %c0_30], %58 {strides = array<i32>} : memref<1x1xf32, #tpu.memory_space<vmem>>, vector<1x1xf32>,
    } else {
    }
    %c0 = arith.constant 0 : index
    %c0_1 = arith.constant 0 : index
    %3 = vector.load %arg1[%c0, %c0_1] : memref<8x768xf32, #tpu.memory_space<vmem>>, vector<8x768xf32>
    %c0_2 = arith.constant 0 : index
    %c0_3 = arith.constant 0 : index
    %4 = vector.load %arg2[%c0_2, %c0_3] : memref<768x2048xf32, #tpu.memory_space<vmem>>, vector<768x2048xf32>
    %cst = arith.constant dense<0.000000e+00> : vector<8x2048xf32>
    %5 = tpu.matmul %3, %4, %cst {dimension_numbers = #tpu.dot_dimension_numbers<[1], [0], [0], [1], [0, 0, 1, 1], [], []>} : vector<8x768xf32>, vector<768x2048xf32>, vector<8x2048xf32> -> vector<8x2048xf32>
    %c0_4 = arith.constant 0 : index
    %c0_5 = arith.constant 0 : index
    %6 = vector.load %arg3[%c0_4, %c0_5] : memref<1x2048xf32, #tpu.memory_space<vmem>>, vector<1x2048xf32>
    %7 = vector.broadcast %6 : vector<1x2048xf32> to vector<8x2048xf32>
    %8 = arith.addf %5, %7 : vector<8x2048xf32>
    %c8_i32 = arith.constant 8 : i32
    %9 = arith.muli %arg0, %c8_i32 : i32
    %10 = tpu.iota {dimensions = array<i32: 0>} : vector<8x1xi32>
    %11 = vector.broadcast %9 : i32 to vector<8x1xi32>
    %12 = arith.addi %11, %10 : vector<8x1xi32>
    %c2_i32 = arith.constant 2 : i32
    %13 = vector.broadcast %c2_i32 : i32 to vector<8x1xi32>
    %14 = arith.cmpi slt, %12, %13 : vector<8x1xi32>
    %15 = arith.extui %14 : vector<8x1xi1> to vector<8x1xi32>
    %16 = arith.sitofp %15 : vector<8x1xi32> to vector<8x1xf32>
    %cst_6 = arith.constant 0.000000e+00 : f32
    %17 = vector.shape_cast %14 : vector<8x1xi1> to vector<8x1xi1>
    %18 = vector.broadcast %17 : vector<8x1xi1> to vector<8x2048xi1>
    %19 = vector.broadcast %cst_6 : f32 to vector<8x2048xf32>
    %20 = arith.select %18, %8, %19 : vector<8x2048xi1>, vector<8x2048xf32>
    %cst_7 = arith.constant dense<0xFF800000> : vector<8xf32>
    %21 = vector.multi_reduction <maximumf>, %20, %cst_7 [1] : vector<8x2048xf32> to vector<8xf32>
    %22 = vector.shape_cast %21 : vector<8xf32> to vector<8x1xf32>
    %23 = vector.broadcast %22 : vector<8x1xf32> to vector<8x2048xf32>
    %24 = arith.subf %20, %23 : vector<8x2048xf32>
    %25 = math.exp %24 : vector<8x2048xf32>
    %cst_8 = arith.constant dense<0.000000e+00> : vector<8xf32>
    %26 = vector.multi_reduction <add>, %25, %cst_8 [1] : vector<8x2048xf32> to vector<8xf32>
    %27 = vector.shape_cast %26 : vector<8xf32> to vector<8x1xf32>
    %28 = vector.broadcast %27 : vector<8x1xf32> to vector<8x2048xf32>
    %29 = arith.divf %25, %28 : vector<8x2048xf32>
    %c0_9 = arith.constant 0 : index
    %c0_10 = arith.constant 0 : index
    %30 = vector.load %arg5[%c0_9, %c0_10] : memref<1x2048xf32, #tpu.memory_space<vmem>>, vector<1x2048xf32>
    %31 = vector.broadcast %16 : vector<8x1xf32> to vector<8x2048xf32>
    %32 = arith.mulf %29, %31 : vector<8x2048xf32>
    %cst_11 = arith.constant dense<0.000000e+00> : vector<2048xf32>
    %33 = vector.multi_reduction <add>, %32, %cst_11 [0] : vector<8x2048xf32> to vector<2048xf32>
    %34 = vector.shape_cast %33 : vector<2048xf32> to vector<1x2048xf32>
    %35 = arith.addf %30, %34 : vector<1x2048xf32>
    %c0_12 = arith.constant 0 : index
    %c0_13 = arith.constant 0 : index
    %36 = vector.load %arg5[%c0_12, %c0_13] : memref<1x2048xf32, #tpu.memory_space<vmem>>, vector<1x2048xf32>
    tpu.vector_store %arg5[%c0_12, %c0_13], %35 {strides = array<i32>} : memref<1x2048xf32, #tpu.memory_space<vmem>>, vector<1x2048xf32>,
    %c0_14 = arith.constant 0 : index
    %c0_15 = arith.constant 0 : index
    %37 = vector.load %arg6[%c0_14, %c0_15] : memref<1x1xf32, #tpu.memory_space<vmem>>, vector<1x1xf32>
    %cst_16 = arith.constant 9.99999993E-9 : f32
    %38 = vector.broadcast %cst_16 : f32 to vector<8x2048xf32>
    %39 = arith.addf %29, %38 : vector<8x2048xf32>
    %40 = math.log %39 : vector<8x2048xf32>
    %41 = arith.mulf %29, %40 : vector<8x2048xf32>
    %42 = vector.broadcast %16 : vector<8x1xf32> to vector<8x2048xf32>
    %43 = arith.mulf %41, %42 : vector<8x2048xf32>
    %44 = vector.shape_cast %43 : vector<8x2048xf32> to vector<1x8x2048xf32>
    %cst_17 = arith.constant dense<0.000000e+00> : vector<1xf32>
    %45 = vector.multi_reduction <add>, %44, %cst_17 [1, 2] : vector<1x8x2048xf32> to vector<1xf32>
    %46 = vector.shape_cast %45 : vector<1xf32> to vector<1x1x1xf32>
    %47 = vector.extract %46[0, 0, 0] : f32 from vector<1x1x1xf32>
    %48 = vector.broadcast %47 : f32 to vector<1x1xf32>
    %49 = arith.addf %37, %48 : vector<1x1xf32>
    %c0_18 = arith.constant 0 : index
    %c0_19 = arith.constant 0 : index
    %50 = vector.load %arg6[%c0_18, %c0_19] : memref<1x1xf32, #tpu.memory_space<vmem>>, vector<1x1xf32>
    tpu.vector_store %arg6[%c0_18, %c0_19], %49 {strides = array<i32>} : memref<1x1xf32, #tpu.memory_space<vmem>>, vector<1x1xf32>,
    %c0_i32_20 = arith.constant 0 : i32
    %51 = arith.cmpi eq, %arg0, %c0_i32_20 : i32
    %52 = arith.extui %51 : i1 to i32
    %c0_i32_21 = arith.constant 0 : i32
    %53 = arith.cmpi ne, %52, %c0_i32_21 : i32
    scf.if %53 {
      %c0_22 = arith.constant 0 : index
      %c0_23 = arith.constant 0 : index
      %54 = vector.load %arg5[%c0_22, %c0_23] : memref<1x2048xf32, #tpu.memory_space<vmem>>, vector<1x2048xf32>
      %cst_24 = arith.constant 5.000000e-01 : f32
      %55 = vector.broadcast %cst_24 : f32 to vector<1x2048xf32>
      %56 = arith.mulf %54, %55 : vector<1x2048xf32>
      %cst_25 = arith.constant 9.99999993E-9 : f32
      %57 = vector.broadcast %cst_25 : f32 to vector<1x2048xf32>
      %58 = arith.addf %56, %57 : vector<1x2048xf32>
      %59 = math.log %58 : vector<1x2048xf32>
      %60 = arith.mulf %54, %59 : vector<1x2048xf32>
      %cst_26 = arith.constant dense<0.000000e+00> : vector<1xf32>
      %61 = vector.multi_reduction <add>, %60, %cst_26 [1] : vector<1x2048xf32> to vector<1xf32>
      %62 = vector.shape_cast %61 : vector<1xf32> to vector<1x1xf32>
      %c0_27 = arith.constant 0 : index
      %c0_28 = arith.constant 0 : index
      %63 = vector.load %arg6[%c0_27, %c0_28] : memref<1x1xf32, #tpu.memory_space<vmem>>, vector<1x1xf32>
      %64 = arith.subf %63, %62 : vector<1x1xf32>
      %cst_29 = arith.constant 5.000000e-01 : f32
      %65 = vector.broadcast %cst_29 : f32 to vector<1x1xf32>
      %66 = arith.mulf %64, %65 : vector<1x1xf32>
      %67 = math.exp %66 : vector<1x1xf32>
      %c0_30 = arith.constant 0 : index
      %c0_31 = arith.constant 0 : index
      %68 = vector.load %arg4[%c0_30, %c0_31] : memref<1x1xf32, #tpu.memory_space<vmem>>, vector<1x1xf32>
      tpu.vector_store %arg4[%c0_30, %c0_31], %67 {strides = array<i32>} : memref<1x1xf32, #tpu.memory_space<vmem>>, vector<1x1xf32>,
    } else {
    }
    return
  }
  func.func @transform_0(%arg0: i32) -> (i32, i32) {
    %c0_i32 = arith.constant 0 : i32
    %c0_i32_0 = arith.constant 0 : i32
    return %arg0, %c0_i32 : i32, i32
  }
  func.func @transform_1(%arg0: i32) -> (i32, i32) {
    %c0_i32 = arith.constant 0 : i32
    %c0_i32_0 = arith.constant 0 : i32
    %c0_i32_1 = arith.constant 0 : i32
    return %c0_i32, %c0_i32_0 : i32, i32
  }
  func.func @transform_2(%arg0: i32) -> (i32, i32) {
    %c0_i32 = arith.constant 0 : i32
    %c0_i32_0 = arith.constant 0 : i32
    %c0_i32_1 = arith.constant 0 : i32
    return %c0_i32, %c0_i32_0 : i32, i32
  }
  func.func @transform_3(%arg0: i32) -> (i32, i32) {
    %c0_i32 = arith.constant 0 : i32
    %c0_i32_0 = arith.constant 0 : i32
    %c0_i32_1 = arith.constant 0 : i32
    return %c0_i32, %c0_i32_0 : i32, i32
  }
}

</mosaic_0001>

<bundles_post_ra>
// kernel: tpu_custom_call.1
= control target key start
LH: loop header
LB: loop body
LE: loop exit
PB: predicated region body
PF: predicated region fallthrough
CT: control target
= control target key end

     0   :  { %8 = vsyncpa [#allocation5], 0  ;;  %s6374_s0 = inlined_call_operand.hbm [shape: f32[2,768], index: 0, kind: input, shape index: {}]   ;;  %s6375_s1 = inlined_call_operand.hbm [shape: f32[768,2048], index: 1, kind: input, shape index: {}]   ;;  %s6376_s2 = inlined_call_operand.hbm [shape: f32[1,2048], index: 2, kind: input, shape index: {}]   ;;  %s6377_s3 = inlined_call_operand.hbm [shape: f32[1,1], index: 3, kind: output, shape index: {}]  }
   0x1   :  { %9 = vsyncpa [#allocation8], 0 }
   0x2   :  { %10 = vsyncpa [#allocation6], 0 }
   0x3   :  { %15 = vsyncadd [#allocation5], 576  ;;  %s5855_s12 = smov [#allocation7]   ;;  %s5761_s16 = scalar_lea.hbm %s6375_s1, 196608 }
   0x4   :  { %s28_s13 = sshll.u32 %s5855_s12, 4  ;;  %p5762_p0 = scmp.ne.s32.totalorder %s6375_s1, %s5761_s16  ;;  %s29_s13 = int_to_ptr.vmem [resolvable:$true] %s28_s13 }
   0x5   :  { %p5765_p1 = scmp.lt.u32.totalorder %s5761_s16, %s6375_s1 }
   0x7   :  { %p5767_p2 = pnand %p5765_p1, %p5762_p0 }
   0x9   :  { %5770 = shalt.err (!%p5767_p2)
}
   0xa   :  { %s5771_s21 = scalar_lea.vmem %s29_s13, 196608  ;;  %p5776_p4 = scmp.lt.s32.totalorder %s29_s13, %s29_s13 }
   0xb   :  { %p5772_p3 = scmp.ne.s32.totalorder %s29_s13, %s5771_s21  ;;  %p5777_p5 = scmp.lt.s32.totalorder %s5771_s21, %s5771_s21 }
   0xd   :  { %p5778_p6 = por %p5777_p5, %p5776_p4 }
   0xf   :  { %p5779_p7 = pnand %p5778_p6, %p5772_p3 }
  0x11   :  { %5782 = shalt.err (!%p5779_p7)
}
  0x12   :  { %s5856_s22 = smov 2048   ;;  %s5857_s23 = smov 128  }
  0x13   :  { %34 = dma.hbm_to_vmem [thread:$0]  %s6375_s1, 196608, %s29_s13, [#allocation8], %s5856_s22, %s5856_s22, %s5857_s23  }
  0x14   :  { %s5858_s26 = smov [#allocation4]   ;;  %s5783_s30 = scalar_lea.hbm %s6374_s0, 192 }
  0x15   :  { %s16_s27 = sshll.u32 %s5858_s26, 4  ;;  %p5784_p8 = scmp.ne.s32.totalorder %s6374_s0, %s5783_s30  ;;  %s17_s27 = int_to_ptr.vmem [resolvable:$true] %s16_s27 }
  0x16   :  { %p5787_p9 = scmp.lt.u32.totalorder %s5783_s30, %s6374_s0 }
  0x18   :  { %p5789_p10 = pnand %p5787_p9, %p5784_p8 }
  0x1a   :  { %5792 = shalt.err (!%p5789_p10)
}
  0x1b   :  { %s5793_s8 = scalar_lea.vmem %s17_s27, 192  ;;  %s5797_s1 = scalar_lea.vmem %s17_s27, 768 }
  0x1c   :  { %p5794_p11 = scmp.ne.s32.totalorder %s17_s27, %s5793_s8  ;;  %p5798_p12 = scmp.lt.s32.totalorder %s17_s27, %s17_s27 }
  0x1d   :  { %p5799_p13 = scmp.lt.s32.totalorder %s5797_s1, %s5793_s8 }
  0x1f   :  { %p5800_p0 = por %p5799_p13, %p5798_p12 }
  0x21   :  { %p5801_p1 = pnand %p5800_p0, %p5794_p11 }
  0x23   :  { %5804 = shalt.err (!%p5801_p1)
}
  0x24   :  { %s5859_s9 = smov 192   ;;  %s5860_s10 = smov 12  }
  0x25   :  { %22 = dma.hbm_to_vmem [thread:$0]  %s6374_s0, 192, %s17_s27, [#allocation5], %s5859_s9, %s5859_s9, %s5860_s10  }
  0x26   :  { %s5861_s13 = smov [#allocation9]   ;;  %s5805_s17 = scalar_lea.hbm %s6376_s2, 256 }
  0x27   :  { %s41_s14 = sshll.u32 %s5861_s13, 4  ;;  %p5806_p2 = scmp.ne.s32.totalorder %s6376_s2, %s5805_s17  ;;  %s42_s14 = int_to_ptr.vmem [resolvable:$true] %s41_s14 }
  0x28   :  { %p5809_p3 = scmp.lt.u32.totalorder %s5805_s17, %s6376_s2 }
  0x2a   :  { %p5811_p4 = pnand %p5809_p3, %p5806_p2 }
  0x2c   :  { %5814 = shalt.err (!%p5811_p4)
}
  0x2d   :  { %s5815_s22 = scalar_lea.vmem %s42_s14, 256  ;;  %p5820_p6 = scmp.lt.s32.totalorder %s42_s14, %s42_s14 }
  0x2e   :  { %p5816_p5 = scmp.ne.s32.totalorder %s42_s14, %s5815_s22  ;;  %p5821_p7 = scmp.lt.s32.totalorder %s5815_s22, %s5815_s22 }
  0x30   :  { %p5822_p8 = por %p5821_p7, %p5820_p6 }
  0x32   :  { %p5823_p9 = pnand %p5822_p8, %p5816_p5 }
  0x34   :  { %5826 = shalt.err (!%p5823_p9)
}
  0x35   :  { %44 = dma.hbm_to_vmem [thread:$0]  %s6376_s2, 256, %s42_s14, [#allocation8]  }
  0x36   :  { %5849 = dma.done.wait [#allocation5], 768  }
  0x37   :  { %5850 = vsyncadd [#allocation5], 4294966528 }
  0x38   :  { %5851 = dma.done.wait [#allocation8], 196864  }
  0x39   :  { %5852 = vsyncadd [#allocation8], 4294770432  ;;  %v72_v0 = vld [vmem:[#allocation7 + $0x8] sm:$0xff]  ;;  %v74_v2 = vld [vmem:[#allocation7 + $0x18] sm:$0xff]  ;;  %vm4027_vm1 = vcmask 1040384   ;;  %vm60_vm2 = vcmask 0  }
  0x3a   :  { %v88_v1 = vld [vmem:[#allocation7 + $0x88] sm:$0xff]  ;;  %v90_v4 = vld [vmem:[#allocation7 + $0x98] sm:$0xff]  ;;  %v71_v5 = vld [vmem:[#allocation7] sm:$0xff]  ;;  %s5865_s24 = smov [#allocation10]  }
  0x3b   :  { %v4084_v3 = vpack.c.bf16 %v88_v1, %v72_v0  ;;  %v87_v6 = vld [vmem:[#allocation7 + $0x80] sm:$0xff]  ;;  %v4276_v7 = vpack.c.bf16 %v90_v4, %v74_v2  ;;  %v73_v9 = vld [vmem:[#allocation7 + $0x10] sm:$0xff]  ;;  %v104_v11 = vld [vmem:[#allocation7 + $0x108] sm:$0xff]  ;;  %s4073_s25 = sshll.u32 %s5865_s24, 4  ;;  %s4074_s25 = int_to_ptr.vmem [resolvable:$true] %s4073_s25 }
  0x3c   :  { %v4086_v8 = vpack.c.bf16 %v87_v6, %v71_v5  ;;  %v89_v10 = vld [vmem:[#allocation7 + $0x90] sm:$0xff]  ;;  %v120_v13 = vld [vmem:[#allocation7 + $0x188] sm:$0xff]  ;;  %v106_v14 = vld [vmem:[#allocation7 + $0x118] sm:$0xff]  ;;  %s5827_s26 = scalar_lea.vmem %s4074_s25, 16  ;;  %s5831_s27 = scalar_lea.vmem %s4074_s25, 32 }
  0x3d   :  { %4085 = vmatprep.subr.bf16.mxu0 %v4084_v3  ;;  %v4278_v12 = vpack.c.bf16 %v89_v10, %v73_v9  ;;  %v122_v15 = vld [vmem:[#allocation7 + $0x198] sm:$0xff]  ;;  %4277 = vmatprep.subr.bf16.mxu1 %v4276_v7  ;;  %v4088_v16 = vpack.c.bf16 %v120_v13, %v104_v11  ;;  %v103_v18 = vld [vmem:[#allocation7 + $0x100] sm:$0xff]  ;;  %v105_v20 = vld [vmem:[#allocation7 + $0x110] sm:$0xff]  ;;  %p5828_p10 = scmp.ne.s32.totalorder %s4074_s25, %s5827_s26  ;;  %p5832_p11 = scmp.lt.s32.totalorder %s4074_s25, %s4074_s25 }
  0x3e   :  { %4087 = vmatpush1.bf16.msra.mxu0 %v4086_v8  ;;  %v4280_v17 = vpack.c.bf16 %v122_v15, %v106_v14  ;;  %v119_v19 = vld [vmem:[#allocation7 + $0x180] sm:$0xff]  ;;  %v121_v22 = vld [vmem:[#allocation7 + $0x190] sm:$0xff]  ;;  %v136_v23 = vld [vmem:[#allocation7 + $0x208] sm:$0xff]  ;;  %p5833_p12 = scmp.lt.s32.totalorder %s5831_s27, %s5827_s26 }
  0x3f   :  { %4279 = vmatpush1.bf16.msra.mxu1 %v4278_v12  ;;  %v4090_v21 = vpack.c.bf16 %v119_v19, %v103_v18  ;;  %v152_v24 = vld [vmem:[#allocation7 + $0x288] sm:$0xff]  ;;  %4089 = vmatprep.subr.bf16.mxu0 %v4088_v16  ;;  %v4282_v25 = vpack.c.bf16 %v121_v22, %v105_v20  ;;  %v138_v27 = vld [vmem:[#allocation7 + $0x218] sm:$0xff]  ;;  %v135_v29 = vld [vmem:[#allocation7 + $0x200] sm:$0xff] }
  0x40   :  { %4281 = vmatprep.subr.bf16.mxu1 %v4280_v17  ;;  %v4092_v26 = vpack.c.bf16 %v152_v24, %v136_v23  ;;  %v154_v28 = vld [vmem:[#allocation7 + $0x298] sm:$0xff]  ;;  %v151_v31 = vld [vmem:[#allocation7 + $0x280] sm:$0xff]  ;;  %v137_v32 = vld [vmem:[#allocation7 + $0x210] sm:$0xff]  ;;  %p5834_p13 = por %p5833_p12, %p5832_p11 }
  0x41   :  { %v4284_v30 = vpack.c.bf16 %v154_v28, %v138_v27  ;;  %v153_v33 = vld [vmem:[#allocation7 + $0x290] sm:$0xff]  ;;  %v4094_v34 = vpack.c.bf16 %v151_v31, %v135_v29  ;;  %v168_v35 = vld [vmem:[#allocation7 + $0x308] sm:$0xff]  ;;  %v170_v37 = vld [vmem:[#allocation7 + $0x318] sm:$0xff] }
  0x42   :  { %4091 = vmatpush1.bf16.msra.mxu0 %v4090_v21  ;;  %v184_v36 = vld [vmem:[#allocation7 + $0x388] sm:$0xff]  ;;  %v4286_v38 = vpack.c.bf16 %v153_v33, %v137_v32  ;;  %v186_v40 = vld [vmem:[#allocation7 + $0x398] sm:$0xff]  ;;  %v167_v41 = vld [vmem:[#allocation7 + $0x300] sm:$0xff]  ;;  %p5835_p0 = pnand %p5834_p13, %p5828_p10 }
  0x43   :  { %4283 = vmatpush1.bf16.msra.mxu1 %v4282_v25  ;;  %4093 = vmatprep.subr.bf16.mxu0 %v4092_v26  ;;  %v4096_v39 = vpack.c.bf16 %v184_v36, %v168_v35  ;;  %v183_v42 = vld [vmem:[#allocation7 + $0x380] sm:$0xff]  ;;  %v4288_v43 = vpack.c.bf16 %v186_v40, %v170_v37  ;;  %v169_v44 = vld [vmem:[#allocation7 + $0x310] sm:$0xff]  ;;  %v200_v46 = vld [vmem:[#allocation7 + $0x408] sm:$0xff] }
  0x44   :  { %4285 = vmatprep.subr.bf16.mxu1 %v4284_v30  ;;  %v185_v45 = vld [vmem:[#allocation7 + $0x390] sm:$0xff]  ;;  %v216_v47 = vld [vmem:[#allocation7 + $0x488] sm:$0xff]  ;;  %v202_v48 = vld [vmem:[#allocation7 + $0x418] sm:$0xff]  ;;  %v4098_v50 = vpack.c.bf16 %v183_v42, %v167_v41 }
  0x45   :  { %v218_v49 = vld [vmem:[#allocation7 + $0x498] sm:$0xff]  ;;  %v4290_v51 = vpack.c.bf16 %v185_v45, %v169_v44  ;;  %v4100_v52 = vpack.c.bf16 %v216_v47, %v200_v46  ;;  %v199_v53 = vld [vmem:[#allocation7 + $0x400] sm:$0xff]  ;;  %v201_v55 = vld [vmem:[#allocation7 + $0x410] sm:$0xff] }
  0x46   :  { %4095 = vmatpush1.bf16.msra.mxu0 %v4094_v34  ;;  %v215_v54 = vld [vmem:[#allocation7 + $0x480] sm:$0xff]  ;;  %v4292_v56 = vpack.c.bf16 %v218_v49, %v202_v48  ;;  %v217_v57 = vld [vmem:[#allocation7 + $0x490] sm:$0xff]  ;;  %v232_v58 = vld [vmem:[#allocation7 + $0x508] sm:$0xff] }
  0x47   :  { %4287 = vmatpush1.bf16.msra.mxu1 %v4286_v38  ;;  %4097 = vmatprep.subr.bf16.mxu0 %v4096_v39  ;;  %v248_v59 = vld [vmem:[#allocation7 + $0x588] sm:$0xff]  ;;  %v234_v60 = vld [vmem:[#allocation7 + $0x518] sm:$0xff]  ;;  %v4102_v62 = vpack.c.bf16 %v215_v54, %v199_v53  ;;  %v4294_v63 = vpack.c.bf16 %v217_v57, %v201_v55  ;;  %v231_v1 = vld [vmem:[#allocation7 + $0x500] sm:$0xff]  ;;  %v5862_v57 = vmov 1983009808  }
  0x48   :  { %4289 = vmatprep.subr.bf16.mxu1 %v4288_v43  ;;  %v250_v61 = vld [vmem:[#allocation7 + $0x598] sm:$0xff]  ;;  %v4104_v0 = vpack.c.bf16 %v248_v59, %v232_v58  ;;  %v247_v2 = vld [vmem:[#allocation7 + $0x580] sm:$0xff]  ;;  %v233_v3 = vld [vmem:[#allocation7 + $0x510] sm:$0xff]  ;;  %v1704_v58 = vunpack.c.l.s4 %v5862_v57 }
  0x49   :  { %v4296_v4 = vpack.c.bf16 %v250_v61, %v234_v60  ;;  %v249_v5 = vld [vmem:[#allocation7 + $0x590] sm:$0xff]  ;;  %v264_v6 = vld [vmem:[#allocation7 + $0x608] sm:$0xff]  ;;  %v266_v8 = vld [vmem:[#allocation7 + $0x618] sm:$0xff]  ;;  %v4106_v10 = vpack.c.bf16 %v247_v2, %v231_v1 }
  0x4a   :  { %4099 = vmatpush1.bf16.msra.mxu0 %v4098_v50  ;;  %v280_v7 = vld [vmem:[#allocation7 + $0x688] sm:$0xff]  ;;  %v282_v9 = vld [vmem:[#allocation7 + $0x698] sm:$0xff]  ;;  %v4298_v11 = vpack.c.bf16 %v249_v5, %v233_v3  ;;  %v263_v13 = vld [vmem:[#allocation7 + $0x600] sm:$0xff] }
  0x4b   :  { %4291 = vmatpush1.bf16.msra.mxu1 %v4290_v51  ;;  %4101 = vmatprep.subr.bf16.mxu0 %v4100_v52  ;;  %v4108_v12 = vpack.c.bf16 %v280_v7, %v264_v6  ;;  %v279_v14 = vld [vmem:[#allocation7 + $0x680] sm:$0xff]  ;;  %v265_v15 = vld [vmem:[#allocation7 + $0x610] sm:$0xff]  ;;  %v4300_v16 = vpack.c.bf16 %v282_v9, %v266_v8  ;;  %v296_v18 = vld [vmem:[#allocation7 + $0x708] sm:$0xff]  ;;  %v1705_v8 = vunpack.c.0.s8 %v1704_v58 }
  0x4c   :  { %4293 = vmatprep.subr.bf16.mxu1 %v4292_v56  ;;  %v281_v17 = vld [vmem:[#allocation7 + $0x690] sm:$0xff]  ;;  %v312_v19 = vld [vmem:[#allocation7 + $0x788] sm:$0xff]  ;;  %v298_v20 = vld [vmem:[#allocation7 + $0x718] sm:$0xff]  ;;  %v4110_v22 = vpack.c.bf16 %v279_v14, %v263_v13  ;;  %v1611_v56 = vlaneseq }
  0x4d   :  { %v314_v21 = vld [vmem:[#allocation7 + $0x798] sm:$0xff]  ;;  %v4302_v23 = vpack.c.bf16 %v281_v17, %v265_v15  ;;  %v4112_v24 = vpack.c.bf16 %v312_v19, %v296_v18  ;;  %v295_v25 = vld [vmem:[#allocation7 + $0x700] sm:$0xff]  ;;  %v297_v27 = vld [vmem:[#allocation7 + $0x710] sm:$0xff] }
  0x4e   :  { %4103 = vmatpush1.bf16.msra.mxu0 %v4102_v62  ;;  %v311_v26 = vld [vmem:[#allocation7 + $0x780] sm:$0xff]  ;;  %v4304_v28 = vpack.c.bf16 %v314_v21, %v298_v20  ;;  %v313_v29 = vld [vmem:[#allocation7 + $0x790] sm:$0xff]  ;;  %v328_v30 = vld [vmem:[#allocation7 + $0x808] sm:$0xff]  ;;  %v5922_v7 = vshrl.u32 %v1611_v56, 7 }
  0x4f   :  { %4295 = vmatpush1.bf16.msra.mxu1 %v4294_v63  ;;  %4105 = vmatprep.subr.bf16.mxu0 %v4104_v0  ;;  %v344_v31 = vld [vmem:[#allocation7 + $0x888] sm:$0xff]  ;;  %v330_v32 = vld [vmem:[#allocation7 + $0x818] sm:$0xff]  ;;  %v4114_v34 = vpack.c.bf16 %v311_v26, %v295_v25  ;;  %v4306_v35 = vpack.c.bf16 %v313_v29, %v297_v27  ;;  %v327_v37 = vld [vmem:[#allocation7 + $0x800] sm:$0xff] }
  0x50   :  { %4297 = vmatprep.subr.bf16.mxu1 %v4296_v4  ;;  %v346_v33 = vld [vmem:[#allocation7 + $0x898] sm:$0xff]  ;;  %v4116_v36 = vpack.c.bf16 %v344_v31, %v328_v30  ;;  %v343_v38 = vld [vmem:[#allocation7 + $0x880] sm:$0xff]  ;;  %v329_v39 = vld [vmem:[#allocation7 + $0x810] sm:$0xff]  ;;  %vm3468_vm0 = vcmp.lt.s32.totalorder %v5922_v7, 2 }
  0x51   :  { %v4308_v40 = vpack.c.bf16 %v346_v33, %v330_v32  ;;  %v345_v41 = vld [vmem:[#allocation7 + $0x890] sm:$0xff]  ;;  %v360_v42 = vld [vmem:[#allocation7 + $0x908] sm:$0xff]  ;;  %v362_v44 = vld [vmem:[#allocation7 + $0x918] sm:$0xff]  ;;  %v4118_v46 = vpack.c.bf16 %v343_v38, %v327_v37 }
  0x52   :  { %4107 = vmatpush1.bf16.msra.mxu0 %v4106_v10  ;;  %v376_v43 = vld [vmem:[#allocation7 + $0x988] sm:$0xff]  ;;  %v378_v45 = vld [vmem:[#allocation7 + $0x998] sm:$0xff]  ;;  %v4310_v47 = vpack.c.bf16 %v345_v41, %v329_v39  ;;  %v359_v49 = vld [vmem:[#allocation7 + $0x900] sm:$0xff] }
  0x53   :  { %4299 = vmatpush1.bf16.msra.mxu1 %v4298_v11  ;;  %4109 = vmatprep.subr.bf16.mxu0 %v4108_v12  ;;  %v4120_v48 = vpack.c.bf16 %v376_v43, %v360_v42  ;;  %v375_v50 = vld [vmem:[#allocation7 + $0x980] sm:$0xff]  ;;  %v361_v51 = vld [vmem:[#allocation7 + $0x910] sm:$0xff]  ;;  %v4312_v52 = vpack.c.bf16 %v378_v45, %v362_v44  ;;  %v392_v54 = vld [vmem:[#allocation7 + $0xa08] sm:$0xff] }
  0x54   :  { %4301 = vmatprep.subr.bf16.mxu1 %v4300_v16  ;;  %v377_v53 = vld [vmem:[#allocation7 + $0x990] sm:$0xff]  ;;  %v408_v55 = vld [vmem:[#allocation7 + $0xa88] sm:$0xff]  ;;  %v394_v59 = vld [vmem:[#allocation7 + $0xa18] sm:$0xff]  ;;  %v4122_v61 = vpack.c.bf16 %v375_v50, %v359_v49 }
  0x55   :  { %v410_v60 = vld [vmem:[#allocation7 + $0xa98] sm:$0xff]  ;;  %v4314_v62 = vpack.c.bf16 %v377_v53, %v361_v51  ;;  %v4124_v63 = vpack.c.bf16 %v408_v55, %v392_v54  ;;  %v391_v0 = vld [vmem:[#allocation7 + $0xa00] sm:$0xff]  ;;  %v393_v2 = vld [vmem:[#allocation7 + $0xa10] sm:$0xff] }
  0x56   :  { %4111 = vmatpush1.bf16.msra.mxu0 %v4110_v22  ;;  %v407_v1 = vld [vmem:[#allocation7 + $0xa80] sm:$0xff]  ;;  %v4316_v3 = vpack.c.bf16 %v410_v60, %v394_v59  ;;  %v409_v4 = vld [vmem:[#allocation7 + $0xa90] sm:$0xff]  ;;  %v424_v5 = vld [vmem:[#allocation7 + $0xb08] sm:$0xff] }
  0x57   :  { %4303 = vmatpush1.bf16.msra.mxu1 %v4302_v23  ;;  %4113 = vmatprep.subr.bf16.mxu0 %v4112_v24  ;;  %v440_v6 = vld [vmem:[#allocation7 + $0xb88] sm:$0xff]  ;;  %v426_v9 = vld [vmem:[#allocation7 + $0xb18] sm:$0xff]  ;;  %v4126_v11 = vpack.c.bf16 %v407_v1, %v391_v0  ;;  %v423_v12 = vld [vmem:[#allocation7 + $0xb00] sm:$0xff]  ;;  %v4318_v15 = vpack.c.bf16 %v409_v4, %v393_v2  ;;  %v5925_v23 = vsub.s32 %v1705_v8, %v5922_v7 }
  0x58   :  { %4305 = vmatprep.subr.bf16.mxu1 %v4304_v28  ;;  %v442_v10 = vld [vmem:[#allocation7 + $0xb98] sm:$0xff]  ;;  %v439_v13 = vld [vmem:[#allocation7 + $0xb80] sm:$0xff]  ;;  %v425_v14 = vld [vmem:[#allocation7 + $0xb10] sm:$0xff]  ;;  %v4128_v16 = vpack.c.bf16 %v440_v6, %v424_v5 }
  0x59   :  { %v441_v17 = vld [vmem:[#allocation7 + $0xb90] sm:$0xff]  ;;  %v456_v18 = vld [vmem:[#allocation7 + $0xc08] sm:$0xff]  ;;  %v4320_v20 = vpack.c.bf16 %v442_v10, %v426_v9  ;;  %v458_v21 = vld [vmem:[#allocation7 + $0xc18] sm:$0xff]  ;;  %v4130_v24 = vpack.c.bf16 %v439_v13, %v423_v12 }
  0x5a   :  { %4115 = vmatpush1.bf16.msra.mxu0 %v4114_v34  ;;  %v472_v19 = vld [vmem:[#allocation7 + $0xc88] sm:$0xff]  ;;  %v474_v22 = vld [vmem:[#allocation7 + $0xc98] sm:$0xff]  ;;  %v4322_v27 = vpack.c.bf16 %v441_v17, %v425_v14  ;;  %v455_v29 = vld [vmem:[#allocation7 + $0xc00] sm:$0xff] }
  0x5b   :  { %4307 = vmatpush1.bf16.msra.mxu1 %v4306_v35  ;;  %4117 = vmatprep.subr.bf16.mxu0 %v4116_v36  ;;  %v5681_v25 = vld [vmem:[#allocation4] ss:$12 sps:$4 sm:$0xff]   ;;  %v5683_v26 = vld [vmem:[#allocation4 + $0x18] ss:$12 sps:$4 sm:$0xff]   ;;  %v4132_v28 = vpack.c.bf16 %v472_v19, %v456_v18  ;;  %v471_v30 = vld [vmem:[#allocation7 + $0xc80] sm:$0xff]  ;;  %v4324_v32 = vpack.c.bf16 %v474_v22, %v458_v21 }
  0x5c   :  { %4309 = vmatprep.subr.bf16.mxu1 %v4308_v40  ;;  %v457_v31 = vld [vmem:[#allocation7 + $0xc10] sm:$0xff]  ;;  %v488_v34 = vld [vmem:[#allocation7 + $0xd08] sm:$0xff]  ;;  %v5928_v36 = vrot.slane %v5681_v25, %v5925_v23  ;;  %v5931_v37 = vrot.slane %v5683_v26, %v5925_v23  ;;  %v490_v38 = vld [vmem:[#allocation7 + $0xd18] sm:$0xff]  ;;  %v4134_v40 = vpack.c.bf16 %v471_v30, %v455_v29 }
  0x5d   :  { %v473_v33 = vld [vmem:[#allocation7 + $0xc90] sm:$0xff]  ;;  %v504_v35 = vld [vmem:[#allocation7 + $0xd88] sm:$0xff]  ;;  %v506_v39 = vld [vmem:[#allocation7 + $0xd98] sm:$0xff] }
  0x5e   :  { %4119 = vmatpush1.bf16.msra.mxu0 %v4118_v46  ;;  %v5935_v41 = vcombine.high %v5928_v36, %v5931_v37  ;;  %v4326_v42 = vpack.c.bf16 %v473_v33, %v457_v31  ;;  %v4136_v43 = vpack.c.bf16 %v504_v35, %v488_v34  ;;  %v487_v44 = vld [vmem:[#allocation7 + $0xd00] sm:$0xff]  ;;  %v489_v46 = vld [vmem:[#allocation7 + $0xd10] sm:$0xff]  ;;  %v520_v49 = vld [vmem:[#allocation7 + $0xe08] sm:$0xff]  ;;  %v5941_v25 = vcombine.low %v5928_v36, %v5931_v37 }
  0x5f   :  { %4311 = vmatpush1.bf16.msra.mxu1 %v4310_v47  ;;  %4121 = vmatprep.subr.bf16.mxu0 %v4120_v48  ;;  %v503_v45 = vld [vmem:[#allocation7 + $0xd80] sm:$0xff]  ;;  %v4328_v47 = vpack.c.bf16 %v506_v39, %v490_v38  ;;  %v505_v48 = vld [vmem:[#allocation7 + $0xd90] sm:$0xff]  ;;  %v536_v50 = vld [vmem:[#allocation7 + $0xe88] sm:$0xff] }
  0x60   :  { %4313 = vmatprep.subr.bf16.mxu1 %v4312_v52  ;;  %1823 = vmatprep.mubr.f32.mxu0 %v5935_v41  ;;  %v522_v51 = vld [vmem:[#allocation7 + $0xe18] sm:$0xff]  ;;  %v4138_v53 = vpack.c.bf16 %v503_v45, %v487_v44  ;;  %v4330_v54 = vpack.c.bf16 %v505_v48, %v489_v46  ;;  %v4140_v55 = vpack.c.bf16 %v536_v50, %v520_v49  ;;  %v519_v56 = vld [vmem:[#allocation7 + $0xe00] sm:$0xff]  ;;  %v521_v58 = vld [vmem:[#allocation7 + $0xe10] sm:$0xff] }
  0x61   :  { %v538_v52 = vld [vmem:[#allocation7 + $0xe98] sm:$0xff]  ;;  %2036 = vmatprep.mubr.f32.mxu1 %v5935_v41  ;;  %v535_v57 = vld [vmem:[#allocation7 + $0xe80] sm:$0xff]  ;;  %v537_v60 = vld [vmem:[#allocation7 + $0xe90] sm:$0xff] }
  0x62   :  { %4123 = vmatpush1.bf16.msra.mxu0 %v4122_v61  ;;  %v4332_v59 = vpack.c.bf16 %v538_v52, %v522_v51  ;;  %v552_v61 = vld [vmem:[#allocation7 + $0xf08] sm:$0xff]  ;;  %v570_v0 = vld [vmem:[#allocation7 + $0xf98] sm:$0xff]  ;;  %v4142_v1 = vpack.c.bf16 %v535_v57, %v519_v56  ;;  %v4334_v2 = vpack.c.bf16 %v537_v60, %v521_v58  ;;  %v551_v4 = vld [vmem:[#allocation7 + $0xf00] sm:$0xff] }
  0x63   :  { %4315 = vmatpush1.bf16.msra.mxu1 %v4314_v62  ;;  %4125 = vmatprep.subr.bf16.mxu0 %v4124_v63  ;;  %v568_v62 = vld [vmem:[#allocation7 + $0xf88] sm:$0xff]  ;;  %v554_v63 = vld [vmem:[#allocation7 + $0xf18] sm:$0xff]  ;;  %v567_v5 = vld [vmem:[#allocation7 + $0xf80] sm:$0xff] }
  0x64   :  { %4317 = vmatprep.subr.bf16.mxu1 %v4316_v3  ;;  %v4144_v3 = vpack.c.bf16 %v568_v62, %v552_v61  ;;  %v553_v6 = vld [vmem:[#allocation7 + $0xf10] sm:$0xff]  ;;  %v4336_v8 = vpack.c.bf16 %v570_v0, %v554_v63  ;;  %v584_v10 = vld [vmem:[#allocation7 + $0x1008] sm:$0xff]  ;;  %v586_v12 = vld [vmem:[#allocation7 + $0x1018] sm:$0xff]  ;;  %v4146_v14 = vpack.c.bf16 %v567_v5, %v551_v4 }
  0x65   :  { %v569_v9 = vld [vmem:[#allocation7 + $0xf90] sm:$0xff]  ;;  %v602_v13 = vld [vmem:[#allocation7 + $0x1098] sm:$0xff]  ;;  %v583_v17 = vld [vmem:[#allocation7 + $0x1000] sm:$0xff] }
  0x66   :  { %4127 = vmatpush1.bf16.msra.mxu0 %v4126_v11  ;;  %v600_v11 = vld [vmem:[#allocation7 + $0x1088] sm:$0xff]  ;;  %v599_v18 = vld [vmem:[#allocation7 + $0x1080] sm:$0xff]  ;;  %v585_v19 = vld [vmem:[#allocation7 + $0x1010] sm:$0xff] }
  0x67   :  { %4319 = vmatpush1.bf16.msra.mxu1 %v4318_v15  ;;  %4129 = vmatprep.subr.bf16.mxu0 %v4128_v16  ;;  %v4338_v15 = vpack.c.bf16 %v569_v9, %v553_v6  ;;  %v4148_v16 = vpack.c.bf16 %v600_v11, %v584_v10  ;;  %v601_v21 = vld [vmem:[#allocation7 + $0x1090] sm:$0xff]  ;;  %v616_v22 = vld [vmem:[#allocation7 + $0x1108] sm:$0xff]  ;;  %v618_v26 = vld [vmem:[#allocation7 + $0x1118] sm:$0xff] }
  0x68   :  { %4321 = vmatprep.subr.bf16.mxu1 %v4320_v20  ;;  %v4340_v20 = vpack.c.bf16 %v602_v13, %v586_v12  ;;  %v4342_v29 = vpack.c.bf16 %v601_v21, %v585_v19  ;;  %v615_v31 = vld [vmem:[#allocation7 + $0x1100] sm:$0xff]  ;;  %v617_v33 = vld [vmem:[#allocation7 + $0x1110] sm:$0xff]  ;;  %v648_v38 = vld [vmem:[#allocation7 + $0x1208] sm:$0xff] }
  0x69   :  { %v633_v35 = vld [vmem:[#allocation7 + $0x1190] sm:$0xff]  ;;  %v664_v39 = vld [vmem:[#allocation7 + $0x1288] sm:$0xff]  ;;  %v650_v36 = vld [vmem:[#allocation7 + $0x1218] sm:$0xff] }
  0x6a   :  { %4131 = vmatpush1.bf16.msra.mxu0 %v4130_v24  ;;  %v632_v24 = vld [vmem:[#allocation7 + $0x1188] sm:$0xff]  ;;  %v666_v37 = vld [vmem:[#allocation7 + $0x1298] sm:$0xff]  ;;  %v647_v44 = vld [vmem:[#allocation7 + $0x1200] sm:$0xff] }
  0x6b   :  { %4323 = vmatpush1.bf16.msra.mxu1 %v4322_v27  ;;  %4133 = vmatprep.subr.bf16.mxu0 %v4132_v28  ;;  %v634_v27 = vld [vmem:[#allocation7 + $0x1198] sm:$0xff]  ;;  %v4150_v28 = vpack.c.bf16 %v599_v18, %v583_v17  ;;  %v4152_v30 = vpack.c.bf16 %v632_v24, %v616_v22  ;;  %v663_v45 = vld [vmem:[#allocation7 + $0x1280] sm:$0xff]  ;;  %v649_v46 = vld [vmem:[#allocation7 + $0x1210] sm:$0xff] }
  0x6c   :  { %4325 = vmatprep.subr.bf16.mxu1 %v4324_v32  ;;  %v631_v32 = vld [vmem:[#allocation7 + $0x1180] sm:$0xff]  ;;  %v4344_v34 = vpack.c.bf16 %v634_v27, %v618_v26  ;;  %v665_v48 = vld [vmem:[#allocation7 + $0x1290] sm:$0xff]  ;;  %v680_v49 = vld [vmem:[#allocation7 + $0x1308] sm:$0xff] }
  0x6d   :  { %v696_v50 = vld [vmem:[#allocation7 + $0x1388] sm:$0xff]  ;;  %v682_v51 = vld [vmem:[#allocation7 + $0x1318] sm:$0xff]  ;;  %v679_v56 = vld [vmem:[#allocation7 + $0x1300] sm:$0xff] }
  0x6e   :  { %4135 = vmatpush1.bf16.msra.mxu0 %v4134_v40  ;;  %v4154_v40 = vpack.c.bf16 %v631_v32, %v615_v31  ;;  %v698_v52 = vld [vmem:[#allocation7 + $0x1398] sm:$0xff]  ;;  %v695_v57 = vld [vmem:[#allocation7 + $0x1380] sm:$0xff]  ;;  %v681_v58 = vld [vmem:[#allocation7 + $0x1310] sm:$0xff] }
  0x6f   :  { %4327 = vmatpush1.bf16.msra.mxu1 %v4326_v42  ;;  %4137 = vmatprep.subr.bf16.mxu0 %v4136_v43  ;;  %v4346_v42 = vpack.c.bf16 %v633_v35, %v617_v33  ;;  %v4156_v43 = vpack.c.bf16 %v664_v39, %v648_v38  ;;  %v697_v60 = vld [vmem:[#allocation7 + $0x1390] sm:$0xff]  ;;  %v712_v61 = vld [vmem:[#allocation7 + $0x1408] sm:$0xff]  ;;  %v714_v63 = vld [vmem:[#allocation7 + $0x1418] sm:$0xff] }
  0x70   :  { %4329 = vmatprep.subr.bf16.mxu1 %v4328_v47  ;;  %v4348_v47 = vpack.c.bf16 %v666_v37, %v650_v36  ;;  %v728_v62 = vld [vmem:[#allocation7 + $0x1488] sm:$0xff]  ;;  %v730_v0 = vld [vmem:[#allocation7 + $0x1498] sm:$0xff]  ;;  %v711_v4 = vld [vmem:[#allocation7 + $0x1400] sm:$0xff] }
  0x71   :  { %v727_v5 = vld [vmem:[#allocation7 + $0x1480] sm:$0xff]  ;;  %v713_v6 = vld [vmem:[#allocation7 + $0x1410] sm:$0xff]  ;;  %v744_v10 = vld [vmem:[#allocation7 + $0x1508] sm:$0xff] }
  0x72   :  { %4139 = vmatpush1.bf16.msra.mxu0 %v4138_v53  ;;  %v4158_v53 = vpack.c.bf16 %v663_v45, %v647_v44  ;;  %v729_v9 = vld [vmem:[#allocation7 + $0x1490] sm:$0xff]  ;;  %v760_v11 = vld [vmem:[#allocation7 + $0x1588] sm:$0xff]  ;;  %v746_v12 = vld [vmem:[#allocation7 + $0x1518] sm:$0xff] }
  0x73   :  { %4331 = vmatpush1.bf16.msra.mxu1 %v4330_v54  ;;  %4141 = vmatprep.subr.bf16.mxu0 %v4140_v55  ;;  %v4350_v54 = vpack.c.bf16 %v665_v48, %v649_v46  ;;  %v4160_v55 = vpack.c.bf16 %v696_v50, %v680_v49  ;;  %v762_v13 = vld [vmem:[#allocation7 + $0x1598] sm:$0xff]  ;;  %v743_v17 = vld [vmem:[#allocation7 + $0x1500] sm:$0xff]  ;;  %v745_v19 = vld [vmem:[#allocation7 + $0x1510] sm:$0xff] }
  0x74   :  { %4333 = vmatprep.subr.bf16.mxu1 %v4332_v59  ;;  %v4352_v59 = vpack.c.bf16 %v698_v52, %v682_v51  ;;  %v759_v18 = vld [vmem:[#allocation7 + $0x1580] sm:$0xff]  ;;  %v761_v21 = vld [vmem:[#allocation7 + $0x1590] sm:$0xff]  ;;  %v776_v22 = vld [vmem:[#allocation7 + $0x1608] sm:$0xff] }
  0x75   :  { %v792_v24 = vld [vmem:[#allocation7 + $0x1688] sm:$0xff]  ;;  %v778_v26 = vld [vmem:[#allocation7 + $0x1618] sm:$0xff]  ;;  %v791_v32 = vld [vmem:[#allocation7 + $0x1680] sm:$0xff] }
  0x76   :  { %4143 = vmatpush1.bf16.msra.mxu0 %v4142_v1  ;;  %v4162_v1 = vpack.c.bf16 %v695_v57, %v679_v56  ;;  %v794_v27 = vld [vmem:[#allocation7 + $0x1698] sm:$0xff]  ;;  %v4172_v31 = vpack.c.bf16 %v792_v24, %v776_v22  ;;  %v777_v33 = vld [vmem:[#allocation7 + $0x1610] sm:$0xff]  ;;  %v808_v38 = vld [vmem:[#allocation7 + $0x1708] sm:$0xff] }
  0x77   :  { %4335 = vmatpush1.bf16.msra.mxu1 %v4334_v2  ;;  %4145 = vmatprep.subr.bf16.mxu0 %v4144_v3  ;;  %v4354_v2 = vpack.c.bf16 %v697_v60, %v681_v58  ;;  %v4164_v3 = vpack.c.bf16 %v728_v62, %v712_v61  ;;  %v4364_v35 = vpack.c.bf16 %v794_v27, %v778_v26  ;;  %v824_v39 = vld [vmem:[#allocation7 + $0x1788] sm:$0xff]  ;;  %v810_v36 = vld [vmem:[#allocation7 + $0x1718] sm:$0xff]  ;;  %v807_v46 = vld [vmem:[#allocation7 + $0x1700] sm:$0xff] }
  0x78   :  { %4337 = vmatprep.subr.bf16.mxu1 %v4336_v8  ;;  %v4356_v8 = vpack.c.bf16 %v730_v0, %v714_v63  ;;  %v826_v37 = vld [vmem:[#allocation7 + $0x1798] sm:$0xff]  ;;  %v4176_v45 = vpack.c.bf16 %v824_v39, %v808_v38  ;;  %v809_v48 = vld [vmem:[#allocation7 + $0x1710] sm:$0xff]  ;;  %v839_v61 = vld [vmem:[#allocation7 + $0x1800] sm:$0xff] }
  0x79   :  { %v4368_v51 = vpack.c.bf16 %v826_v37, %v810_v36  ;;  %v825_v52 = vld [vmem:[#allocation7 + $0x1790] sm:$0xff]  ;;  %v858_v56 = vld [vmem:[#allocation7 + $0x1898] sm:$0xff]  ;;  %v855_v62 = vld [vmem:[#allocation7 + $0x1880] sm:$0xff] }
  0x7a   :  { %4147 = vmatpush1.bf16.msra.mxu0 %v4146_v14  ;;  %v4166_v14 = vpack.c.bf16 %v727_v5, %v711_v4  ;;  %v841_v63 = vld [vmem:[#allocation7 + $0x1810] sm:$0xff]  ;;  %v874_v4 = vld [vmem:[#allocation7 + $0x1918] sm:$0xff]  ;;  %v903_v22 = vld [vmem:[#allocation7 + $0x1a00] sm:$0xff] }
  0x7b   :  { %4339 = vmatpush1.bf16.msra.mxu1 %v4338_v15  ;;  %4149 = vmatprep.subr.bf16.mxu0 %v4148_v16  ;;  %v4358_v15 = vpack.c.bf16 %v729_v9, %v713_v6  ;;  %v4168_v16 = vpack.c.bf16 %v760_v11, %v744_v10  ;;  %v890_v5 = vld [vmem:[#allocation7 + $0x1998] sm:$0xff]  ;;  %v4182_v6 = vpack.c.bf16 %v855_v62, %v839_v61  ;;  %v871_v10 = vld [vmem:[#allocation7 + $0x1900] sm:$0xff]  ;;  %v905_v26 = vld [vmem:[#allocation7 + $0x1a10] sm:$0xff] }
  0x7c   :  { %4341 = vmatprep.subr.bf16.mxu1 %v4340_v20  ;;  %v4360_v20 = vpack.c.bf16 %v762_v13, %v746_v12  ;;  %v887_v11 = vld [vmem:[#allocation7 + $0x1980] sm:$0xff]  ;;  %v873_v12 = vld [vmem:[#allocation7 + $0x1910] sm:$0xff]  ;;  %v4376_v13 = vpack.c.bf16 %v890_v5, %v874_v4  ;;  %v1032_v5 = vld [vmem:[#allocation7 + $0x1e08] sm:$0xff] }
  0x7d   :  { %1824 = vmatmul.mubr.f32.vlgmr.msra.gmra.mrb[0].mxu0 %v5941_v25  ;;  %v919_v24 = vld [vmem:[#allocation7 + $0x1a80] sm:$0xff]  ;;  %v937_v36 = vld [vmem:[#allocation7 + $0x1b10] sm:$0xff] }
  0x7e   :  { %4151 = vmatpush1.bf16.msra.mxu0 %v4150_v28  ;;  %2037 = vmatmul.mubr.f32.vlgmr.msra.gmra.mrb[0].mxu1 %v5941_v25  ;;  %v4170_v28 = vpack.c.bf16 %v759_v18, %v743_v17  ;;  %v906_v17 = vld [vmem:[#allocation7 + $0x1a18] sm:$0xff]  ;;  %v935_v38 = vld [vmem:[#allocation7 + $0x1b00] sm:$0xff]  ;;  %v1017_v4 = vld [vmem:[#allocation7 + $0x1d90] sm:$0xff] }
  0x7f   :  { %4343 = vmatpush1.bf16.msra.mxu1 %v4342_v29  ;;  %4153 = vmatprep.subr.bf16.mxu0 %v4152_v30  ;;  %v775_v29 = vld [vmem:[#allocation7 + $0x1600] sm:$0xff]  ;;  %v4362_v30 = vpack.c.bf16 %v761_v21, %v745_v19  ;;  %v922_v18 = vld [vmem:[#allocation7 + $0x1a98] sm:$0xff]  ;;  %v4186_v19 = vpack.c.bf16 %v887_v11, %v871_v10 }
  0x80   :  { %4345 = vmatprep.subr.bf16.mxu1 %v4344_v34  ;;  %v793_v34 = vld [vmem:[#allocation7 + $0x1690] sm:$0xff]  ;;  %v4380_v27 = vpack.c.bf16 %v922_v18, %v906_v17  ;;  %v951_v39 = vld [vmem:[#allocation7 + $0x1b80] sm:$0xff]  ;;  %v1064_v18 = vld [vmem:[#allocation7 + $0x1f08] sm:$0xff] }
  0x81   :  { %v4366_v44 = vpack.c.bf16 %v793_v34, %v777_v33  ;;  %v4190_v33 = vpack.c.bf16 %v919_v24, %v903_v22  ;;  %v1049_v17 = vld [vmem:[#allocation7 + $0x1e90] sm:$0xff] }
  0x82   :  { %4155 = vmatpush1.bf16.msra.mxu0 %v4154_v40  ;;  %v5685_v40 = vld [vmem:[#allocation4 + $0x4] ss:$12 sps:$4 sm:$0xff]  }
  0x83   :  { %4347 = vmatpush1.bf16.msra.mxu1 %v4346_v42  ;;  %4157 = vmatprep.subr.bf16.mxu0 %v4156_v43  ;;  %v5686_v42 = vld [vmem:[#allocation4 + $0x1c] ss:$12 sps:$4 sm:$0xff]   ;;  %v4174_v43 = vpack.c.bf16 %v791_v32, %v775_v29  ;;  %v5946_v49 = vrot.slane %v5685_v40, %v5925_v23  ;;  %v953_v40 = vld [vmem:[#allocation7 + $0x1b90] sm:$0xff] }
  0x84   :  { %4349 = vmatprep.subr.bf16.mxu1 %v4348_v47  ;;  %v823_v47 = vld [vmem:[#allocation7 + $0x1780] sm:$0xff]  ;;  %v5949_v50 = vrot.slane %v5686_v42, %v5925_v23  ;;  %v936_v29 = vld [vmem:[#allocation7 + $0x1b08] sm:$0xff]  ;;  %v954_v32 = vld [vmem:[#allocation7 + $0x1b98] sm:$0xff] }
  0x85   :  { %v4178_v58 = vpack.c.bf16 %v823_v47, %v807_v46  ;;  %v968_v42 = vld [vmem:[#allocation7 + $0x1c08] sm:$0xff]  ;;  %v4194_v46 = vpack.c.bf16 %v951_v39, %v935_v38  ;;  %v4386_v47 = vpack.c.bf16 %v953_v40, %v937_v36  ;;  %v1111_v40 = vld [vmem:[#allocation7 + $0x2080] sm:$0xff] }
  0x86   :  { %4159 = vmatpush1.bf16.msra.mxu0 %v4158_v53  ;;  %v840_v53 = vld [vmem:[#allocation7 + $0x1808] sm:$0xff]  ;;  %v5953_v57 = vcombine.high %v5946_v49, %v5949_v50 }
  0x87   :  { %4351 = vmatpush1.bf16.msra.mxu1 %v4350_v54  ;;  %4161 = vmatprep.subr.bf16.mxu0 %v4160_v55  ;;  %v856_v54 = vld [vmem:[#allocation7 + $0x1888] sm:$0xff]  ;;  %v842_v55 = vld [vmem:[#allocation7 + $0x1818] sm:$0xff] }
  0x88   :  { %4353 = vmatprep.subr.bf16.mxu1 %v4352_v59  ;;  %v4370_v59 = vpack.c.bf16 %v825_v52, %v809_v48  ;;  %v4180_v60 = vpack.c.bf16 %v856_v54, %v840_v53  ;;  %v4372_v0 = vpack.c.bf16 %v858_v56, %v842_v55  ;;  %1894 = vmatprep.mubr.f32.mxu0 %v5953_v57  ;;  %v983_v52 = vld [vmem:[#allocation7 + $0x1c80] sm:$0xff]  ;;  %v969_v53 = vld [vmem:[#allocation7 + $0x1c10] sm:$0xff]  ;;  %v1000_v56 = vld [vmem:[#allocation7 + $0x1d08] sm:$0xff] }
  0x89   :  { %2107 = vmatprep.mubr.f32.mxu1 %v5953_v57  ;;  %v985_v55 = vld [vmem:[#allocation7 + $0x1c90] sm:$0xff] }
  0x8a   :  { %4163 = vmatpush1.bf16.msra.mxu0 %v4162_v1  ;;  %v857_v1 = vld [vmem:[#allocation7 + $0x1890] sm:$0xff]  ;;  %v4390_v62 = vpack.c.bf16 %v985_v55, %v969_v53  ;;  %v1127_v53 = vld [vmem:[#allocation7 + $0x2100] sm:$0xff] }
  0x8b   :  { %4355 = vmatpush1.bf16.msra.mxu1 %v4354_v2  ;;  %4165 = vmatprep.subr.bf16.mxu0 %v4164_v3  ;;  %v872_v2 = vld [vmem:[#allocation7 + $0x1908] sm:$0xff]  ;;  %v1129_v55 = vld [vmem:[#allocation7 + $0x2110] sm:$0xff] }
  0x8c   :  { %4357 = vmatprep.subr.bf16.mxu1 %v4356_v8  ;;  %v888_v3 = vld [vmem:[#allocation7 + $0x1988] sm:$0xff]  ;;  %v4374_v8 = vpack.c.bf16 %v857_v1, %v841_v63  ;;  %v1015_v1 = vld [vmem:[#allocation7 + $0x1d80] sm:$0xff] }
  0x8d   :  { %v4184_v9 = vpack.c.bf16 %v888_v3, %v872_v2  ;;  %v1001_v2 = vld [vmem:[#allocation7 + $0x1d10] sm:$0xff] }
  0x8e   :  { %4167 = vmatpush1.bf16.msra.mxu0 %v4166_v14  ;;  %v889_v14 = vld [vmem:[#allocation7 + $0x1990] sm:$0xff]  ;;  %v4394_v11 = vpack.c.bf16 %v1017_v4, %v1001_v2  ;;  %v1159_v4 = vld [vmem:[#allocation7 + $0x2200] sm:$0xff] }
  0x8f   :  { %4359 = vmatpush1.bf16.msra.mxu1 %v4358_v15  ;;  %4169 = vmatprep.subr.bf16.mxu0 %v4168_v16  ;;  %v904_v15 = vld [vmem:[#allocation7 + $0x1a08] sm:$0xff] }
  0x90   :  { %4361 = vmatprep.subr.bf16.mxu1 %v4360_v20  ;;  %v920_v16 = vld [vmem:[#allocation7 + $0x1a88] sm:$0xff]  ;;  %v4378_v20 = vpack.c.bf16 %v889_v14, %v873_v12  ;;  %v1047_v14 = vld [vmem:[#allocation7 + $0x1e80] sm:$0xff] }
  0x91   :  { %v4188_v21 = vpack.c.bf16 %v920_v16, %v904_v15  ;;  %v1033_v15 = vld [vmem:[#allocation7 + $0x1e10] sm:$0xff] }
  0x92   :  { %4171 = vmatpush1.bf16.msra.mxu0 %v4170_v28  ;;  %v921_v28 = vld [vmem:[#allocation7 + $0x1a90] sm:$0xff]  ;;  %v4398_v24 = vpack.c.bf16 %v1049_v17, %v1033_v15  ;;  %v1210_v15 = vld [vmem:[#allocation7 + $0x2398] sm:$0xff] }
  0x93   :  { %4363 = vmatpush1.bf16.msra.mxu1 %v4362_v30  ;;  %4173 = vmatprep.subr.bf16.mxu0 %v4172_v31  ;;  %v952_v30 = vld [vmem:[#allocation7 + $0x1b88] sm:$0xff]  ;;  %v938_v31 = vld [vmem:[#allocation7 + $0x1b18] sm:$0xff]  ;;  %v4382_v34 = vpack.c.bf16 %v921_v28, %v905_v26  ;;  %v1079_v28 = vld [vmem:[#allocation7 + $0x1f80] sm:$0xff] }
  0x94   :  { %4365 = vmatprep.subr.bf16.mxu1 %v4364_v35  ;;  %v4192_v35 = vpack.c.bf16 %v952_v30, %v936_v29  ;;  %v4384_v37 = vpack.c.bf16 %v954_v32, %v938_v31  ;;  %v1065_v29 = vld [vmem:[#allocation7 + $0x1f10] sm:$0xff]  ;;  %v1096_v32 = vld [vmem:[#allocation7 + $0x2008] sm:$0xff] }
  0x95   :  { %v1081_v31 = vld [vmem:[#allocation7 + $0x1f90] sm:$0xff] }
  0x96   :  { %4175 = vmatpush1.bf16.msra.mxu0 %v4174_v43  ;;  %v984_v43 = vld [vmem:[#allocation7 + $0x1c88] sm:$0xff]  ;;  %v4402_v39 = vpack.c.bf16 %v1081_v31, %v1065_v29  ;;  %v1242_v29 = vld [vmem:[#allocation7 + $0x2498] sm:$0xff] }
  0x97   :  { %4367 = vmatpush1.bf16.msra.mxu1 %v4366_v44  ;;  %4177 = vmatprep.subr.bf16.mxu0 %v4176_v45  ;;  %v970_v44 = vld [vmem:[#allocation7 + $0x1c18] sm:$0xff]  ;;  %v4196_v48 = vpack.c.bf16 %v984_v43, %v968_v42  ;;  %v1097_v42 = vld [vmem:[#allocation7 + $0x2010] sm:$0xff] }
  0x98   :  { %4369 = vmatprep.subr.bf16.mxu1 %v4368_v51  ;;  %v986_v45 = vld [vmem:[#allocation7 + $0x1c98] sm:$0xff]  ;;  %v967_v51 = vld [vmem:[#allocation7 + $0x1c00] sm:$0xff] }
  0x99   :  { %v4388_v54 = vpack.c.bf16 %v986_v45, %v970_v44  ;;  %v4198_v61 = vpack.c.bf16 %v983_v52, %v967_v51  ;;  %v1113_v44 = vld [vmem:[#allocation7 + $0x2090] sm:$0xff]  ;;  %v1128_v45 = vld [vmem:[#allocation7 + $0x2108] sm:$0xff]  ;;  %v1146_v51 = vld [vmem:[#allocation7 + $0x2198] sm:$0xff] }
  0x9a   :  { %4179 = vmatpush1.bf16.msra.mxu0 %v4178_v58  ;;  %v1016_v58 = vld [vmem:[#allocation7 + $0x1d88] sm:$0xff] }
  0x9b   :  { %4371 = vmatpush1.bf16.msra.mxu1 %v4370_v59  ;;  %4181 = vmatprep.subr.bf16.mxu0 %v4180_v60  ;;  %v1002_v59 = vld [vmem:[#allocation7 + $0x1d18] sm:$0xff]  ;;  %v4200_v63 = vpack.c.bf16 %v1016_v58, %v1000_v56  ;;  %v4406_v56 = vpack.c.bf16 %v1113_v44, %v1097_v42 }
  0x9c   :  { %4373 = vmatprep.subr.bf16.mxu1 %v4372_v0  ;;  %v1018_v60 = vld [vmem:[#allocation7 + $0x1d98] sm:$0xff]  ;;  %v999_v0 = vld [vmem:[#allocation7 + $0x1d00] sm:$0xff] }
  0x9d   :  { %v4392_v3 = vpack.c.bf16 %v1018_v60, %v1002_v59  ;;  %v4202_v10 = vpack.c.bf16 %v1015_v1, %v999_v0  ;;  %v1145_v59 = vld [vmem:[#allocation7 + $0x2190] sm:$0xff]  ;;  %v1160_v60 = vld [vmem:[#allocation7 + $0x2208] sm:$0xff]  ;;  %v1178_v0 = vld [vmem:[#allocation7 + $0x2298] sm:$0xff] }
  0x9e   :  { %4183 = vmatpush1.bf16.msra.mxu0 %v4182_v6  ;;  %v1048_v6 = vld [vmem:[#allocation7 + $0x1e88] sm:$0xff]  ;;  %v5688_v1 = vld [vmem:[#allocation4 + $0x20] ss:$12 sps:$4 sm:$0xff]   ;;  %v4410_v2 = vpack.c.bf16 %v1145_v59, %v1129_v55 }
  0x9f   :  { %4375 = vmatpush1.bf16.msra.mxu1 %v4374_v8  ;;  %4185 = vmatprep.subr.bf16.mxu0 %v4184_v9  ;;  %v1034_v8 = vld [vmem:[#allocation7 + $0x1e18] sm:$0xff]  ;;  %v4204_v12 = vpack.c.bf16 %v1048_v6, %v1032_v5  ;;  %v1175_v5 = vld [vmem:[#allocation7 + $0x2280] sm:$0xff]  ;;  %v1161_v6 = vld [vmem:[#allocation7 + $0x2210] sm:$0xff] }
  0xa0   :  { %4377 = vmatprep.subr.bf16.mxu1 %v4376_v13  ;;  %v1050_v9 = vld [vmem:[#allocation7 + $0x1e98] sm:$0xff]  ;;  %v1031_v13 = vld [vmem:[#allocation7 + $0x1e00] sm:$0xff]  ;;  %v1304_v55 = vld [vmem:[#allocation7 + $0x2688] sm:$0xff] }
  0xa1   :  { %v4396_v16 = vpack.c.bf16 %v1050_v9, %v1034_v8  ;;  %v4206_v22 = vpack.c.bf16 %v1047_v14, %v1031_v13  ;;  %v1177_v9 = vld [vmem:[#allocation7 + $0x2290] sm:$0xff]  ;;  %v5967_v13 = vrot.slane %v5688_v1, %v5925_v23  ;;  %v1194_v14 = vld [vmem:[#allocation7 + $0x2318] sm:$0xff]  ;;  %v1320_v1 = vld [vmem:[#allocation7 + $0x2708] sm:$0xff] }
  0xa2   :  { %4187 = vmatpush1.bf16.msra.mxu0 %v4186_v19  ;;  %v1080_v19 = vld [vmem:[#allocation7 + $0x1f88] sm:$0xff]  ;;  %v1274_v42 = vld [vmem:[#allocation7 + $0x2598] sm:$0xff] }
  0xa3   :  { %4379 = vmatpush1.bf16.msra.mxu1 %v4378_v20  ;;  %4189 = vmatprep.subr.bf16.mxu0 %v4188_v21  ;;  %v1066_v20 = vld [vmem:[#allocation7 + $0x1f18] sm:$0xff]  ;;  %v4208_v26 = vpack.c.bf16 %v1080_v19, %v1064_v18  ;;  %v4414_v18 = vpack.c.bf16 %v1177_v9, %v1161_v6  ;;  %v1319_v9 = vld [vmem:[#allocation7 + $0x2700] sm:$0xff] }
  0xa4   :  { %4381 = vmatprep.subr.bf16.mxu1 %v4380_v27  ;;  %v1082_v21 = vld [vmem:[#allocation7 + $0x1f98] sm:$0xff]  ;;  %v1063_v27 = vld [vmem:[#allocation7 + $0x1f00] sm:$0xff] }
  0xa5   :  { %v4400_v30 = vpack.c.bf16 %v1082_v21, %v1066_v20  ;;  %v4210_v38 = vpack.c.bf16 %v1079_v28, %v1063_v27  ;;  %v1191_v20 = vld [vmem:[#allocation7 + $0x2300] sm:$0xff]  ;;  %v1240_v27 = vld [vmem:[#allocation7 + $0x2488] sm:$0xff]  ;;  %v1226_v28 = vld [vmem:[#allocation7 + $0x2418] sm:$0xff] }
  0xa6   :  { %4191 = vmatpush1.bf16.msra.mxu0 %v4190_v33  ;;  %v1112_v33 = vld [vmem:[#allocation7 + $0x2088] sm:$0xff]  ;;  %v1207_v21 = vld [vmem:[#allocation7 + $0x2380] sm:$0xff] }
  0xa7   :  { %4383 = vmatpush1.bf16.msra.mxu1 %v4382_v34  ;;  %4193 = vmatprep.subr.bf16.mxu0 %v4192_v35  ;;  %v1098_v34 = vld [vmem:[#allocation7 + $0x2018] sm:$0xff]  ;;  %v4212_v36 = vpack.c.bf16 %v1112_v33, %v1096_v32  ;;  %v1223_v33 = vld [vmem:[#allocation7 + $0x2400] sm:$0xff] }
  0xa8   :  { %4385 = vmatprep.subr.bf16.mxu1 %v4384_v37  ;;  %v1114_v35 = vld [vmem:[#allocation7 + $0x2098] sm:$0xff]  ;;  %v1095_v37 = vld [vmem:[#allocation7 + $0x2000] sm:$0xff] }
  0xa9   :  { %v4404_v43 = vpack.c.bf16 %v1114_v35, %v1098_v34  ;;  %v4214_v52 = vpack.c.bf16 %v1111_v40, %v1095_v37  ;;  %v1239_v34 = vld [vmem:[#allocation7 + $0x2480] sm:$0xff]  ;;  %v1225_v35 = vld [vmem:[#allocation7 + $0x2410] sm:$0xff]  ;;  %v1272_v37 = vld [vmem:[#allocation7 + $0x2588] sm:$0xff] }
  0xaa   :  { %4195 = vmatpush1.bf16.msra.mxu0 %v4194_v46  ;;  %v1144_v46 = vld [vmem:[#allocation7 + $0x2188] sm:$0xff]  ;;  %v1258_v40 = vld [vmem:[#allocation7 + $0x2518] sm:$0xff] }
  0xab   :  { %4387 = vmatpush1.bf16.msra.mxu1 %v4386_v47  ;;  %4197 = vmatprep.subr.bf16.mxu0 %v4196_v48  ;;  %v5959_v47 = vcombine.low %v5946_v49, %v5949_v50  ;;  %v1130_v48 = vld [vmem:[#allocation7 + $0x2118] sm:$0xff]  ;;  %v4216_v58 = vpack.c.bf16 %v1144_v46, %v1128_v45  ;;  %v1255_v46 = vld [vmem:[#allocation7 + $0x2500] sm:$0xff] }
  0xac   :  { %4389 = vmatprep.subr.bf16.mxu1 %v4388_v54  ;;  %v1143_v54 = vld [vmem:[#allocation7 + $0x2180] sm:$0xff] }
  0xad   :  { %v4218_v49 = vpack.c.bf16 %v1143_v54, %v1127_v53  ;;  %v5687_v50 = vld [vmem:[#allocation4 + $0x8] ss:$12 sps:$4 sm:$0xff]   ;;  %v1273_v53 = vld [vmem:[#allocation7 + $0x2590] sm:$0xff]  ;;  %v1288_v54 = vld [vmem:[#allocation7 + $0x2608] sm:$0xff] }
  0xae   :  { %4199 = vmatpush1.bf16.msra.mxu0 %v4198_v61  ;;  %v1176_v61 = vld [vmem:[#allocation7 + $0x2288] sm:$0xff] }
  0xaf   :  { %4391 = vmatpush1.bf16.msra.mxu1 %v4390_v62  ;;  %4201 = vmatprep.subr.bf16.mxu0 %v4200_v63  ;;  %v4408_v62 = vpack.c.bf16 %v1146_v51, %v1130_v48  ;;  %v1162_v63 = vld [vmem:[#allocation7 + $0x2218] sm:$0xff]  ;;  %v1271_v48 = vld [vmem:[#allocation7 + $0x2580] sm:$0xff]  ;;  %v1257_v51 = vld [vmem:[#allocation7 + $0x2510] sm:$0xff] }
  0xb0   :  { %4393 = vmatprep.subr.bf16.mxu1 %v4392_v3  ;;  %v4220_v3 = vpack.c.bf16 %v1176_v61, %v1160_v60  ;;  %v4412_v8 = vpack.c.bf16 %v1178_v0, %v1162_v63  ;;  %v4234_v59 = vpack.c.bf16 %v1271_v48, %v1255_v46  ;;  %v4426_v60 = vpack.c.bf16 %v1273_v53, %v1257_v51  ;;  %v1303_v63 = vld [vmem:[#allocation7 + $0x2680] sm:$0xff]  ;;  %v1289_v0 = vld [vmem:[#allocation7 + $0x2610] sm:$0xff]  ;;  %v1434_v46 = vld [vmem:[#allocation7 + $0x2a98] sm:$0xff] }
  0xb1   :  { %v4236_v61 = vpack.c.bf16 %v1304_v55, %v1288_v54  ;;  %v1415_v53 = vld [vmem:[#allocation7 + $0x2a00] sm:$0xff]  ;;  %v1417_v55 = vld [vmem:[#allocation7 + $0x2a10] sm:$0xff] }
  0xb2   :  { %4203 = vmatpush1.bf16.msra.mxu0 %v4202_v10  ;;  %v1192_v10 = vld [vmem:[#allocation7 + $0x2308] sm:$0xff]  ;;  %v1431_v54 = vld [vmem:[#allocation7 + $0x2a80] sm:$0xff] }
  0xb3   :  { %4395 = vmatpush1.bf16.msra.mxu1 %v4394_v11  ;;  %4205 = vmatprep.subr.bf16.mxu0 %v4204_v12  ;;  %v1208_v11 = vld [vmem:[#allocation7 + $0x2388] sm:$0xff]  ;;  %v5964_v12 = vrot.slane %v5687_v50, %v5925_v23  ;;  %v1305_v50 = vld [vmem:[#allocation7 + $0x2690] sm:$0xff] }
  0xb4   :  { %4397 = vmatprep.subr.bf16.mxu1 %v4396_v16  ;;  %v4222_v16 = vpack.c.bf16 %v1175_v5, %v1159_v4  ;;  %v4224_v19 = vpack.c.bf16 %v1208_v11, %v1192_v10  ;;  %v1224_v23 = vld [vmem:[#allocation7 + $0x2408] sm:$0xff]  ;;  %v1338_v4 = vld [vmem:[#allocation7 + $0x2798] sm:$0xff]  ;;  %v4430_v6 = vpack.c.bf16 %v1305_v50, %v1289_v0  ;;  %v1335_v10 = vld [vmem:[#allocation7 + $0x2780] sm:$0xff] }
  0xb5   :  { %v5971_v17 = vcombine.high %v5964_v12, %v5967_v13  ;;  %v4228_v32 = vpack.c.bf16 %v1240_v27, %v1224_v23  ;;  %v1321_v11 = vld [vmem:[#allocation7 + $0x2710] sm:$0xff]  ;;  %v1367_v23 = vld [vmem:[#allocation7 + $0x2880] sm:$0xff] }
  0xb6   :  { %4207 = vmatpush1.bf16.msra.mxu0 %v4206_v22  ;;  %v1193_v22 = vld [vmem:[#allocation7 + $0x2310] sm:$0xff]  ;;  %v1447_v50 = vld [vmem:[#allocation7 + $0x2b00] sm:$0xff] }
  0xb7   :  { %4399 = vmatpush1.bf16.msra.mxu1 %v4398_v24  ;;  %4209 = vmatprep.subr.bf16.mxu0 %v4208_v26  ;;  %v4416_v24 = vpack.c.bf16 %v1210_v15, %v1194_v14  ;;  %v1209_v26 = vld [vmem:[#allocation7 + $0x2390] sm:$0xff] }
  0xb8   :  { %4401 = vmatprep.subr.bf16.mxu1 %v4400_v30  ;;  %v4226_v30 = vpack.c.bf16 %v1207_v21, %v1191_v20  ;;  %v4418_v31 = vpack.c.bf16 %v1209_v26, %v1193_v22  ;;  %v1337_v15 = vld [vmem:[#allocation7 + $0x2790] sm:$0xff]  ;;  %v1370_v20 = vld [vmem:[#allocation7 + $0x2898] sm:$0xff]  ;;  %v4242_v21 = vpack.c.bf16 %v1335_v10, %v1319_v9  ;;  %v1351_v26 = vld [vmem:[#allocation7 + $0x2800] sm:$0xff] }
  0xb9   :  { %v4434_v22 = vpack.c.bf16 %v1337_v15, %v1321_v11  ;;  %v1353_v27 = vld [vmem:[#allocation7 + $0x2810] sm:$0xff]  ;;  %v1498_v9 = vld [vmem:[#allocation7 + $0x2c98] sm:$0xff]  ;;  %v1479_v15 = vld [vmem:[#allocation7 + $0x2c00] sm:$0xff] }
  0xba   :  { %4211 = vmatpush1.bf16.msra.mxu0 %v4210_v38  ;;  %v4420_v38 = vpack.c.bf16 %v1242_v29, %v1226_v28  ;;  %v1369_v29 = vld [vmem:[#allocation7 + $0x2890] sm:$0xff] }
  0xbb   :  { %4403 = vmatpush1.bf16.msra.mxu1 %v4402_v39  ;;  %4213 = vmatprep.subr.bf16.mxu0 %v4212_v36  ;;  %v1241_v39 = vld [vmem:[#allocation7 + $0x2490] sm:$0xff]  ;;  %v1256_v36 = vld [vmem:[#allocation7 + $0x2508] sm:$0xff] }
  0xbc   :  { %4405 = vmatprep.subr.bf16.mxu1 %v4404_v43  ;;  %v4230_v43 = vpack.c.bf16 %v1239_v34, %v1223_v33  ;;  %v4422_v44 = vpack.c.bf16 %v1241_v39, %v1225_v35  ;;  %v4232_v45 = vpack.c.bf16 %v1272_v37, %v1256_v36  ;;  %v1402_v33 = vld [vmem:[#allocation7 + $0x2998] sm:$0xff]  ;;  %v4246_v34 = vpack.c.bf16 %v1367_v23, %v1351_v26  ;;  %v1383_v39 = vld [vmem:[#allocation7 + $0x2900] sm:$0xff]  ;;  %v1385_v37 = vld [vmem:[#allocation7 + $0x2910] sm:$0xff] }
  0xbd   :  { %1895 = vmatmul.mubr.f32.vlgmr.msra.gmra.mrb[0].mxu0 %v5959_v47  ;;  %v4438_v35 = vpack.c.bf16 %v1369_v29, %v1353_v27  ;;  %v1399_v36 = vld [vmem:[#allocation7 + $0x2980] sm:$0xff]  ;;  %v1530_v26 = vld [vmem:[#allocation7 + $0x2d98] sm:$0xff] }
  0xbe   :  { %4215 = vmatpush1.bf16.msra.mxu0 %v4214_v52  ;;  %2108 = vmatmul.mubr.f32.vlgmr.msra.gmra.mrb[0].mxu1 %v5959_v47  ;;  %v4424_v52 = vpack.c.bf16 %v1274_v42, %v1258_v40  ;;  %v1401_v42 = vld [vmem:[#allocation7 + $0x2990] sm:$0xff]  ;;  %v4250_v48 = vpack.c.bf16 %v1399_v36, %v1383_v39  ;;  %v1511_v29 = vld [vmem:[#allocation7 + $0x2d00] sm:$0xff]  ;;  %v1562_v39 = vld [vmem:[#allocation7 + $0x2e98] sm:$0xff] }
  0xbf   :  { %4407 = vmatpush1.bf16.msra.mxu1 %v4406_v56  ;;  %4217 = vmatprep.subr.bf16.mxu0 %v4216_v58  ;;  %v1290_v56 = vld [vmem:[#allocation7 + $0x2618] sm:$0xff]  ;;  %v4442_v51 = vpack.c.bf16 %v1401_v42, %v1385_v37  ;;  %v1543_v42 = vld [vmem:[#allocation7 + $0x2e00] sm:$0xff] }
  0xc0   :  { %4409 = vmatprep.subr.bf16.mxu1 %v4408_v62  ;;  %1965 = vmatprep.mubr.f32.mxu0 %v5971_v17  ;;  %v1306_v58 = vld [vmem:[#allocation7 + $0x2698] sm:$0xff]  ;;  %v1287_v62 = vld [vmem:[#allocation7 + $0x2600] sm:$0xff] }
  0xc1   :  { %2178 = vmatprep.mubr.f32.mxu1 %v5971_v17  ;;  %v4238_v5 = vpack.c.bf16 %v1303_v63, %v1287_v62  ;;  %v1466_v62 = vld [vmem:[#allocation7 + $0x2b98] sm:$0xff]  ;;  %v4254_v63 = vpack.c.bf16 %v1431_v54, %v1415_v53 }
  0xc2   :  { %4219 = vmatpush1.bf16.msra.mxu0 %v4218_v49  ;;  %v4428_v49 = vpack.c.bf16 %v1306_v58, %v1290_v56  ;;  %v1433_v58 = vld [vmem:[#allocation7 + $0x2a90] sm:$0xff]  ;;  %v1594_v53 = vld [vmem:[#allocation7 + $0x2f98] sm:$0xff] }
  0xc3   :  { %4411 = vmatpush1.bf16.msra.mxu1 %v4410_v2  ;;  %4221 = vmatprep.subr.bf16.mxu0 %v4220_v3  ;;  %v1336_v2 = vld [vmem:[#allocation7 + $0x2788] sm:$0xff]  ;;  %v1322_v3 = vld [vmem:[#allocation7 + $0x2718] sm:$0xff]  ;;  %v4446_v0 = vpack.c.bf16 %v1433_v58, %v1417_v55  ;;  %v1575_v58 = vld [vmem:[#allocation7 + $0x2f00] sm:$0xff] }
  0xc4   :  { %4413 = vmatprep.subr.bf16.mxu1 %v4412_v8  ;;  %v4240_v8 = vpack.c.bf16 %v1336_v2, %v1320_v1  ;;  %v4432_v14 = vpack.c.bf16 %v1338_v4, %v1322_v3  ;;  %v1463_v1 = vld [vmem:[#allocation7 + $0x2b80] sm:$0xff]  ;;  %v1449_v2 = vld [vmem:[#allocation7 + $0x2b10] sm:$0xff] }
  0xc5   :  { %v1465_v4 = vld [vmem:[#allocation7 + $0x2b90] sm:$0xff]  ;;  %v4258_v10 = vpack.c.bf16 %v1463_v1, %v1447_v50  ;;  %v94_v50 = vld [vmem:[#allocation7 + $0xb8] sm:$0xff] }
  0xc6   :  { %4223 = vmatpush1.bf16.msra.mxu0 %v4222_v16  ;;  %v1352_v16 = vld [vmem:[#allocation7 + $0x2808] sm:$0xff]  ;;  %v4450_v11 = vpack.c.bf16 %v1465_v4, %v1449_v2  ;;  %v75_v4 = vld [vmem:[#allocation7 + $0x20] sm:$0xff] }
  0xc7   :  { %4415 = vmatpush1.bf16.msra.mxu1 %v4414_v18  ;;  %4225 = vmatprep.subr.bf16.mxu0 %v4224_v19  ;;  %v1368_v18 = vld [vmem:[#allocation7 + $0x2888] sm:$0xff]  ;;  %v1354_v19 = vld [vmem:[#allocation7 + $0x2818] sm:$0xff] }
  0xc8   :  { %4417 = vmatprep.subr.bf16.mxu1 %v4416_v24  ;;  %v4244_v24 = vpack.c.bf16 %v1368_v18, %v1352_v16  ;;  %v4436_v28 = vpack.c.bf16 %v1370_v20, %v1354_v19  ;;  %v1495_v16 = vld [vmem:[#allocation7 + $0x2c80] sm:$0xff]  ;;  %v1481_v18 = vld [vmem:[#allocation7 + $0x2c10] sm:$0xff] }
  0xc9   :  { %v1497_v20 = vld [vmem:[#allocation7 + $0x2c90] sm:$0xff]  ;;  %v4262_v23 = vpack.c.bf16 %v1495_v16, %v1479_v15  ;;  %v110_v15 = vld [vmem:[#allocation7 + $0x138] sm:$0xff] }
  0xca   :  { %4227 = vmatpush1.bf16.msra.mxu0 %v4226_v30  ;;  %v1384_v30 = vld [vmem:[#allocation7 + $0x2908] sm:$0xff]  ;;  %v4454_v27 = vpack.c.bf16 %v1497_v20, %v1481_v18  ;;  %v126_v16 = vld [vmem:[#allocation7 + $0x1b8] sm:$0xff] }
  0xcb   :  { %4419 = vmatpush1.bf16.msra.mxu1 %v4418_v31  ;;  %4229 = vmatprep.subr.bf16.mxu0 %v4228_v32  ;;  %v1400_v31 = vld [vmem:[#allocation7 + $0x2988] sm:$0xff]  ;;  %v1386_v32 = vld [vmem:[#allocation7 + $0x2918] sm:$0xff] }
  0xcc   :  { %4421 = vmatprep.subr.bf16.mxu1 %v4420_v38  ;;  %v4248_v38 = vpack.c.bf16 %v1400_v31, %v1384_v30  ;;  %v4440_v40 = vpack.c.bf16 %v1402_v33, %v1386_v32  ;;  %v1527_v30 = vld [vmem:[#allocation7 + $0x2d80] sm:$0xff]  ;;  %v1513_v31 = vld [vmem:[#allocation7 + $0x2d10] sm:$0xff] }
  0xcd   :  { %v1529_v33 = vld [vmem:[#allocation7 + $0x2d90] sm:$0xff]  ;;  %v4266_v36 = vpack.c.bf16 %v1527_v30, %v1511_v29 }
  0xce   :  { %4231 = vmatpush1.bf16.msra.mxu0 %v4230_v43  ;;  %v1416_v43 = vld [vmem:[#allocation7 + $0x2a08] sm:$0xff]  ;;  %v4458_v37 = vpack.c.bf16 %v1529_v33, %v1513_v31  ;;  %v155_v33 = vld [vmem:[#allocation7 + $0x2a0] sm:$0xff] }
  0xcf   :  { %4423 = vmatpush1.bf16.msra.mxu1 %v4422_v44  ;;  %4233 = vmatprep.subr.bf16.mxu0 %v4232_v45  ;;  %v1432_v44 = vld [vmem:[#allocation7 + $0x2a88] sm:$0xff]  ;;  %v1418_v45 = vld [vmem:[#allocation7 + $0x2a18] sm:$0xff] }
  0xd0   :  { %4425 = vmatprep.subr.bf16.mxu1 %v4424_v52  ;;  %v4252_v52 = vpack.c.bf16 %v1432_v44, %v1416_v43  ;;  %v4444_v56 = vpack.c.bf16 %v1434_v46, %v1418_v45  ;;  %v1559_v43 = vld [vmem:[#allocation7 + $0x2e80] sm:$0xff]  ;;  %v1545_v44 = vld [vmem:[#allocation7 + $0x2e10] sm:$0xff] }
  0xd1   :  { %v1561_v46 = vld [vmem:[#allocation7 + $0x2e90] sm:$0xff]  ;;  %v4270_v54 = vpack.c.bf16 %v1559_v43, %v1543_v42 }
  0xd2   :  { %4235 = vmatpush1.bf16.msra.mxu0 %v4234_v59  ;;  %v1448_v59 = vld [vmem:[#allocation7 + $0x2b08] sm:$0xff]  ;;  %v4462_v55 = vpack.c.bf16 %v1561_v46, %v1545_v44  ;;  %v187_v46 = vld [vmem:[#allocation7 + $0x3a0] sm:$0xff] }
  0xd3   :  { %4427 = vmatpush1.bf16.msra.mxu1 %v4426_v60  ;;  %4237 = vmatprep.subr.bf16.mxu0 %v4236_v61  ;;  %v1464_v60 = vld [vmem:[#allocation7 + $0x2b88] sm:$0xff]  ;;  %v1450_v61 = vld [vmem:[#allocation7 + $0x2b18] sm:$0xff] }
  0xd4   :  { %4429 = vmatprep.subr.bf16.mxu1 %v4428_v49  ;;  %v4256_v49 = vpack.c.bf16 %v1464_v60, %v1448_v59  ;;  %v4448_v3 = vpack.c.bf16 %v1466_v62, %v1450_v61  ;;  %v1591_v59 = vld [vmem:[#allocation7 + $0x2f80] sm:$0xff]  ;;  %v1577_v60 = vld [vmem:[#allocation7 + $0x2f10] sm:$0xff] }
  0xd5   :  { %v1593_v62 = vld [vmem:[#allocation7 + $0x2f90] sm:$0xff]  ;;  %v4274_v1 = vpack.c.bf16 %v1591_v59, %v1575_v58 }
  0xd6   :  { %4239 = vmatpush1.bf16.msra.mxu0 %v4238_v5  ;;  %v1480_v5 = vld [vmem:[#allocation7 + $0x2c08] sm:$0xff]  ;;  %v4466_v2 = vpack.c.bf16 %v1593_v62, %v1577_v60  ;;  %v219_v62 = vld [vmem:[#allocation7 + $0x4a0] sm:$0xff] }
  0xd7   :  { %4431 = vmatpush1.bf16.msra.mxu1 %v4430_v6  ;;  %4241 = vmatprep.subr.bf16.mxu0 %v4240_v8  ;;  %v1496_v6 = vld [vmem:[#allocation7 + $0x2c88] sm:$0xff]  ;;  %v1482_v8 = vld [vmem:[#allocation7 + $0x2c18] sm:$0xff] }
  0xd8   :  { %4433 = vmatprep.subr.bf16.mxu1 %v4432_v14  ;;  %v4260_v14 = vpack.c.bf16 %v1496_v6, %v1480_v5  ;;  %v4452_v19 = vpack.c.bf16 %v1498_v9, %v1482_v8  ;;  %v91_v5 = vld [vmem:[#allocation7 + $0xa0] sm:$0xff]  ;;  %v77_v6 = vld [vmem:[#allocation7 + $0x30] sm:$0xff] }
  0xd9   :  { %v93_v9 = vld [vmem:[#allocation7 + $0xb0] sm:$0xff]  ;;  %v4470_v18 = vpack.c.bf16 %v91_v5, %v75_v4 }
  0xda   :  { %4243 = vmatpush1.bf16.msra.mxu0 %v4242_v21  ;;  %v1512_v21 = vld [vmem:[#allocation7 + $0x2d08] sm:$0xff] }
  0xdb   :  { %4435 = vmatpush1.bf16.msra.mxu1 %v4434_v22  ;;  %4245 = vmatprep.subr.bf16.mxu0 %v4244_v24  ;;  %v1528_v22 = vld [vmem:[#allocation7 + $0x2d88] sm:$0xff]  ;;  %v1514_v24 = vld [vmem:[#allocation7 + $0x2d18] sm:$0xff] }
  0xdc   :  { %4437 = vmatprep.subr.bf16.mxu1 %v4436_v28  ;;  %v4264_v28 = vpack.c.bf16 %v1528_v22, %v1512_v21  ;;  %v4456_v32 = vpack.c.bf16 %v1530_v26, %v1514_v24  ;;  %v107_v21 = vld [vmem:[#allocation7 + $0x120] sm:$0xff]  ;;  %v109_v24 = vld [vmem:[#allocation7 + $0x130] sm:$0xff]  ;;  %v4664_v26 = vpack.c.bf16 %v126_v16, %v110_v15  ;;  %v268_v16 = vld [vmem:[#allocation7 + $0x628] sm:$0xff] }
  0xdd   :  { %v123_v22 = vld [vmem:[#allocation7 + $0x1a0] sm:$0xff]  ;;  %v253_v15 = vld [vmem:[#allocation7 + $0x5b0] sm:$0xff] }
  0xde   :  { %4247 = vmatpush1.bf16.msra.mxu0 %v4246_v34  ;;  %v1544_v34 = vld [vmem:[#allocation7 + $0x2e08] sm:$0xff]  ;;  %v4474_v29 = vpack.c.bf16 %v123_v22, %v107_v21 }
  0xdf   :  { %4439 = vmatpush1.bf16.msra.mxu1 %v4438_v35  ;;  %4249 = vmatprep.subr.bf16.mxu0 %v4248_v38  ;;  %v1560_v35 = vld [vmem:[#allocation7 + $0x2e88] sm:$0xff]  ;;  %v1546_v38 = vld [vmem:[#allocation7 + $0x2e18] sm:$0xff] }
  0xe0   :  { %4441 = vmatprep.subr.bf16.mxu1 %v4440_v40  ;;  %v4268_v40 = vpack.c.bf16 %v1560_v35, %v1544_v34  ;;  %v4460_v45 = vpack.c.bf16 %v1562_v39, %v1546_v38  ;;  %v141_v34 = vld [vmem:[#allocation7 + $0x230] sm:$0xff]  ;;  %v172_v39 = vld [vmem:[#allocation7 + $0x328] sm:$0xff] }
  0xe1   :  { %v157_v38 = vld [vmem:[#allocation7 + $0x2b0] sm:$0xff] }
  0xe2   :  { %4251 = vmatpush1.bf16.msra.mxu0 %v4250_v48  ;;  %v1576_v48 = vld [vmem:[#allocation7 + $0x2f08] sm:$0xff]  ;;  %v4670_v43 = vpack.c.bf16 %v157_v38, %v141_v34  ;;  %v315_v38 = vld [vmem:[#allocation7 + $0x7a0] sm:$0xff] }
  0xe3   :  { %4443 = vmatpush1.bf16.msra.mxu1 %v4442_v51  ;;  %4253 = vmatprep.subr.bf16.mxu0 %v4252_v52  ;;  %v1592_v51 = vld [vmem:[#allocation7 + $0x2f88] sm:$0xff]  ;;  %v1578_v52 = vld [vmem:[#allocation7 + $0x2f18] sm:$0xff] }
  0xe4   :  { %4445 = vmatprep.subr.bf16.mxu1 %v4444_v56  ;;  %v4272_v56 = vpack.c.bf16 %v1592_v51, %v1576_v48  ;;  %v4464_v61 = vpack.c.bf16 %v1594_v53, %v1578_v52  ;;  %v173_v48 = vld [vmem:[#allocation7 + $0x330] sm:$0xff]  ;;  %v204_v53 = vld [vmem:[#allocation7 + $0x428] sm:$0xff] }
  0xe5   :  { %v189_v52 = vld [vmem:[#allocation7 + $0x3b0] sm:$0xff] }
  0xe6   :  { %4255 = vmatpush1.bf16.msra.mxu0 %v4254_v63  ;;  %v76_v63 = vld [vmem:[#allocation7 + $0x28] sm:$0xff]  ;;  %v4674_v59 = vpack.c.bf16 %v189_v52, %v173_v48  ;;  %v347_v52 = vld [vmem:[#allocation7 + $0x8a0] sm:$0xff] }
  0xe7   :  { %4447 = vmatpush1.bf16.msra.mxu1 %v4446_v0  ;;  %4257 = vmatprep.subr.bf16.mxu0 %v4256_v49  ;;  %v92_v0 = vld [vmem:[#allocation7 + $0xa8] sm:$0xff]  ;;  %v78_v49 = vld [vmem:[#allocation7 + $0x38] sm:$0xff] }
  0xe8   :  { %4449 = vmatprep.subr.bf16.mxu1 %v4448_v3  ;;  %v4468_v3 = vpack.c.bf16 %v92_v0, %v76_v63  ;;  %v4660_v8 = vpack.c.bf16 %v94_v50, %v78_v49  ;;  %v205_v63 = vld [vmem:[#allocation7 + $0x430] sm:$0xff]  ;;  %v236_v50 = vld [vmem:[#allocation7 + $0x528] sm:$0xff] }
  0xe9   :  { %v221_v49 = vld [vmem:[#allocation7 + $0x4b0] sm:$0xff] }
  0xea   :  { %4259 = vmatpush1.bf16.msra.mxu0 %v4258_v10  ;;  %v108_v10 = vld [vmem:[#allocation7 + $0x128] sm:$0xff]  ;;  %v4678_v5 = vpack.c.bf16 %v221_v49, %v205_v63  ;;  %v379_v49 = vld [vmem:[#allocation7 + $0x9a0] sm:$0xff] }
  0xeb   :  { %4451 = vmatpush1.bf16.msra.mxu1 %v4450_v11  ;;  %4261 = vmatprep.subr.bf16.mxu0 %v4260_v14  ;;  %v124_v11 = vld [vmem:[#allocation7 + $0x1a8] sm:$0xff]  ;;  %v5977_v14 = vcombine.low %v5964_v12, %v5967_v13  ;;  %v142_v12 = vld [vmem:[#allocation7 + $0x238] sm:$0xff] }
  0xec   :  { %4453 = vmatprep.subr.bf16.mxu1 %v4452_v19  ;;  %v4662_v19 = vpack.c.bf16 %v93_v9, %v77_v6  ;;  %v4472_v20 = vpack.c.bf16 %v124_v11, %v108_v10  ;;  %v158_v13 = vld [vmem:[#allocation7 + $0x2b8] sm:$0xff]  ;;  %v251_v9 = vld [vmem:[#allocation7 + $0x5a0] sm:$0xff]  ;;  %v237_v10 = vld [vmem:[#allocation7 + $0x530] sm:$0xff] }
  0xed   :  { %v4668_v35 = vpack.c.bf16 %v158_v13, %v142_v12  ;;  %v4682_v22 = vpack.c.bf16 %v253_v15, %v237_v10  ;;  %v285_v12 = vld [vmem:[#allocation7 + $0x6b0] sm:$0xff]  ;;  %v300_v13 = vld [vmem:[#allocation7 + $0x728] sm:$0xff]  ;;  %v411_v15 = vld [vmem:[#allocation7 + $0xaa0] sm:$0xff] }
  0xee   :  { %4263 = vmatpush1.bf16.msra.mxu0 %v4262_v23  ;;  %v125_v23 = vld [vmem:[#allocation7 + $0x1b0] sm:$0xff] }
  0xef   :  { %4455 = vmatpush1.bf16.msra.mxu1 %v4454_v27  ;;  %4265 = vmatprep.subr.bf16.mxu0 %v4264_v28  ;;  %v140_v27 = vld [vmem:[#allocation7 + $0x228] sm:$0xff]  ;;  %v4666_v30 = vpack.c.bf16 %v125_v23, %v109_v24  ;;  %v283_v23 = vld [vmem:[#allocation7 + $0x6a0] sm:$0xff] }
  0xf0   :  { %4457 = vmatprep.subr.bf16.mxu1 %v4456_v32  ;;  %v156_v28 = vld [vmem:[#allocation7 + $0x2a8] sm:$0xff]  ;;  %v139_v32 = vld [vmem:[#allocation7 + $0x220] sm:$0xff] }
  0xf1   :  { %v4476_v31 = vpack.c.bf16 %v156_v28, %v140_v27  ;;  %v4478_v42 = vpack.c.bf16 %v155_v33, %v139_v32  ;;  %v269_v27 = vld [vmem:[#allocation7 + $0x630] sm:$0xff] }
  0xf2   :  { %4267 = vmatpush1.bf16.msra.mxu0 %v4266_v36  ;;  %v188_v36 = vld [vmem:[#allocation7 + $0x3a8] sm:$0xff]  ;;  %v4686_v33 = vpack.c.bf16 %v285_v12, %v269_v27  ;;  %v443_v12 = vld [vmem:[#allocation7 + $0xba0] sm:$0xff] }
  0xf3   :  { %4459 = vmatpush1.bf16.msra.mxu1 %v4458_v37  ;;  %4269 = vmatprep.subr.bf16.mxu0 %v4268_v40  ;;  %v174_v37 = vld [vmem:[#allocation7 + $0x338] sm:$0xff]  ;;  %v4480_v44 = vpack.c.bf16 %v188_v36, %v172_v39  ;;  %v301_v39 = vld [vmem:[#allocation7 + $0x730] sm:$0xff] }
  0xf4   :  { %4461 = vmatprep.subr.bf16.mxu1 %v4460_v45  ;;  %v190_v40 = vld [vmem:[#allocation7 + $0x3b8] sm:$0xff]  ;;  %v171_v45 = vld [vmem:[#allocation7 + $0x320] sm:$0xff] }
  0xf5   :  { %v4672_v51 = vpack.c.bf16 %v190_v40, %v174_v37  ;;  %v4482_v58 = vpack.c.bf16 %v187_v46, %v171_v45  ;;  %v317_v37 = vld [vmem:[#allocation7 + $0x7b0] sm:$0xff]  ;;  %v332_v40 = vld [vmem:[#allocation7 + $0x828] sm:$0xff] }
  0xf6   :  { %4271 = vmatpush1.bf16.msra.mxu0 %v4270_v54  ;;  %v220_v54 = vld [vmem:[#allocation7 + $0x4a8] sm:$0xff]  ;;  %v4690_v46 = vpack.c.bf16 %v317_v37, %v301_v39  ;;  %v475_v37 = vld [vmem:[#allocation7 + $0xca0] sm:$0xff] }
  0xf7   :  { %4463 = vmatpush1.bf16.msra.mxu1 %v4462_v55  ;;  %4273 = vmatprep.subr.bf16.mxu0 %v4272_v56  ;;  %v206_v55 = vld [vmem:[#allocation7 + $0x438] sm:$0xff]  ;;  %v4484_v60 = vpack.c.bf16 %v220_v54, %v204_v53  ;;  %v333_v53 = vld [vmem:[#allocation7 + $0x830] sm:$0xff] }
  0xf8   :  { %4465 = vmatprep.subr.bf16.mxu1 %v4464_v61  ;;  %v222_v56 = vld [vmem:[#allocation7 + $0x4b8] sm:$0xff]  ;;  %v203_v61 = vld [vmem:[#allocation7 + $0x420] sm:$0xff] }
  0xf9   :  { %v4676_v0 = vpack.c.bf16 %v222_v56, %v206_v55  ;;  %v4486_v4 = vpack.c.bf16 %v219_v62, %v203_v61  ;;  %v349_v55 = vld [vmem:[#allocation7 + $0x8b0] sm:$0xff]  ;;  %v364_v56 = vld [vmem:[#allocation7 + $0x928] sm:$0xff] }
  0xfa   :  { %4275 = vmatpush1.bf16.msra.mxu0 %v4274_v1  ;;  %v252_v1 = vld [vmem:[#allocation7 + $0x5a8] sm:$0xff]  ;;  %v4694_v62 = vpack.c.bf16 %v349_v55, %v333_v53  ;;  %v507_v55 = vld [vmem:[#allocation7 + $0xda0] sm:$0xff] }
  0xfb   :  { %4467 = vmatpush1.bf16.msra.mxu1 %v4466_v2  ;;  %4469 = vmatprep.subr.bf16.mxu0 %v4468_v3  ;;  %v238_v2 = vld [vmem:[#allocation7 + $0x538] sm:$0xff]  ;;  %v4488_v6 = vpack.c.bf16 %v252_v1, %v236_v50  ;;  %v365_v50 = vld [vmem:[#allocation7 + $0x930] sm:$0xff] }
  0xfc   :  { %4661 = vmatprep.subr.bf16.mxu1 %v4660_v8  ;;  %v254_v3 = vld [vmem:[#allocation7 + $0x5b8] sm:$0xff]  ;;  %v235_v8 = vld [vmem:[#allocation7 + $0x520] sm:$0xff] }
  0xfd   :  { %1966 = vmatmul.mubr.f32.vlgmr.msra.gmra.mrb[0].mxu0 %v5977_v14  ;;  %v4680_v11 = vpack.c.bf16 %v254_v3, %v238_v2  ;;  %v4490_v21 = vpack.c.bf16 %v251_v9, %v235_v8  ;;  %v381_v2 = vld [vmem:[#allocation7 + $0x9b0] sm:$0xff]  ;;  %v396_v3 = vld [vmem:[#allocation7 + $0xa28] sm:$0xff] }
  0xfe   :  { %2179 = vmatmul.mubr.f32.vlgmr.msra.gmra.mrb[0].mxu1 %v5977_v14  ;;  %4471 = vmatpush1.bf16.msra.mxu0 %v4470_v18  ;;  %v284_v18 = vld [vmem:[#allocation7 + $0x6a8] sm:$0xff]  ;;  %v4698_v9 = vpack.c.bf16 %v381_v2, %v365_v50  ;;  %v539_v2 = vld [vmem:[#allocation7 + $0xea0] sm:$0xff] }
  0xff   :  { %4663 = vmatpush1.bf16.msra.mxu1 %v4662_v19  ;;  %4473 = vmatprep.subr.bf16.mxu0 %v4472_v20  ;;  %v270_v19 = vld [vmem:[#allocation7 + $0x638] sm:$0xff]  ;;  %v4492_v24 = vpack.c.bf16 %v284_v18, %v268_v16  ;;  %v397_v16 = vld [vmem:[#allocation7 + $0xa30] sm:$0xff] }
 0x100   :  { %4665 = vmatprep.subr.bf16.mxu1 %v4664_v26  ;;  %2249 = vmatprep.mubr.f32.mxu0 %v5935_v41  ;;  %v286_v20 = vld [vmem:[#allocation7 + $0x6b8] sm:$0xff]  ;;  %v267_v26 = vld [vmem:[#allocation7 + $0x620] sm:$0xff] }
 0x101   :  { %2462 = vmatprep.mubr.f32.mxu1 %v5935_v41  ;;  %v4684_v28 = vpack.c.bf16 %v286_v20, %v270_v19  ;;  %v4494_v32 = vpack.c.bf16 %v283_v23, %v267_v26  ;;  %v413_v19 = vld [vmem:[#allocation7 + $0xab0] sm:$0xff]  ;;  %v428_v20 = vld [vmem:[#allocation7 + $0xb28] sm:$0xff] }
 0x102   :  { %4475 = vmatpush1.bf16.msra.mxu0 %v4474_v29  ;;  %v316_v29 = vld [vmem:[#allocation7 + $0x7a8] sm:$0xff]  ;;  %v4702_v23 = vpack.c.bf16 %v413_v19, %v397_v16  ;;  %v571_v19 = vld [vmem:[#allocation7 + $0xfa0] sm:$0xff] }
 0x103   :  { %4667 = vmatpush1.bf16.msra.mxu1 %v4666_v30  ;;  %4477 = vmatprep.subr.bf16.mxu0 %v4476_v31  ;;  %v302_v30 = vld [vmem:[#allocation7 + $0x738] sm:$0xff]  ;;  %v4496_v34 = vpack.c.bf16 %v316_v29, %v300_v13  ;;  %v429_v13 = vld [vmem:[#allocation7 + $0xb30] sm:$0xff] }
 0x104   :  { %4669 = vmatprep.subr.bf16.mxu1 %v4668_v35  ;;  %v318_v31 = vld [vmem:[#allocation7 + $0x7b8] sm:$0xff]  ;;  %v299_v35 = vld [vmem:[#allocation7 + $0x720] sm:$0xff] }
 0x105   :  { %v4688_v36 = vpack.c.bf16 %v318_v31, %v302_v30  ;;  %v4498_v45 = vpack.c.bf16 %v315_v38, %v299_v35  ;;  %v445_v30 = vld [vmem:[#allocation7 + $0xbb0] sm:$0xff]  ;;  %v460_v31 = vld [vmem:[#allocation7 + $0xc28] sm:$0xff] }
 0x106   :  { %4479 = vmatpush1.bf16.msra.mxu0 %v4478_v42  ;;  %v348_v42 = vld [vmem:[#allocation7 + $0x8a8] sm:$0xff]  ;;  %v4706_v38 = vpack.c.bf16 %v445_v30, %v429_v13  ;;  %v603_v30 = vld [vmem:[#allocation7 + $0x10a0] sm:$0xff] }
 0x107   :  { %4671 = vmatpush1.bf16.msra.mxu1 %v4670_v43  ;;  %4481 = vmatprep.subr.bf16.mxu0 %v4480_v44  ;;  %v334_v43 = vld [vmem:[#allocation7 + $0x838] sm:$0xff]  ;;  %v4500_v48 = vpack.c.bf16 %v348_v42, %v332_v40  ;;  %v461_v40 = vld [vmem:[#allocation7 + $0xc30] sm:$0xff] }
 0x108   :  { %4673 = vmatprep.subr.bf16.mxu1 %v4672_v51  ;;  %v350_v44 = vld [vmem:[#allocation7 + $0x8b8] sm:$0xff]  ;;  %v331_v51 = vld [vmem:[#allocation7 + $0x820] sm:$0xff] }
 0x109   :  { %v4692_v54 = vpack.c.bf16 %v350_v44, %v334_v43  ;;  %v4502_v61 = vpack.c.bf16 %v347_v52, %v331_v51  ;;  %v477_v43 = vld [vmem:[#allocation7 + $0xcb0] sm:$0xff]  ;;  %v492_v44 = vld [vmem:[#allocation7 + $0xd28] sm:$0xff] }
 0x10a   :  { %4483 = vmatpush1.bf16.msra.mxu0 %v4482_v58  ;;  %v380_v58 = vld [vmem:[#allocation7 + $0x9a8] sm:$0xff]  ;;  %v4710_v52 = vpack.c.bf16 %v477_v43, %v461_v40  ;;  %v635_v43 = vld [vmem:[#allocation7 + $0x11a0] sm:$0xff] }
 0x10b   :  { %4675 = vmatpush1.bf16.msra.mxu1 %v4674_v59  ;;  %4485 = vmatprep.subr.bf16.mxu0 %v4484_v60  ;;  %v366_v59 = vld [vmem:[#allocation7 + $0x938] sm:$0xff]  ;;  %v4504_v63 = vpack.c.bf16 %v380_v58, %v364_v56  ;;  %v493_v56 = vld [vmem:[#allocation7 + $0xd30] sm:$0xff] }
 0x10c   :  { %4677 = vmatprep.subr.bf16.mxu1 %v4676_v0  ;;  %v382_v60 = vld [vmem:[#allocation7 + $0x9b8] sm:$0xff]  ;;  %v363_v0 = vld [vmem:[#allocation7 + $0x920] sm:$0xff] }
 0x10d   :  { %v4696_v1 = vpack.c.bf16 %v382_v60, %v366_v59  ;;  %v4506_v8 = vpack.c.bf16 %v379_v49, %v363_v0  ;;  %v509_v59 = vld [vmem:[#allocation7 + $0xdb0] sm:$0xff]  ;;  %v524_v60 = vld [vmem:[#allocation7 + $0xe28] sm:$0xff] }
 0x10e   :  { %4487 = vmatpush1.bf16.msra.mxu0 %v4486_v4  ;;  %v412_v4 = vld [vmem:[#allocation7 + $0xaa8] sm:$0xff]  ;;  %v4714_v49 = vpack.c.bf16 %v509_v59, %v493_v56  ;;  %v667_v59 = vld [vmem:[#allocation7 + $0x12a0] sm:$0xff] }
 0x10f   :  { %4679 = vmatpush1.bf16.msra.mxu1 %v4678_v5  ;;  %4489 = vmatprep.subr.bf16.mxu0 %v4488_v6  ;;  %v398_v5 = vld [vmem:[#allocation7 + $0xa38] sm:$0xff]  ;;  %v4508_v10 = vpack.c.bf16 %v412_v4, %v396_v3  ;;  %v525_v3 = vld [vmem:[#allocation7 + $0xe30] sm:$0xff] }
 0x110   :  { %4681 = vmatprep.subr.bf16.mxu1 %v4680_v11  ;;  %v414_v6 = vld [vmem:[#allocation7 + $0xab8] sm:$0xff]  ;;  %v395_v11 = vld [vmem:[#allocation7 + $0xa20] sm:$0xff] }
 0x111   :  { %v4700_v18 = vpack.c.bf16 %v414_v6, %v398_v5  ;;  %v4510_v26 = vpack.c.bf16 %v411_v15, %v395_v11  ;;  %v541_v5 = vld [vmem:[#allocation7 + $0xeb0] sm:$0xff]  ;;  %v556_v6 = vld [vmem:[#allocation7 + $0xf28] sm:$0xff] }
 0x112   :  { %4491 = vmatpush1.bf16.msra.mxu0 %v4490_v21  ;;  %v444_v21 = vld [vmem:[#allocation7 + $0xba8] sm:$0xff]  ;;  %v4718_v15 = vpack.c.bf16 %v541_v5, %v525_v3  ;;  %v699_v5 = vld [vmem:[#allocation7 + $0x13a0] sm:$0xff] }
 0x113   :  { %4683 = vmatpush1.bf16.msra.mxu1 %v4682_v22  ;;  %4493 = vmatprep.subr.bf16.mxu0 %v4492_v24  ;;  %v430_v22 = vld [vmem:[#allocation7 + $0xb38] sm:$0xff]  ;;  %v4512_v27 = vpack.c.bf16 %v444_v21, %v428_v20  ;;  %v557_v20 = vld [vmem:[#allocation7 + $0xf30] sm:$0xff] }
 0x114   :  { %4685 = vmatprep.subr.bf16.mxu1 %v4684_v28  ;;  %v446_v24 = vld [vmem:[#allocation7 + $0xbb8] sm:$0xff]  ;;  %v427_v28 = vld [vmem:[#allocation7 + $0xb20] sm:$0xff] }
 0x115   :  { %v4704_v29 = vpack.c.bf16 %v446_v24, %v430_v22  ;;  %v4514_v35 = vpack.c.bf16 %v443_v12, %v427_v28  ;;  %v573_v22 = vld [vmem:[#allocation7 + $0xfb0] sm:$0xff]  ;;  %v588_v24 = vld [vmem:[#allocation7 + $0x1028] sm:$0xff] }
 0x116   :  { %4495 = vmatpush1.bf16.msra.mxu0 %v4494_v32  ;;  %v476_v32 = vld [vmem:[#allocation7 + $0xca8] sm:$0xff]  ;;  %v4722_v12 = vpack.c.bf16 %v573_v22, %v557_v20  ;;  %v731_v22 = vld [vmem:[#allocation7 + $0x14a0] sm:$0xff] }
 0x117   :  { %4687 = vmatpush1.bf16.msra.mxu1 %v4686_v33  ;;  %4497 = vmatprep.subr.bf16.mxu0 %v4496_v34  ;;  %v462_v33 = vld [vmem:[#allocation7 + $0xc38] sm:$0xff]  ;;  %v4516_v39 = vpack.c.bf16 %v476_v32, %v460_v31  ;;  %v589_v31 = vld [vmem:[#allocation7 + $0x1030] sm:$0xff] }
 0x118   :  { %4689 = vmatprep.subr.bf16.mxu1 %v4688_v36  ;;  %v478_v34 = vld [vmem:[#allocation7 + $0xcb8] sm:$0xff]  ;;  %v459_v36 = vld [vmem:[#allocation7 + $0xc20] sm:$0xff] }
 0x119   :  { %v4708_v42 = vpack.c.bf16 %v478_v34, %v462_v33  ;;  %v4518_v51 = vpack.c.bf16 %v475_v37, %v459_v36  ;;  %v605_v33 = vld [vmem:[#allocation7 + $0x10b0] sm:$0xff]  ;;  %v620_v34 = vld [vmem:[#allocation7 + $0x1128] sm:$0xff] }
 0x11a   :  { %4499 = vmatpush1.bf16.msra.mxu0 %v4498_v45  ;;  %v508_v45 = vld [vmem:[#allocation7 + $0xda8] sm:$0xff]  ;;  %v4726_v37 = vpack.c.bf16 %v605_v33, %v589_v31  ;;  %v763_v33 = vld [vmem:[#allocation7 + $0x15a0] sm:$0xff] }
 0x11b   :  { %4691 = vmatpush1.bf16.msra.mxu1 %v4690_v46  ;;  %4501 = vmatprep.subr.bf16.mxu0 %v4500_v48  ;;  %v494_v46 = vld [vmem:[#allocation7 + $0xd38] sm:$0xff]  ;;  %v4520_v53 = vpack.c.bf16 %v508_v45, %v492_v44  ;;  %v621_v44 = vld [vmem:[#allocation7 + $0x1130] sm:$0xff] }
 0x11c   :  { %4693 = vmatprep.subr.bf16.mxu1 %v4692_v54  ;;  %v510_v48 = vld [vmem:[#allocation7 + $0xdb8] sm:$0xff]  ;;  %v491_v54 = vld [vmem:[#allocation7 + $0xd20] sm:$0xff] }
 0x11d   :  { %v4712_v58 = vpack.c.bf16 %v510_v48, %v494_v46  ;;  %v4522_v0 = vpack.c.bf16 %v507_v55, %v491_v54  ;;  %v637_v46 = vld [vmem:[#allocation7 + $0x11b0] sm:$0xff]  ;;  %v652_v48 = vld [vmem:[#allocation7 + $0x1228] sm:$0xff] }
 0x11e   :  { %4503 = vmatpush1.bf16.msra.mxu0 %v4502_v61  ;;  %v540_v61 = vld [vmem:[#allocation7 + $0xea8] sm:$0xff]  ;;  %v4730_v55 = vpack.c.bf16 %v637_v46, %v621_v44  ;;  %v795_v46 = vld [vmem:[#allocation7 + $0x16a0] sm:$0xff] }
 0x11f   :  { %4695 = vmatpush1.bf16.msra.mxu1 %v4694_v62  ;;  %4505 = vmatprep.subr.bf16.mxu0 %v4504_v63  ;;  %v526_v62 = vld [vmem:[#allocation7 + $0xe38] sm:$0xff]  ;;  %v4524_v50 = vpack.c.bf16 %v540_v61, %v524_v60  ;;  %v653_v60 = vld [vmem:[#allocation7 + $0x1230] sm:$0xff] }
 0x120   :  { %4697 = vmatprep.subr.bf16.mxu1 %v4696_v1  ;;  %v542_v63 = vld [vmem:[#allocation7 + $0xeb8] sm:$0xff]  ;;  %v523_v1 = vld [vmem:[#allocation7 + $0xe20] sm:$0xff] }
 0x121   :  { %v4716_v4 = vpack.c.bf16 %v542_v63, %v526_v62  ;;  %v4526_v11 = vpack.c.bf16 %v539_v2, %v523_v1  ;;  %v669_v62 = vld [vmem:[#allocation7 + $0x12b0] sm:$0xff]  ;;  %v684_v63 = vld [vmem:[#allocation7 + $0x1328] sm:$0xff] }
 0x122   :  { %4507 = vmatpush1.bf16.msra.mxu0 %v4506_v8  ;;  %v572_v8 = vld [vmem:[#allocation7 + $0xfa8] sm:$0xff]  ;;  %v4734_v2 = vpack.c.bf16 %v669_v62, %v653_v60  ;;  %v827_v62 = vld [vmem:[#allocation7 + $0x17a0] sm:$0xff] }
 0x123   :  { %4699 = vmatpush1.bf16.msra.mxu1 %v4698_v9  ;;  %4509 = vmatprep.subr.bf16.mxu0 %v4508_v10  ;;  %v558_v9 = vld [vmem:[#allocation7 + $0xf38] sm:$0xff]  ;;  %v4528_v16 = vpack.c.bf16 %v572_v8, %v556_v6  ;;  %v685_v6 = vld [vmem:[#allocation7 + $0x1330] sm:$0xff] }
 0x124   :  { %4701 = vmatprep.subr.bf16.mxu1 %v4700_v18  ;;  %v574_v10 = vld [vmem:[#allocation7 + $0xfb8] sm:$0xff]  ;;  %v555_v18 = vld [vmem:[#allocation7 + $0xf20] sm:$0xff] }
 0x125   :  { %v4720_v21 = vpack.c.bf16 %v574_v10, %v558_v9  ;;  %v4530_v28 = vpack.c.bf16 %v571_v19, %v555_v18  ;;  %v701_v9 = vld [vmem:[#allocation7 + $0x13b0] sm:$0xff]  ;;  %v716_v10 = vld [vmem:[#allocation7 + $0x1428] sm:$0xff] }
 0x126   :  { %4511 = vmatpush1.bf16.msra.mxu0 %v4510_v26  ;;  %v604_v26 = vld [vmem:[#allocation7 + $0x10a8] sm:$0xff]  ;;  %v4738_v19 = vpack.c.bf16 %v701_v9, %v685_v6  ;;  %v859_v9 = vld [vmem:[#allocation7 + $0x18a0] sm:$0xff] }
 0x127   :  { %4703 = vmatpush1.bf16.msra.mxu1 %v4702_v23  ;;  %4513 = vmatprep.subr.bf16.mxu0 %v4512_v27  ;;  %v590_v23 = vld [vmem:[#allocation7 + $0x1038] sm:$0xff]  ;;  %v4532_v13 = vpack.c.bf16 %v604_v26, %v588_v24  ;;  %v717_v24 = vld [vmem:[#allocation7 + $0x1430] sm:$0xff] }
 0x128   :  { %4705 = vmatprep.subr.bf16.mxu1 %v4704_v29  ;;  %v606_v27 = vld [vmem:[#allocation7 + $0x10b8] sm:$0xff]  ;;  %v587_v29 = vld [vmem:[#allocation7 + $0x1020] sm:$0xff] }
 0x129   :  { %v4724_v32 = vpack.c.bf16 %v606_v27, %v590_v23  ;;  %v4534_v36 = vpack.c.bf16 %v603_v30, %v587_v29  ;;  %v733_v23 = vld [vmem:[#allocation7 + $0x14b0] sm:$0xff]  ;;  %v748_v27 = vld [vmem:[#allocation7 + $0x1528] sm:$0xff] }
 0x12a   :  { %4515 = vmatpush1.bf16.msra.mxu0 %v4514_v35  ;;  %v636_v35 = vld [vmem:[#allocation7 + $0x11a8] sm:$0xff]  ;;  %v4742_v30 = vpack.c.bf16 %v733_v23, %v717_v24  ;;  %v891_v23 = vld [vmem:[#allocation7 + $0x19a0] sm:$0xff] }
 0x12b   :  { %4707 = vmatpush1.bf16.msra.mxu1 %v4706_v38  ;;  %4517 = vmatprep.subr.bf16.mxu0 %v4516_v39  ;;  %v622_v38 = vld [vmem:[#allocation7 + $0x1138] sm:$0xff]  ;;  %v4536_v40 = vpack.c.bf16 %v636_v35, %v620_v34  ;;  %v749_v34 = vld [vmem:[#allocation7 + $0x1530] sm:$0xff] }
 0x12c   :  { %4709 = vmatprep.subr.bf16.mxu1 %v4708_v42  ;;  %v638_v39 = vld [vmem:[#allocation7 + $0x11b8] sm:$0xff]  ;;  %v619_v42 = vld [vmem:[#allocation7 + $0x1120] sm:$0xff] }
 0x12d   :  { %v4728_v45 = vpack.c.bf16 %v638_v39, %v622_v38  ;;  %v4538_v54 = vpack.c.bf16 %v635_v43, %v619_v42  ;;  %v765_v38 = vld [vmem:[#allocation7 + $0x15b0] sm:$0xff]  ;;  %v780_v39 = vld [vmem:[#allocation7 + $0x1628] sm:$0xff] }
 0x12e   :  { %4519 = vmatpush1.bf16.msra.mxu0 %v4518_v51  ;;  %v668_v51 = vld [vmem:[#allocation7 + $0x12a8] sm:$0xff]  ;;  %v4746_v43 = vpack.c.bf16 %v765_v38, %v749_v34  ;;  %v923_v38 = vld [vmem:[#allocation7 + $0x1aa0] sm:$0xff] }
 0x12f   :  { %4711 = vmatpush1.bf16.msra.mxu1 %v4710_v52  ;;  %4521 = vmatprep.subr.bf16.mxu0 %v4520_v53  ;;  %v654_v52 = vld [vmem:[#allocation7 + $0x1238] sm:$0xff]  ;;  %v4540_v56 = vpack.c.bf16 %v668_v51, %v652_v48  ;;  %v781_v48 = vld [vmem:[#allocation7 + $0x1630] sm:$0xff] }
 0x130   :  { %4713 = vmatprep.subr.bf16.mxu1 %v4712_v58  ;;  %v670_v53 = vld [vmem:[#allocation7 + $0x12b8] sm:$0xff]  ;;  %v651_v58 = vld [vmem:[#allocation7 + $0x1220] sm:$0xff] }
 0x131   :  { %v4732_v61 = vpack.c.bf16 %v670_v53, %v654_v52  ;;  %v4542_v1 = vpack.c.bf16 %v667_v59, %v651_v58  ;;  %v797_v52 = vld [vmem:[#allocation7 + $0x16b0] sm:$0xff]  ;;  %v812_v53 = vld [vmem:[#allocation7 + $0x1728] sm:$0xff] }
 0x132   :  { %4523 = vmatpush1.bf16.msra.mxu0 %v4522_v0  ;;  %v700_v0 = vld [vmem:[#allocation7 + $0x13a8] sm:$0xff]  ;;  %v4750_v59 = vpack.c.bf16 %v797_v52, %v781_v48  ;;  %v955_v52 = vld [vmem:[#allocation7 + $0x1ba0] sm:$0xff] }
 0x133   :  { %4715 = vmatpush1.bf16.msra.mxu1 %v4714_v49  ;;  %4525 = vmatprep.subr.bf16.mxu0 %v4524_v50  ;;  %v686_v49 = vld [vmem:[#allocation7 + $0x1338] sm:$0xff]  ;;  %v4544_v3 = vpack.c.bf16 %v700_v0, %v684_v63  ;;  %v813_v63 = vld [vmem:[#allocation7 + $0x1730] sm:$0xff] }
 0x134   :  { %4717 = vmatprep.subr.bf16.mxu1 %v4716_v4  ;;  %v702_v50 = vld [vmem:[#allocation7 + $0x13b8] sm:$0xff]  ;;  %v683_v4 = vld [vmem:[#allocation7 + $0x1320] sm:$0xff] }
 0x135   :  { %v4736_v8 = vpack.c.bf16 %v702_v50, %v686_v49  ;;  %v4546_v18 = vpack.c.bf16 %v699_v5, %v683_v4  ;;  %v829_v49 = vld [vmem:[#allocation7 + $0x17b0] sm:$0xff]  ;;  %v844_v50 = vld [vmem:[#allocation7 + $0x1828] sm:$0xff] }
 0x136   :  { %4527 = vmatpush1.bf16.msra.mxu0 %v4526_v11  ;;  %v732_v11 = vld [vmem:[#allocation7 + $0x14a8] sm:$0xff]  ;;  %v4754_v5 = vpack.c.bf16 %v829_v49, %v813_v63  ;;  %v987_v49 = vld [vmem:[#allocation7 + $0x1ca0] sm:$0xff] }
 0x137   :  { %4719 = vmatpush1.bf16.msra.mxu1 %v4718_v15  ;;  %4529 = vmatprep.subr.bf16.mxu0 %v4528_v16  ;;  %v718_v15 = vld [vmem:[#allocation7 + $0x1438] sm:$0xff]  ;;  %v4548_v20 = vpack.c.bf16 %v732_v11, %v716_v10  ;;  %v845_v10 = vld [vmem:[#allocation7 + $0x1830] sm:$0xff] }
 0x138   :  { %4721 = vmatprep.subr.bf16.mxu1 %v4720_v21  ;;  %v734_v16 = vld [vmem:[#allocation7 + $0x14b8] sm:$0xff]  ;;  %v715_v21 = vld [vmem:[#allocation7 + $0x1420] sm:$0xff] }
 0x139   :  { %v4740_v26 = vpack.c.bf16 %v734_v16, %v718_v15  ;;  %v4550_v29 = vpack.c.bf16 %v731_v22, %v715_v21  ;;  %v861_v15 = vld [vmem:[#allocation7 + $0x18b0] sm:$0xff]  ;;  %v876_v16 = vld [vmem:[#allocation7 + $0x1928] sm:$0xff] }
 0x13a   :  { %4531 = vmatpush1.bf16.msra.mxu0 %v4530_v28  ;;  %v764_v28 = vld [vmem:[#allocation7 + $0x15a8] sm:$0xff]  ;;  %v4758_v22 = vpack.c.bf16 %v861_v15, %v845_v10  ;;  %v1019_v15 = vld [vmem:[#allocation7 + $0x1da0] sm:$0xff] }
 0x13b   :  { %4723 = vmatpush1.bf16.msra.mxu1 %v4722_v12  ;;  %4533 = vmatprep.subr.bf16.mxu0 %v4532_v13  ;;  %v750_v12 = vld [vmem:[#allocation7 + $0x1538] sm:$0xff]  ;;  %v4552_v31 = vpack.c.bf16 %v764_v28, %v748_v27  ;;  %v877_v27 = vld [vmem:[#allocation7 + $0x1930] sm:$0xff] }
 0x13c   :  { %4725 = vmatprep.subr.bf16.mxu1 %v4724_v32  ;;  %v766_v13 = vld [vmem:[#allocation7 + $0x15b8] sm:$0xff]  ;;  %v747_v32 = vld [vmem:[#allocation7 + $0x1520] sm:$0xff] }
 0x13d   :  { %2250 = vmatmul.mubr.f32.vlgmr.msra.gmra.mrb[2].mxu0 %v5941_v25  ;;  %v4744_v35 = vpack.c.bf16 %v766_v13, %v750_v12  ;;  %v4554_v42 = vpack.c.bf16 %v763_v33, %v747_v32  ;;  %v893_v12 = vld [vmem:[#allocation7 + $0x19b0] sm:$0xff]  ;;  %v908_v13 = vld [vmem:[#allocation7 + $0x1a28] sm:$0xff] }
 0x13e   :  { %4535 = vmatpush1.bf16.msra.mxu0 %v4534_v36  ;;  %2463 = vmatmul.mubr.f32.vlgmr.msra.gmra.mrb[2].mxu1 %v5941_v25  ;;  %v796_v36 = vld [vmem:[#allocation7 + $0x16a8] sm:$0xff]  ;;  %v4762_v33 = vpack.c.bf16 %v893_v12, %v877_v27  ;;  %v1051_v12 = vld [vmem:[#allocation7 + $0x1ea0] sm:$0xff] }
 0x13f   :  { %4727 = vmatpush1.bf16.msra.mxu1 %v4726_v37  ;;  %4537 = vmatprep.subr.bf16.mxu0 %v4536_v40  ;;  %v782_v37 = vld [vmem:[#allocation7 + $0x1638] sm:$0xff]  ;;  %v4556_v44 = vpack.c.bf16 %v796_v36, %v780_v39  ;;  %v909_v39 = vld [vmem:[#allocation7 + $0x1a30] sm:$0xff] }
 0x140   :  { %4729 = vmatprep.subr.bf16.mxu1 %v4728_v45  ;;  %2320 = vmatprep.mubr.f32.mxu0 %v5953_v57  ;;  %v798_v40 = vld [vmem:[#allocation7 + $0x16b8] sm:$0xff]  ;;  %v779_v45 = vld [vmem:[#allocation7 + $0x1620] sm:$0xff] }
 0x141   :  { %2533 = vmatprep.mubr.f32.mxu1 %v5953_v57  ;;  %v4748_v51 = vpack.c.bf16 %v798_v40, %v782_v37  ;;  %v4558_v58 = vpack.c.bf16 %v795_v46, %v779_v45  ;;  %v925_v37 = vld [vmem:[#allocation7 + $0x1ab0] sm:$0xff]  ;;  %v940_v40 = vld [vmem:[#allocation7 + $0x1b28] sm:$0xff] }
 0x142   :  { %4539 = vmatpush1.bf16.msra.mxu0 %v4538_v54  ;;  %v828_v54 = vld [vmem:[#allocation7 + $0x17a8] sm:$0xff]  ;;  %v4766_v46 = vpack.c.bf16 %v925_v37, %v909_v39  ;;  %v1083_v37 = vld [vmem:[#allocation7 + $0x1fa0] sm:$0xff] }
 0x143   :  { %4731 = vmatpush1.bf16.msra.mxu1 %v4730_v55  ;;  %4541 = vmatprep.subr.bf16.mxu0 %v4540_v56  ;;  %v814_v55 = vld [vmem:[#allocation7 + $0x1738] sm:$0xff]  ;;  %v4560_v60 = vpack.c.bf16 %v828_v54, %v812_v53  ;;  %v941_v53 = vld [vmem:[#allocation7 + $0x1b30] sm:$0xff] }
 0x144   :  { %4733 = vmatprep.subr.bf16.mxu1 %v4732_v61  ;;  %v830_v56 = vld [vmem:[#allocation7 + $0x17b8] sm:$0xff]  ;;  %v811_v61 = vld [vmem:[#allocation7 + $0x1720] sm:$0xff] }
 0x145   :  { %v4752_v0 = vpack.c.bf16 %v830_v56, %v814_v55  ;;  %v4562_v4 = vpack.c.bf16 %v827_v62, %v811_v61  ;;  %v957_v55 = vld [vmem:[#allocation7 + $0x1bb0] sm:$0xff]  ;;  %v972_v56 = vld [vmem:[#allocation7 + $0x1c28] sm:$0xff] }
 0x146   :  { %4543 = vmatpush1.bf16.msra.mxu0 %v4542_v1  ;;  %v860_v1 = vld [vmem:[#allocation7 + $0x18a8] sm:$0xff]  ;;  %v4770_v62 = vpack.c.bf16 %v957_v55, %v941_v53  ;;  %v1115_v55 = vld [vmem:[#allocation7 + $0x20a0] sm:$0xff] }
 0x147   :  { %4735 = vmatpush1.bf16.msra.mxu1 %v4734_v2  ;;  %4545 = vmatprep.subr.bf16.mxu0 %v4544_v3  ;;  %v846_v2 = vld [vmem:[#allocation7 + $0x1838] sm:$0xff]  ;;  %v4564_v6 = vpack.c.bf16 %v860_v1, %v844_v50  ;;  %v973_v50 = vld [vmem:[#allocation7 + $0x1c30] sm:$0xff] }
 0x148   :  { %4737 = vmatprep.subr.bf16.mxu1 %v4736_v8  ;;  %v862_v3 = vld [vmem:[#allocation7 + $0x18b8] sm:$0xff]  ;;  %v843_v8 = vld [vmem:[#allocation7 + $0x1820] sm:$0xff] }
 0x149   :  { %v4756_v11 = vpack.c.bf16 %v862_v3, %v846_v2  ;;  %v4566_v21 = vpack.c.bf16 %v859_v9, %v843_v8  ;;  %v989_v2 = vld [vmem:[#allocation7 + $0x1cb0] sm:$0xff]  ;;  %v1004_v3 = vld [vmem:[#allocation7 + $0x1d28] sm:$0xff] }
 0x14a   :  { %4547 = vmatpush1.bf16.msra.mxu0 %v4546_v18  ;;  %v892_v18 = vld [vmem:[#allocation7 + $0x19a8] sm:$0xff]  ;;  %v4774_v9 = vpack.c.bf16 %v989_v2, %v973_v50  ;;  %v1147_v2 = vld [vmem:[#allocation7 + $0x21a0] sm:$0xff] }
 0x14b   :  { %4739 = vmatpush1.bf16.msra.mxu1 %v4738_v19  ;;  %4549 = vmatprep.subr.bf16.mxu0 %v4548_v20  ;;  %v878_v19 = vld [vmem:[#allocation7 + $0x1938] sm:$0xff]  ;;  %v4568_v24 = vpack.c.bf16 %v892_v18, %v876_v16  ;;  %v1005_v16 = vld [vmem:[#allocation7 + $0x1d30] sm:$0xff] }
 0x14c   :  { %4741 = vmatprep.subr.bf16.mxu1 %v4740_v26  ;;  %v894_v20 = vld [vmem:[#allocation7 + $0x19b8] sm:$0xff]  ;;  %v875_v26 = vld [vmem:[#allocation7 + $0x1920] sm:$0xff] }
 0x14d   :  { %v4760_v28 = vpack.c.bf16 %v894_v20, %v878_v19  ;;  %v4570_v32 = vpack.c.bf16 %v891_v23, %v875_v26  ;;  %v1021_v19 = vld [vmem:[#allocation7 + $0x1db0] sm:$0xff]  ;;  %v1036_v20 = vld [vmem:[#allocation7 + $0x1e28] sm:$0xff] }
 0x14e   :  { %4551 = vmatpush1.bf16.msra.mxu0 %v4550_v29  ;;  %v924_v29 = vld [vmem:[#allocation7 + $0x1aa8] sm:$0xff]  ;;  %v4778_v23 = vpack.c.bf16 %v1021_v19, %v1005_v16  ;;  %v1179_v19 = vld [vmem:[#allocation7 + $0x22a0] sm:$0xff] }
 0x14f   :  { %4743 = vmatpush1.bf16.msra.mxu1 %v4742_v30  ;;  %4553 = vmatprep.subr.bf16.mxu0 %v4552_v31  ;;  %v910_v30 = vld [vmem:[#allocation7 + $0x1a38] sm:$0xff]  ;;  %v4572_v34 = vpack.c.bf16 %v924_v29, %v908_v13  ;;  %v1037_v13 = vld [vmem:[#allocation7 + $0x1e30] sm:$0xff] }
 0x150   :  { %4745 = vmatprep.subr.bf16.mxu1 %v4744_v35  ;;  %v926_v31 = vld [vmem:[#allocation7 + $0x1ab8] sm:$0xff]  ;;  %v907_v35 = vld [vmem:[#allocation7 + $0x1a20] sm:$0xff] }
 0x151   :  { %v4764_v36 = vpack.c.bf16 %v926_v31, %v910_v30  ;;  %v4574_v45 = vpack.c.bf16 %v923_v38, %v907_v35  ;;  %v1053_v30 = vld [vmem:[#allocation7 + $0x1eb0] sm:$0xff]  ;;  %v1068_v31 = vld [vmem:[#allocation7 + $0x1f28] sm:$0xff] }
 0x152   :  { %4555 = vmatpush1.bf16.msra.mxu0 %v4554_v42  ;;  %v956_v42 = vld [vmem:[#allocation7 + $0x1ba8] sm:$0xff]  ;;  %v4782_v38 = vpack.c.bf16 %v1053_v30, %v1037_v13  ;;  %v1211_v30 = vld [vmem:[#allocation7 + $0x23a0] sm:$0xff] }
 0x153   :  { %4747 = vmatpush1.bf16.msra.mxu1 %v4746_v43  ;;  %4557 = vmatprep.subr.bf16.mxu0 %v4556_v44  ;;  %v942_v43 = vld [vmem:[#allocation7 + $0x1b38] sm:$0xff]  ;;  %v4576_v48 = vpack.c.bf16 %v956_v42, %v940_v40  ;;  %v1069_v40 = vld [vmem:[#allocation7 + $0x1f30] sm:$0xff] }
 0x154   :  { %4749 = vmatprep.subr.bf16.mxu1 %v4748_v51  ;;  %v958_v44 = vld [vmem:[#allocation7 + $0x1bb8] sm:$0xff]  ;;  %v939_v51 = vld [vmem:[#allocation7 + $0x1b20] sm:$0xff] }
 0x155   :  { %v4768_v54 = vpack.c.bf16 %v958_v44, %v942_v43  ;;  %v4578_v61 = vpack.c.bf16 %v955_v52, %v939_v51  ;;  %v1085_v43 = vld [vmem:[#allocation7 + $0x1fb0] sm:$0xff]  ;;  %v1100_v44 = vld [vmem:[#allocation7 + $0x2028] sm:$0xff] }
 0x156   :  { %4559 = vmatpush1.bf16.msra.mxu0 %v4558_v58  ;;  %v988_v58 = vld [vmem:[#allocation7 + $0x1ca8] sm:$0xff]  ;;  %v4786_v52 = vpack.c.bf16 %v1085_v43, %v1069_v40  ;;  %v1243_v43 = vld [vmem:[#allocation7 + $0x24a0] sm:$0xff] }
 0x157   :  { %4751 = vmatpush1.bf16.msra.mxu1 %v4750_v59  ;;  %4561 = vmatprep.subr.bf16.mxu0 %v4560_v60  ;;  %v974_v59 = vld [vmem:[#allocation7 + $0x1c38] sm:$0xff]  ;;  %v4580_v63 = vpack.c.bf16 %v988_v58, %v972_v56  ;;  %v1101_v56 = vld [vmem:[#allocation7 + $0x2030] sm:$0xff] }
 0x158   :  { %4753 = vmatprep.subr.bf16.mxu1 %v4752_v0  ;;  %v990_v60 = vld [vmem:[#allocation7 + $0x1cb8] sm:$0xff]  ;;  %v971_v0 = vld [vmem:[#allocation7 + $0x1c20] sm:$0xff] }
 0x159   :  { %v4772_v1 = vpack.c.bf16 %v990_v60, %v974_v59  ;;  %v4582_v8 = vpack.c.bf16 %v987_v49, %v971_v0  ;;  %v1117_v59 = vld [vmem:[#allocation7 + $0x20b0] sm:$0xff]  ;;  %v1132_v60 = vld [vmem:[#allocation7 + $0x2128] sm:$0xff] }
 0x15a   :  { %4563 = vmatpush1.bf16.msra.mxu0 %v4562_v4  ;;  %v1020_v4 = vld [vmem:[#allocation7 + $0x1da8] sm:$0xff]  ;;  %v4790_v49 = vpack.c.bf16 %v1117_v59, %v1101_v56  ;;  %v1275_v59 = vld [vmem:[#allocation7 + $0x25a0] sm:$0xff] }
 0x15b   :  { %4755 = vmatpush1.bf16.msra.mxu1 %v4754_v5  ;;  %4565 = vmatprep.subr.bf16.mxu0 %v4564_v6  ;;  %v1006_v5 = vld [vmem:[#allocation7 + $0x1d38] sm:$0xff]  ;;  %v4584_v10 = vpack.c.bf16 %v1020_v4, %v1004_v3  ;;  %v1133_v3 = vld [vmem:[#allocation7 + $0x2130] sm:$0xff] }
 0x15c   :  { %4757 = vmatprep.subr.bf16.mxu1 %v4756_v11  ;;  %v1022_v6 = vld [vmem:[#allocation7 + $0x1db8] sm:$0xff]  ;;  %v1003_v11 = vld [vmem:[#allocation7 + $0x1d20] sm:$0xff] }
 0x15d   :  { %v4776_v18 = vpack.c.bf16 %v1022_v6, %v1006_v5  ;;  %v4586_v26 = vpack.c.bf16 %v1019_v15, %v1003_v11  ;;  %v1149_v5 = vld [vmem:[#allocation7 + $0x21b0] sm:$0xff]  ;;  %v1164_v6 = vld [vmem:[#allocation7 + $0x2228] sm:$0xff] }
 0x15e   :  { %4567 = vmatpush1.bf16.msra.mxu0 %v4566_v21  ;;  %v1052_v21 = vld [vmem:[#allocation7 + $0x1ea8] sm:$0xff]  ;;  %v4794_v15 = vpack.c.bf16 %v1149_v5, %v1133_v3  ;;  %v1307_v5 = vld [vmem:[#allocation7 + $0x26a0] sm:$0xff] }
 0x15f   :  { %4759 = vmatpush1.bf16.msra.mxu1 %v4758_v22  ;;  %4569 = vmatprep.subr.bf16.mxu0 %v4568_v24  ;;  %v1038_v22 = vld [vmem:[#allocation7 + $0x1e38] sm:$0xff]  ;;  %v4588_v27 = vpack.c.bf16 %v1052_v21, %v1036_v20  ;;  %v1165_v20 = vld [vmem:[#allocation7 + $0x2230] sm:$0xff] }
 0x160   :  { %4761 = vmatprep.subr.bf16.mxu1 %v4760_v28  ;;  %v1054_v24 = vld [vmem:[#allocation7 + $0x1eb8] sm:$0xff]  ;;  %v1035_v28 = vld [vmem:[#allocation7 + $0x1e20] sm:$0xff] }
 0x161   :  { %v4780_v29 = vpack.c.bf16 %v1054_v24, %v1038_v22  ;;  %v4590_v35 = vpack.c.bf16 %v1051_v12, %v1035_v28  ;;  %v1181_v22 = vld [vmem:[#allocation7 + $0x22b0] sm:$0xff]  ;;  %v1196_v24 = vld [vmem:[#allocation7 + $0x2328] sm:$0xff] }
 0x162   :  { %4571 = vmatpush1.bf16.msra.mxu0 %v4570_v32  ;;  %v1084_v32 = vld [vmem:[#allocation7 + $0x1fa8] sm:$0xff]  ;;  %v4798_v12 = vpack.c.bf16 %v1181_v22, %v1165_v20  ;;  %v1339_v22 = vld [vmem:[#allocation7 + $0x27a0] sm:$0xff] }
 0x163   :  { %4763 = vmatpush1.bf16.msra.mxu1 %v4762_v33  ;;  %4573 = vmatprep.subr.bf16.mxu0 %v4572_v34  ;;  %v1070_v33 = vld [vmem:[#allocation7 + $0x1f38] sm:$0xff]  ;;  %v4592_v39 = vpack.c.bf16 %v1084_v32, %v1068_v31  ;;  %v1197_v31 = vld [vmem:[#allocation7 + $0x2330] sm:$0xff] }
 0x164   :  { %4765 = vmatprep.subr.bf16.mxu1 %v4764_v36  ;;  %v1086_v34 = vld [vmem:[#allocation7 + $0x1fb8] sm:$0xff]  ;;  %v1067_v36 = vld [vmem:[#allocation7 + $0x1f20] sm:$0xff] }
 0x165   :  { %v4784_v42 = vpack.c.bf16 %v1086_v34, %v1070_v33  ;;  %v4594_v51 = vpack.c.bf16 %v1083_v37, %v1067_v36  ;;  %v1213_v33 = vld [vmem:[#allocation7 + $0x23b0] sm:$0xff]  ;;  %v1228_v34 = vld [vmem:[#allocation7 + $0x2428] sm:$0xff] }
 0x166   :  { %4575 = vmatpush1.bf16.msra.mxu0 %v4574_v45  ;;  %v1116_v45 = vld [vmem:[#allocation7 + $0x20a8] sm:$0xff]  ;;  %v4802_v37 = vpack.c.bf16 %v1213_v33, %v1197_v31  ;;  %v1371_v33 = vld [vmem:[#allocation7 + $0x28a0] sm:$0xff] }
 0x167   :  { %4767 = vmatpush1.bf16.msra.mxu1 %v4766_v46  ;;  %4577 = vmatprep.subr.bf16.mxu0 %v4576_v48  ;;  %v1102_v46 = vld [vmem:[#allocation7 + $0x2038] sm:$0xff]  ;;  %v4596_v53 = vpack.c.bf16 %v1116_v45, %v1100_v44  ;;  %v1229_v44 = vld [vmem:[#allocation7 + $0x2430] sm:$0xff] }
 0x168   :  { %4769 = vmatprep.subr.bf16.mxu1 %v4768_v54  ;;  %v1118_v48 = vld [vmem:[#allocation7 + $0x20b8] sm:$0xff]  ;;  %v1099_v54 = vld [vmem:[#allocation7 + $0x2020] sm:$0xff] }
 0x169   :  { %v4788_v58 = vpack.c.bf16 %v1118_v48, %v1102_v46  ;;  %v4598_v0 = vpack.c.bf16 %v1115_v55, %v1099_v54  ;;  %v1245_v46 = vld [vmem:[#allocation7 + $0x24b0] sm:$0xff]  ;;  %v1260_v48 = vld [vmem:[#allocation7 + $0x2528] sm:$0xff] }
 0x16a   :  { %4579 = vmatpush1.bf16.msra.mxu0 %v4578_v61  ;;  %v1148_v61 = vld [vmem:[#allocation7 + $0x21a8] sm:$0xff]  ;;  %v4806_v55 = vpack.c.bf16 %v1245_v46, %v1229_v44  ;;  %v1403_v46 = vld [vmem:[#allocation7 + $0x29a0] sm:$0xff] }
 0x16b   :  { %4771 = vmatpush1.bf16.msra.mxu1 %v4770_v62  ;;  %4581 = vmatprep.subr.bf16.mxu0 %v4580_v63  ;;  %v1134_v62 = vld [vmem:[#allocation7 + $0x2138] sm:$0xff]  ;;  %v4600_v50 = vpack.c.bf16 %v1148_v61, %v1132_v60  ;;  %v1261_v60 = vld [vmem:[#allocation7 + $0x2530] sm:$0xff] }
 0x16c   :  { %4773 = vmatprep.subr.bf16.mxu1 %v4772_v1  ;;  %v1150_v63 = vld [vmem:[#allocation7 + $0x21b8] sm:$0xff]  ;;  %v1131_v1 = vld [vmem:[#allocation7 + $0x2120] sm:$0xff] }
 0x16d   :  { %v4792_v4 = vpack.c.bf16 %v1150_v63, %v1134_v62  ;;  %v4602_v11 = vpack.c.bf16 %v1147_v2, %v1131_v1  ;;  %v1277_v62 = vld [vmem:[#allocation7 + $0x25b0] sm:$0xff]  ;;  %v1292_v63 = vld [vmem:[#allocation7 + $0x2628] sm:$0xff] }
 0x16e   :  { %4583 = vmatpush1.bf16.msra.mxu0 %v4582_v8  ;;  %v1180_v8 = vld [vmem:[#allocation7 + $0x22a8] sm:$0xff]  ;;  %v4810_v2 = vpack.c.bf16 %v1277_v62, %v1261_v60  ;;  %v1435_v62 = vld [vmem:[#allocation7 + $0x2aa0] sm:$0xff] }
 0x16f   :  { %4775 = vmatpush1.bf16.msra.mxu1 %v4774_v9  ;;  %4585 = vmatprep.subr.bf16.mxu0 %v4584_v10  ;;  %v1166_v9 = vld [vmem:[#allocation7 + $0x2238] sm:$0xff]  ;;  %v4604_v16 = vpack.c.bf16 %v1180_v8, %v1164_v6  ;;  %v1293_v6 = vld [vmem:[#allocation7 + $0x2630] sm:$0xff] }
 0x170   :  { %4777 = vmatprep.subr.bf16.mxu1 %v4776_v18  ;;  %v1182_v10 = vld [vmem:[#allocation7 + $0x22b8] sm:$0xff]  ;;  %v1163_v18 = vld [vmem:[#allocation7 + $0x2220] sm:$0xff] }
 0x171   :  { %v4796_v21 = vpack.c.bf16 %v1182_v10, %v1166_v9  ;;  %v4606_v28 = vpack.c.bf16 %v1179_v19, %v1163_v18  ;;  %v1309_v9 = vld [vmem:[#allocation7 + $0x26b0] sm:$0xff]  ;;  %v1324_v10 = vld [vmem:[#allocation7 + $0x2728] sm:$0xff] }
 0x172   :  { %4587 = vmatpush1.bf16.msra.mxu0 %v4586_v26  ;;  %v1212_v26 = vld [vmem:[#allocation7 + $0x23a8] sm:$0xff]  ;;  %v4814_v19 = vpack.c.bf16 %v1309_v9, %v1293_v6  ;;  %v1467_v9 = vld [vmem:[#allocation7 + $0x2ba0] sm:$0xff] }
 0x173   :  { %4779 = vmatpush1.bf16.msra.mxu1 %v4778_v23  ;;  %4589 = vmatprep.subr.bf16.mxu0 %v4588_v27  ;;  %v1198_v23 = vld [vmem:[#allocation7 + $0x2338] sm:$0xff]  ;;  %v4608_v13 = vpack.c.bf16 %v1212_v26, %v1196_v24  ;;  %v1325_v24 = vld [vmem:[#allocation7 + $0x2730] sm:$0xff] }
 0x174   :  { %4781 = vmatprep.subr.bf16.mxu1 %v4780_v29  ;;  %v1214_v27 = vld [vmem:[#allocation7 + $0x23b8] sm:$0xff]  ;;  %v1195_v29 = vld [vmem:[#allocation7 + $0x2320] sm:$0xff] }
 0x175   :  { %v4800_v32 = vpack.c.bf16 %v1214_v27, %v1198_v23  ;;  %v4610_v36 = vpack.c.bf16 %v1211_v30, %v1195_v29  ;;  %v1341_v23 = vld [vmem:[#allocation7 + $0x27b0] sm:$0xff]  ;;  %v1356_v27 = vld [vmem:[#allocation7 + $0x2828] sm:$0xff] }
 0x176   :  { %4591 = vmatpush1.bf16.msra.mxu0 %v4590_v35  ;;  %v1244_v35 = vld [vmem:[#allocation7 + $0x24a8] sm:$0xff]  ;;  %v4818_v30 = vpack.c.bf16 %v1341_v23, %v1325_v24  ;;  %v1499_v23 = vld [vmem:[#allocation7 + $0x2ca0] sm:$0xff] }
 0x177   :  { %4783 = vmatpush1.bf16.msra.mxu1 %v4782_v38  ;;  %4593 = vmatprep.subr.bf16.mxu0 %v4592_v39  ;;  %v1230_v38 = vld [vmem:[#allocation7 + $0x2438] sm:$0xff]  ;;  %v4612_v40 = vpack.c.bf16 %v1244_v35, %v1228_v34  ;;  %v1357_v34 = vld [vmem:[#allocation7 + $0x2830] sm:$0xff] }
 0x178   :  { %4785 = vmatprep.subr.bf16.mxu1 %v4784_v42  ;;  %v1246_v39 = vld [vmem:[#allocation7 + $0x24b8] sm:$0xff]  ;;  %v1227_v42 = vld [vmem:[#allocation7 + $0x2420] sm:$0xff] }
 0x179   :  { %v4804_v45 = vpack.c.bf16 %v1246_v39, %v1230_v38  ;;  %v4614_v54 = vpack.c.bf16 %v1243_v43, %v1227_v42  ;;  %v1373_v38 = vld [vmem:[#allocation7 + $0x28b0] sm:$0xff]  ;;  %v1388_v39 = vld [vmem:[#allocation7 + $0x2928] sm:$0xff] }
 0x17a   :  { %4595 = vmatpush1.bf16.msra.mxu0 %v4594_v51  ;;  %v1276_v51 = vld [vmem:[#allocation7 + $0x25a8] sm:$0xff]  ;;  %v4822_v43 = vpack.c.bf16 %v1373_v38, %v1357_v34  ;;  %v1531_v38 = vld [vmem:[#allocation7 + $0x2da0] sm:$0xff] }
 0x17b   :  { %4787 = vmatpush1.bf16.msra.mxu1 %v4786_v52  ;;  %4597 = vmatprep.subr.bf16.mxu0 %v4596_v53  ;;  %v1262_v52 = vld [vmem:[#allocation7 + $0x2538] sm:$0xff]  ;;  %v4616_v56 = vpack.c.bf16 %v1276_v51, %v1260_v48  ;;  %v1389_v48 = vld [vmem:[#allocation7 + $0x2930] sm:$0xff] }
 0x17c   :  { %4789 = vmatprep.subr.bf16.mxu1 %v4788_v58  ;;  %v1278_v53 = vld [vmem:[#allocation7 + $0x25b8] sm:$0xff]  ;;  %v1259_v58 = vld [vmem:[#allocation7 + $0x2520] sm:$0xff] }
 0x17d   :  { %2321 = vmatmul.mubr.f32.vlgmr.msra.gmra.mrb[2].mxu0 %v5959_v47  ;;  %v4808_v61 = vpack.c.bf16 %v1278_v53, %v1262_v52  ;;  %v4618_v1 = vpack.c.bf16 %v1275_v59, %v1259_v58  ;;  %v1405_v52 = vld [vmem:[#allocation7 + $0x29b0] sm:$0xff]  ;;  %v1420_v53 = vld [vmem:[#allocation7 + $0x2a28] sm:$0xff] }
 0x17e   :  { %4599 = vmatpush1.bf16.msra.mxu0 %v4598_v0  ;;  %2534 = vmatmul.mubr.f32.vlgmr.msra.gmra.mrb[2].mxu1 %v5959_v47  ;;  %v1308_v0 = vld [vmem:[#allocation7 + $0x26a8] sm:$0xff]  ;;  %v4826_v59 = vpack.c.bf16 %v1405_v52, %v1389_v48  ;;  %v1563_v52 = vld [vmem:[#allocation7 + $0x2ea0] sm:$0xff] }
 0x17f   :  { %4791 = vmatpush1.bf16.msra.mxu1 %v4790_v49  ;;  %4601 = vmatprep.subr.bf16.mxu0 %v4600_v50  ;;  %v1294_v49 = vld [vmem:[#allocation7 + $0x2638] sm:$0xff]  ;;  %v4620_v3 = vpack.c.bf16 %v1308_v0, %v1292_v63  ;;  %v1421_v63 = vld [vmem:[#allocation7 + $0x2a30] sm:$0xff] }
 0x180   :  { %4793 = vmatprep.subr.bf16.mxu1 %v4792_v4  ;;  %2391 = vmatprep.mubr.f32.mxu0 %v5971_v17  ;;  %v1310_v50 = vld [vmem:[#allocation7 + $0x26b8] sm:$0xff]  ;;  %v1291_v4 = vld [vmem:[#allocation7 + $0x2620] sm:$0xff] }
 0x181   :  { %2604 = vmatprep.mubr.f32.mxu1 %v5971_v17  ;;  %v4812_v8 = vpack.c.bf16 %v1310_v50, %v1294_v49  ;;  %v4622_v18 = vpack.c.bf16 %v1307_v5, %v1291_v4  ;;  %v1437_v49 = vld [vmem:[#allocation7 + $0x2ab0] sm:$0xff]  ;;  %v1452_v50 = vld [vmem:[#allocation7 + $0x2b28] sm:$0xff] }
 0x182   :  { %4603 = vmatpush1.bf16.msra.mxu0 %v4602_v11  ;;  %v1340_v11 = vld [vmem:[#allocation7 + $0x27a8] sm:$0xff]  ;;  %v4830_v5 = vpack.c.bf16 %v1437_v49, %v1421_v63  ;;  %v1595_v49 = vld [vmem:[#allocation7 + $0x2fa0] sm:$0xff] }
 0x183   :  { %4795 = vmatpush1.bf16.msra.mxu1 %v4794_v15  ;;  %4605 = vmatprep.subr.bf16.mxu0 %v4604_v16  ;;  %v1326_v15 = vld [vmem:[#allocation7 + $0x2738] sm:$0xff]  ;;  %v4624_v20 = vpack.c.bf16 %v1340_v11, %v1324_v10  ;;  %v1453_v10 = vld [vmem:[#allocation7 + $0x2b30] sm:$0xff] }
 0x184   :  { %4797 = vmatprep.subr.bf16.mxu1 %v4796_v21  ;;  %v1342_v16 = vld [vmem:[#allocation7 + $0x27b8] sm:$0xff]  ;;  %v1323_v21 = vld [vmem:[#allocation7 + $0x2720] sm:$0xff] }
 0x185   :  { %v4816_v26 = vpack.c.bf16 %v1342_v16, %v1326_v15  ;;  %v4626_v29 = vpack.c.bf16 %v1339_v22, %v1323_v21  ;;  %v1469_v15 = vld [vmem:[#allocation7 + $0x2bb0] sm:$0xff]  ;;  %v1484_v16 = vld [vmem:[#allocation7 + $0x2c28] sm:$0xff] }
 0x186   :  { %4607 = vmatpush1.bf16.msra.mxu0 %v4606_v28  ;;  %v1372_v28 = vld [vmem:[#allocation7 + $0x28a8] sm:$0xff]  ;;  %v4834_v22 = vpack.c.bf16 %v1469_v15, %v1453_v10  ;;  %v95_v15 = vld [vmem:[#allocation7 + $0xc0] sm:$0xff] }
 0x187   :  { %4799 = vmatpush1.bf16.msra.mxu1 %v4798_v12  ;;  %4609 = vmatprep.subr.bf16.mxu0 %v4608_v13  ;;  %v1358_v12 = vld [vmem:[#allocation7 + $0x2838] sm:$0xff]  ;;  %v4628_v31 = vpack.c.bf16 %v1372_v28, %v1356_v27  ;;  %v1485_v27 = vld [vmem:[#allocation7 + $0x2c30] sm:$0xff] }
 0x188   :  { %4801 = vmatprep.subr.bf16.mxu1 %v4800_v32  ;;  %v1374_v13 = vld [vmem:[#allocation7 + $0x28b8] sm:$0xff]  ;;  %v1355_v32 = vld [vmem:[#allocation7 + $0x2820] sm:$0xff] }
 0x189   :  { %v4820_v35 = vpack.c.bf16 %v1374_v13, %v1358_v12  ;;  %v4630_v42 = vpack.c.bf16 %v1371_v33, %v1355_v32  ;;  %v1501_v12 = vld [vmem:[#allocation7 + $0x2cb0] sm:$0xff]  ;;  %v1516_v13 = vld [vmem:[#allocation7 + $0x2d28] sm:$0xff] }
 0x18a   :  { %4611 = vmatpush1.bf16.msra.mxu0 %v4610_v36  ;;  %v1404_v36 = vld [vmem:[#allocation7 + $0x29a8] sm:$0xff]  ;;  %v4838_v33 = vpack.c.bf16 %v1501_v12, %v1485_v27  ;;  %v127_v12 = vld [vmem:[#allocation7 + $0x1c0] sm:$0xff] }
 0x18b   :  { %4803 = vmatpush1.bf16.msra.mxu1 %v4802_v37  ;;  %4613 = vmatprep.subr.bf16.mxu0 %v4612_v40  ;;  %v1390_v37 = vld [vmem:[#allocation7 + $0x2938] sm:$0xff]  ;;  %v4632_v44 = vpack.c.bf16 %v1404_v36, %v1388_v39  ;;  %v1517_v39 = vld [vmem:[#allocation7 + $0x2d30] sm:$0xff] }
 0x18c   :  { %4805 = vmatprep.subr.bf16.mxu1 %v4804_v45  ;;  %v1406_v40 = vld [vmem:[#allocation7 + $0x29b8] sm:$0xff]  ;;  %v1387_v45 = vld [vmem:[#allocation7 + $0x2920] sm:$0xff] }
 0x18d   :  { %v4824_v51 = vpack.c.bf16 %v1406_v40, %v1390_v37  ;;  %v4634_v58 = vpack.c.bf16 %v1403_v46, %v1387_v45  ;;  %v1533_v37 = vld [vmem:[#allocation7 + $0x2db0] sm:$0xff]  ;;  %v1548_v40 = vld [vmem:[#allocation7 + $0x2e28] sm:$0xff] }
 0x18e   :  { %4615 = vmatpush1.bf16.msra.mxu0 %v4614_v54  ;;  %v1436_v54 = vld [vmem:[#allocation7 + $0x2aa8] sm:$0xff]  ;;  %v4842_v46 = vpack.c.bf16 %v1533_v37, %v1517_v39  ;;  %v159_v37 = vld [vmem:[#allocation7 + $0x2c0] sm:$0xff] }
 0x18f   :  { %4807 = vmatpush1.bf16.msra.mxu1 %v4806_v55  ;;  %4617 = vmatprep.subr.bf16.mxu0 %v4616_v56  ;;  %v1422_v55 = vld [vmem:[#allocation7 + $0x2a38] sm:$0xff]  ;;  %v4636_v60 = vpack.c.bf16 %v1436_v54, %v1420_v53  ;;  %v1549_v53 = vld [vmem:[#allocation7 + $0x2e30] sm:$0xff] }
 0x190   :  { %4809 = vmatprep.subr.bf16.mxu1 %v4808_v61  ;;  %v1438_v56 = vld [vmem:[#allocation7 + $0x2ab8] sm:$0xff]  ;;  %v1419_v61 = vld [vmem:[#allocation7 + $0x2a20] sm:$0xff] }
 0x191   :  { %v4828_v0 = vpack.c.bf16 %v1438_v56, %v1422_v55  ;;  %v4638_v4 = vpack.c.bf16 %v1435_v62, %v1419_v61  ;;  %v1565_v55 = vld [vmem:[#allocation7 + $0x2eb0] sm:$0xff]  ;;  %v1580_v56 = vld [vmem:[#allocation7 + $0x2f28] sm:$0xff] }
 0x192   :  { %4619 = vmatpush1.bf16.msra.mxu0 %v4618_v1  ;;  %v1468_v1 = vld [vmem:[#allocation7 + $0x2ba8] sm:$0xff]  ;;  %v4846_v62 = vpack.c.bf16 %v1565_v55, %v1549_v53  ;;  %v191_v55 = vld [vmem:[#allocation7 + $0x3c0] sm:$0xff] }
 0x193   :  { %4811 = vmatpush1.bf16.msra.mxu1 %v4810_v2  ;;  %4621 = vmatprep.subr.bf16.mxu0 %v4620_v3  ;;  %v1454_v2 = vld [vmem:[#allocation7 + $0x2b38] sm:$0xff]  ;;  %v4640_v6 = vpack.c.bf16 %v1468_v1, %v1452_v50  ;;  %v1581_v50 = vld [vmem:[#allocation7 + $0x2f30] sm:$0xff] }
 0x194   :  { %4813 = vmatprep.subr.bf16.mxu1 %v4812_v8  ;;  %v1470_v3 = vld [vmem:[#allocation7 + $0x2bb8] sm:$0xff]  ;;  %v1451_v8 = vld [vmem:[#allocation7 + $0x2b20] sm:$0xff] }
 0x195   :  { %v4832_v11 = vpack.c.bf16 %v1470_v3, %v1454_v2  ;;  %v4642_v21 = vpack.c.bf16 %v1467_v9, %v1451_v8  ;;  %v1597_v2 = vld [vmem:[#allocation7 + $0x2fb0] sm:$0xff]  ;;  %v80_v3 = vld [vmem:[#allocation7 + $0x48] sm:$0xff] }
 0x196   :  { %4623 = vmatpush1.bf16.msra.mxu0 %v4622_v18  ;;  %v1500_v18 = vld [vmem:[#allocation7 + $0x2ca8] sm:$0xff]  ;;  %v4850_v9 = vpack.c.bf16 %v1597_v2, %v1581_v50  ;;  %v223_v2 = vld [vmem:[#allocation7 + $0x4c0] sm:$0xff] }
 0x197   :  { %4815 = vmatpush1.bf16.msra.mxu1 %v4814_v19  ;;  %4625 = vmatprep.subr.bf16.mxu0 %v4624_v20  ;;  %v1486_v19 = vld [vmem:[#allocation7 + $0x2c38] sm:$0xff]  ;;  %v4644_v24 = vpack.c.bf16 %v1500_v18, %v1484_v16  ;;  %v81_v16 = vld [vmem:[#allocation7 + $0x50] sm:$0xff] }
 0x198   :  { %4817 = vmatprep.subr.bf16.mxu1 %v4816_v26  ;;  %v1502_v20 = vld [vmem:[#allocation7 + $0x2cb8] sm:$0xff]  ;;  %v1483_v26 = vld [vmem:[#allocation7 + $0x2c20] sm:$0xff] }
 0x199   :  { %v4836_v28 = vpack.c.bf16 %v1502_v20, %v1486_v19  ;;  %v4646_v32 = vpack.c.bf16 %v1499_v23, %v1483_v26  ;;  %v97_v19 = vld [vmem:[#allocation7 + $0xd0] sm:$0xff]  ;;  %v112_v20 = vld [vmem:[#allocation7 + $0x148] sm:$0xff] }
 0x19a   :  { %4627 = vmatpush1.bf16.msra.mxu0 %v4626_v29  ;;  %v1532_v29 = vld [vmem:[#allocation7 + $0x2da8] sm:$0xff]  ;;  %v5046_v23 = vpack.c.bf16 %v97_v19, %v81_v16  ;;  %v255_v19 = vld [vmem:[#allocation7 + $0x5c0] sm:$0xff] }
 0x19b   :  { %4819 = vmatpush1.bf16.msra.mxu1 %v4818_v30  ;;  %4629 = vmatprep.subr.bf16.mxu0 %v4628_v31  ;;  %v1518_v30 = vld [vmem:[#allocation7 + $0x2d38] sm:$0xff]  ;;  %v4648_v34 = vpack.c.bf16 %v1532_v29, %v1516_v13  ;;  %v113_v13 = vld [vmem:[#allocation7 + $0x150] sm:$0xff] }
 0x19c   :  { %4821 = vmatprep.subr.bf16.mxu1 %v4820_v35  ;;  %v1534_v31 = vld [vmem:[#allocation7 + $0x2db8] sm:$0xff]  ;;  %v1515_v35 = vld [vmem:[#allocation7 + $0x2d20] sm:$0xff] }
 0x19d   :  { %v4840_v36 = vpack.c.bf16 %v1534_v31, %v1518_v30  ;;  %v4650_v45 = vpack.c.bf16 %v1531_v38, %v1515_v35  ;;  %v129_v30 = vld [vmem:[#allocation7 + $0x1d0] sm:$0xff]  ;;  %v144_v31 = vld [vmem:[#allocation7 + $0x248] sm:$0xff] }
 0x19e   :  { %4631 = vmatpush1.bf16.msra.mxu0 %v4630_v42  ;;  %v1564_v42 = vld [vmem:[#allocation7 + $0x2ea8] sm:$0xff]  ;;  %v5050_v38 = vpack.c.bf16 %v129_v30, %v113_v13  ;;  %v287_v30 = vld [vmem:[#allocation7 + $0x6c0] sm:$0xff] }
 0x19f   :  { %4823 = vmatpush1.bf16.msra.mxu1 %v4822_v43  ;;  %4633 = vmatprep.subr.bf16.mxu0 %v4632_v44  ;;  %v1550_v43 = vld [vmem:[#allocation7 + $0x2e38] sm:$0xff]  ;;  %v4652_v48 = vpack.c.bf16 %v1564_v42, %v1548_v40  ;;  %v145_v40 = vld [vmem:[#allocation7 + $0x250] sm:$0xff] }
 0x1a0   :  { %4825 = vmatprep.subr.bf16.mxu1 %v4824_v51  ;;  %v1566_v44 = vld [vmem:[#allocation7 + $0x2eb8] sm:$0xff]  ;;  %v1547_v51 = vld [vmem:[#allocation7 + $0x2e20] sm:$0xff] }
 0x1a1   :  { %v4844_v54 = vpack.c.bf16 %v1566_v44, %v1550_v43  ;;  %v4654_v61 = vpack.c.bf16 %v1563_v52, %v1547_v51  ;;  %v161_v43 = vld [vmem:[#allocation7 + $0x2d0] sm:$0xff]  ;;  %v176_v44 = vld [vmem:[#allocation7 + $0x348] sm:$0xff] }
 0x1a2   :  { %4635 = vmatpush1.bf16.msra.mxu0 %v4634_v58  ;;  %v1596_v58 = vld [vmem:[#allocation7 + $0x2fa8] sm:$0xff]  ;;  %v5054_v52 = vpack.c.bf16 %v161_v43, %v145_v40  ;;  %v322_v40 = vld [vmem:[#allocation7 + $0x7d8] sm:$0xff] }
 0x1a3   :  { %4827 = vmatpush1.bf16.msra.mxu1 %v4826_v59  ;;  %4637 = vmatprep.subr.bf16.mxu0 %v4636_v60  ;;  %v1582_v59 = vld [vmem:[#allocation7 + $0x2f38] sm:$0xff]  ;;  %v4656_v63 = vpack.c.bf16 %v1596_v58, %v1580_v56  ;;  %v177_v56 = vld [vmem:[#allocation7 + $0x350] sm:$0xff] }
 0x1a4   :  { %4829 = vmatprep.subr.bf16.mxu1 %v4828_v0  ;;  %v1598_v60 = vld [vmem:[#allocation7 + $0x2fb8] sm:$0xff]  ;;  %v1579_v0 = vld [vmem:[#allocation7 + $0x2f20] sm:$0xff] }
 0x1a5   :  { %v4848_v1 = vpack.c.bf16 %v1598_v60, %v1582_v59  ;;  %v4658_v8 = vpack.c.bf16 %v1595_v49, %v1579_v0  ;;  %v193_v59 = vld [vmem:[#allocation7 + $0x3d0] sm:$0xff]  ;;  %v208_v60 = vld [vmem:[#allocation7 + $0x448] sm:$0xff] }
 0x1a6   :  { %4639 = vmatpush1.bf16.msra.mxu0 %v4638_v4  ;;  %v96_v4 = vld [vmem:[#allocation7 + $0xc8] sm:$0xff]  ;;  %v5058_v49 = vpack.c.bf16 %v193_v59, %v177_v56  ;;  %v338_v56 = vld [vmem:[#allocation7 + $0x858] sm:$0xff] }
 0x1a7   :  { %4831 = vmatpush1.bf16.msra.mxu1 %v4830_v5  ;;  %4641 = vmatprep.subr.bf16.mxu0 %v4640_v6  ;;  %v82_v5 = vld [vmem:[#allocation7 + $0x58] sm:$0xff]  ;;  %v4852_v10 = vpack.c.bf16 %v96_v4, %v80_v3  ;;  %v209_v3 = vld [vmem:[#allocation7 + $0x450] sm:$0xff] }
 0x1a8   :  { %4833 = vmatprep.subr.bf16.mxu1 %v4832_v11  ;;  %v98_v6 = vld [vmem:[#allocation7 + $0xd8] sm:$0xff]  ;;  %v79_v11 = vld [vmem:[#allocation7 + $0x40] sm:$0xff] }
 0x1a9   :  { %v5044_v18 = vpack.c.bf16 %v98_v6, %v82_v5  ;;  %v4854_v26 = vpack.c.bf16 %v95_v15, %v79_v11  ;;  %v225_v5 = vld [vmem:[#allocation7 + $0x4d0] sm:$0xff]  ;;  %v240_v6 = vld [vmem:[#allocation7 + $0x548] sm:$0xff] }
 0x1aa   :  { %4643 = vmatpush1.bf16.msra.mxu0 %v4642_v21  ;;  %v128_v21 = vld [vmem:[#allocation7 + $0x1c8] sm:$0xff]  ;;  %v5062_v15 = vpack.c.bf16 %v225_v5, %v209_v3  ;;  %v370_v3 = vld [vmem:[#allocation7 + $0x958] sm:$0xff] }
 0x1ab   :  { %4835 = vmatpush1.bf16.msra.mxu1 %v4834_v22  ;;  %4645 = vmatprep.subr.bf16.mxu0 %v4644_v24  ;;  %v114_v22 = vld [vmem:[#allocation7 + $0x158] sm:$0xff]  ;;  %v4856_v27 = vpack.c.bf16 %v128_v21, %v112_v20  ;;  %v241_v20 = vld [vmem:[#allocation7 + $0x550] sm:$0xff] }
 0x1ac   :  { %4837 = vmatprep.subr.bf16.mxu1 %v4836_v28  ;;  %v130_v24 = vld [vmem:[#allocation7 + $0x1d8] sm:$0xff]  ;;  %v111_v28 = vld [vmem:[#allocation7 + $0x140] sm:$0xff] }
 0x1ad   :  { %v5048_v29 = vpack.c.bf16 %v130_v24, %v114_v22  ;;  %v4858_v35 = vpack.c.bf16 %v127_v12, %v111_v28  ;;  %v257_v22 = vld [vmem:[#allocation7 + $0x5d0] sm:$0xff]  ;;  %v272_v24 = vld [vmem:[#allocation7 + $0x648] sm:$0xff] }
 0x1ae   :  { %4647 = vmatpush1.bf16.msra.mxu0 %v4646_v32  ;;  %v160_v32 = vld [vmem:[#allocation7 + $0x2c8] sm:$0xff]  ;;  %v5066_v12 = vpack.c.bf16 %v257_v22, %v241_v20  ;;  %v402_v20 = vld [vmem:[#allocation7 + $0xa58] sm:$0xff] }
 0x1af   :  { %4839 = vmatpush1.bf16.msra.mxu1 %v4838_v33  ;;  %4649 = vmatprep.subr.bf16.mxu0 %v4648_v34  ;;  %v146_v33 = vld [vmem:[#allocation7 + $0x258] sm:$0xff]  ;;  %v4860_v39 = vpack.c.bf16 %v160_v32, %v144_v31  ;;  %v273_v31 = vld [vmem:[#allocation7 + $0x650] sm:$0xff] }
 0x1b0   :  { %4841 = vmatprep.subr.bf16.mxu1 %v4840_v36  ;;  %v162_v34 = vld [vmem:[#allocation7 + $0x2d8] sm:$0xff]  ;;  %v143_v36 = vld [vmem:[#allocation7 + $0x240] sm:$0xff] }
 0x1b1   :  { %v5052_v42 = vpack.c.bf16 %v162_v34, %v146_v33  ;;  %v4862_v51 = vpack.c.bf16 %v159_v37, %v143_v36  ;;  %v289_v34 = vld [vmem:[#allocation7 + $0x6d0] sm:$0xff]  ;;  %v306_v37 = vld [vmem:[#allocation7 + $0x758] sm:$0xff] }
 0x1b2   :  { %4651 = vmatpush1.bf16.msra.mxu0 %v4650_v45  ;;  %v192_v45 = vld [vmem:[#allocation7 + $0x3c8] sm:$0xff] }
 0x1b3   :  { %4843 = vmatpush1.bf16.msra.mxu1 %v4842_v46  ;;  %4653 = vmatprep.subr.bf16.mxu0 %v4652_v48  ;;  %v178_v46 = vld [vmem:[#allocation7 + $0x358] sm:$0xff]  ;;  %v4864_v53 = vpack.c.bf16 %v192_v45, %v176_v44  ;;  %v5070_v44 = vpack.c.bf16 %v289_v34, %v273_v31 }
 0x1b4   :  { %4845 = vmatprep.subr.bf16.mxu1 %v4844_v54  ;;  %v194_v48 = vld [vmem:[#allocation7 + $0x3d8] sm:$0xff]  ;;  %v175_v54 = vld [vmem:[#allocation7 + $0x340] sm:$0xff] }
 0x1b5   :  { %v5056_v58 = vpack.c.bf16 %v194_v48, %v178_v46  ;;  %v4866_v0 = vpack.c.bf16 %v191_v55, %v175_v54  ;;  %v303_v46 = vld [vmem:[#allocation7 + $0x740] sm:$0xff]  ;;  %v336_v54 = vld [vmem:[#allocation7 + $0x848] sm:$0xff]  ;;  %v434_v31 = vld [vmem:[#allocation7 + $0xb58] sm:$0xff] }
 0x1b6   :  { %4655 = vmatpush1.bf16.msra.mxu0 %v4654_v61  ;;  %v224_v61 = vld [vmem:[#allocation7 + $0x4c8] sm:$0xff]  ;;  %v319_v48 = vld [vmem:[#allocation7 + $0x7c0] sm:$0xff] }
 0x1b7   :  { %4847 = vmatpush1.bf16.msra.mxu1 %v4846_v62  ;;  %4657 = vmatprep.subr.bf16.mxu0 %v4656_v63  ;;  %v210_v62 = vld [vmem:[#allocation7 + $0x458] sm:$0xff]  ;;  %v4868_v50 = vpack.c.bf16 %v224_v61, %v208_v60  ;;  %v352_v55 = vld [vmem:[#allocation7 + $0x8c8] sm:$0xff]  ;;  %v4882_v59 = vpack.c.bf16 %v319_v48, %v303_v46 }
 0x1b8   :  { %4849 = vmatprep.subr.bf16.mxu1 %v4848_v1  ;;  %v226_v63 = vld [vmem:[#allocation7 + $0x4d8] sm:$0xff]  ;;  %v207_v1 = vld [vmem:[#allocation7 + $0x440] sm:$0xff]  ;;  %v4884_v61 = vpack.c.bf16 %v352_v55, %v336_v54  ;;  %v464_v46 = vld [vmem:[#allocation7 + $0xc48] sm:$0xff] }
 0x1b9   :  { %v5060_v4 = vpack.c.bf16 %v226_v63, %v210_v62  ;;  %v4870_v11 = vpack.c.bf16 %v223_v2, %v207_v1  ;;  %v335_v62 = vld [vmem:[#allocation7 + $0x840] sm:$0xff]  ;;  %v368_v1 = vld [vmem:[#allocation7 + $0x948] sm:$0xff] }
 0x1ba   :  { %4659 = vmatpush1.bf16.msra.mxu0 %v4658_v8  ;;  %v256_v8 = vld [vmem:[#allocation7 + $0x5c8] sm:$0xff]  ;;  %v351_v63 = vld [vmem:[#allocation7 + $0x8c0] sm:$0xff] }
 0x1bb   :  { %4851 = vmatpush1.bf16.msra.mxu1 %v4850_v9  ;;  %4853 = vmatprep.subr.bf16.mxu0 %v4852_v10  ;;  %v242_v9 = vld [vmem:[#allocation7 + $0x558] sm:$0xff]  ;;  %v4872_v16 = vpack.c.bf16 %v256_v8, %v240_v6  ;;  %v384_v2 = vld [vmem:[#allocation7 + $0x9c8] sm:$0xff]  ;;  %v4886_v5 = vpack.c.bf16 %v351_v63, %v335_v62 }
 0x1bc   :  { %5045 = vmatprep.subr.bf16.mxu1 %v5044_v18  ;;  %v258_v10 = vld [vmem:[#allocation7 + $0x5d8] sm:$0xff]  ;;  %v239_v18 = vld [vmem:[#allocation7 + $0x540] sm:$0xff]  ;;  %v4888_v8 = vpack.c.bf16 %v384_v2, %v368_v1  ;;  %v480_v48 = vld [vmem:[#allocation7 + $0xcc8] sm:$0xff] }
 0x1bd   :  { %2392 = vmatmul.mubr.f32.vlgmr.msra.gmra.mrb[2].mxu0 %v5977_v14  ;;  %v5064_v21 = vpack.c.bf16 %v258_v10, %v242_v9  ;;  %v4874_v28 = vpack.c.bf16 %v255_v19, %v239_v18  ;;  %v367_v9 = vld [vmem:[#allocation7 + $0x940] sm:$0xff]  ;;  %v400_v18 = vld [vmem:[#allocation7 + $0xa48] sm:$0xff]  ;;  %v4900_v55 = vpack.c.bf16 %v480_v48, %v464_v46 }
 0x1be   :  { %2605 = vmatmul.mubr.f32.vlgmr.msra.gmra.mrb[2].mxu1 %v5977_v14  ;;  %4855 = vmatpush1.bf16.msra.mxu0 %v4854_v26  ;;  %v288_v26 = vld [vmem:[#allocation7 + $0x6c8] sm:$0xff]  ;;  %v383_v10 = vld [vmem:[#allocation7 + $0x9c0] sm:$0xff] }
 0x1bf   :  { %5047 = vmatpush1.bf16.msra.mxu1 %v5046_v23  ;;  %4857 = vmatprep.subr.bf16.mxu0 %v4856_v27  ;;  %v274_v23 = vld [vmem:[#allocation7 + $0x658] sm:$0xff]  ;;  %v4876_v13 = vpack.c.bf16 %v288_v26, %v272_v24  ;;  %v416_v19 = vld [vmem:[#allocation7 + $0xac8] sm:$0xff]  ;;  %v4890_v22 = vpack.c.bf16 %v383_v10, %v367_v9 }
 0x1c0   :  { %5049 = vmatprep.subr.bf16.mxu1 %v5048_v29  ;;  %2675 = vmatprep.mubr.f32.mxu0 %v5935_v41  ;;  %v290_v27 = vld [vmem:[#allocation7 + $0x6d8] sm:$0xff]  ;;  %v271_v29 = vld [vmem:[#allocation7 + $0x640] sm:$0xff]  ;;  %v4892_v26 = vpack.c.bf16 %v416_v19, %v400_v18  ;;  %v496_v62 = vld [vmem:[#allocation7 + $0xd48] sm:$0xff] }
 0x1c1   :  { %2888 = vmatprep.mubr.f32.mxu1 %v5935_v41  ;;  %v5068_v33 = vpack.c.bf16 %v290_v27, %v274_v23  ;;  %v4878_v43 = vpack.c.bf16 %v287_v30, %v271_v29  ;;  %v399_v23 = vld [vmem:[#allocation7 + $0xa40] sm:$0xff]  ;;  %v432_v29 = vld [vmem:[#allocation7 + $0xb48] sm:$0xff] }
 0x1c2   :  { %4859 = vmatpush1.bf16.msra.mxu0 %v4858_v35  ;;  %v304_v35 = vld [vmem:[#allocation7 + $0x748] sm:$0xff]  ;;  %v415_v27 = vld [vmem:[#allocation7 + $0xac0] sm:$0xff] }
 0x1c3   :  { %5051 = vmatpush1.bf16.msra.mxu1 %v5050_v38  ;;  %4861 = vmatprep.subr.bf16.mxu0 %v4860_v39  ;;  %v320_v38 = vld [vmem:[#allocation7 + $0x7c8] sm:$0xff]  ;;  %v4894_v34 = vpack.c.bf16 %v415_v27, %v399_v23 }
 0x1c4   :  { %5053 = vmatprep.subr.bf16.mxu1 %v5052_v42  ;;  %v4880_v45 = vpack.c.bf16 %v320_v38, %v304_v35  ;;  %v448_v30 = vld [vmem:[#allocation7 + $0xbc8] sm:$0xff] }
 0x1c5   :  { %v4896_v38 = vpack.c.bf16 %v448_v30, %v432_v29  ;;  %v512_v63 = vld [vmem:[#allocation7 + $0xdc8] sm:$0xff] }
 0x1c6   :  { %4863 = vmatpush1.bf16.msra.mxu0 %v4862_v51  ;;  %v305_v51 = vld [vmem:[#allocation7 + $0x750] sm:$0xff]  ;;  %v4904_v2 = vpack.c.bf16 %v512_v63, %v496_v62  ;;  %v528_v9 = vld [vmem:[#allocation7 + $0xe48] sm:$0xff] }
 0x1c7   :  { %5055 = vmatpush1.bf16.msra.mxu1 %v5054_v52  ;;  %4865 = vmatprep.subr.bf16.mxu0 %v4864_v53  ;;  %v5072_v52 = vpack.c.bf16 %v322_v40, %v306_v37  ;;  %v321_v53 = vld [vmem:[#allocation7 + $0x7d0] sm:$0xff]  ;;  %v431_v37 = vld [vmem:[#allocation7 + $0xb40] sm:$0xff]  ;;  %v544_v10 = vld [vmem:[#allocation7 + $0xec8] sm:$0xff] }
 0x1c8   :  { %5057 = vmatprep.subr.bf16.mxu1 %v5056_v58  ;;  %v354_v58 = vld [vmem:[#allocation7 + $0x8d8] sm:$0xff]  ;;  %v5074_v60 = vpack.c.bf16 %v321_v53, %v305_v51  ;;  %v447_v40 = vld [vmem:[#allocation7 + $0xbc0] sm:$0xff]  ;;  %v4908_v19 = vpack.c.bf16 %v544_v10, %v528_v9  ;;  %v560_v23 = vld [vmem:[#allocation7 + $0xf48] sm:$0xff] }
 0x1c9   :  { %v466_v51 = vld [vmem:[#allocation7 + $0xc58] sm:$0xff]  ;;  %v4898_v53 = vpack.c.bf16 %v447_v40, %v431_v37  ;;  %v576_v27 = vld [vmem:[#allocation7 + $0xfc8] sm:$0xff] }
 0x1ca   :  { %4867 = vmatpush1.bf16.msra.mxu0 %v4866_v0  ;;  %v337_v0 = vld [vmem:[#allocation7 + $0x850] sm:$0xff]  ;;  %v4912_v30 = vpack.c.bf16 %v576_v27, %v560_v23  ;;  %v592_v37 = vld [vmem:[#allocation7 + $0x1048] sm:$0xff] }
 0x1cb   :  { %5059 = vmatpush1.bf16.msra.mxu1 %v5058_v49  ;;  %4869 = vmatprep.subr.bf16.mxu0 %v4868_v50  ;;  %v5076_v49 = vpack.c.bf16 %v354_v58, %v338_v56  ;;  %v353_v50 = vld [vmem:[#allocation7 + $0x8d0] sm:$0xff]  ;;  %v463_v56 = vld [vmem:[#allocation7 + $0xc40] sm:$0xff]  ;;  %v608_v40 = vld [vmem:[#allocation7 + $0x10c8] sm:$0xff] }
 0x1cc   :  { %5061 = vmatprep.subr.bf16.mxu1 %v5060_v4  ;;  %v386_v4 = vld [vmem:[#allocation7 + $0x9d8] sm:$0xff]  ;;  %v5078_v6 = vpack.c.bf16 %v353_v50, %v337_v0  ;;  %v479_v58 = vld [vmem:[#allocation7 + $0xcc0] sm:$0xff]  ;;  %v4916_v48 = vpack.c.bf16 %v608_v40, %v592_v37 }
 0x1cd   :  { %v498_v0 = vld [vmem:[#allocation7 + $0xd58] sm:$0xff]  ;;  %v4902_v50 = vpack.c.bf16 %v479_v58, %v463_v56  ;;  %v624_v56 = vld [vmem:[#allocation7 + $0x1148] sm:$0xff] }
 0x1ce   :  { %4871 = vmatpush1.bf16.msra.mxu0 %v4870_v11  ;;  %v369_v11 = vld [vmem:[#allocation7 + $0x950] sm:$0xff]  ;;  %v640_v58 = vld [vmem:[#allocation7 + $0x11c8] sm:$0xff] }
 0x1cf   :  { %5063 = vmatpush1.bf16.msra.mxu1 %v5062_v15  ;;  %4873 = vmatprep.subr.bf16.mxu0 %v4872_v16  ;;  %v5080_v15 = vpack.c.bf16 %v386_v4, %v370_v3  ;;  %v385_v16 = vld [vmem:[#allocation7 + $0x9d0] sm:$0xff]  ;;  %v495_v3 = vld [vmem:[#allocation7 + $0xd40] sm:$0xff]  ;;  %v4920_v63 = vpack.c.bf16 %v640_v58, %v624_v56 }
 0x1d0   :  { %v5995_v32 = vpop.f32.mrb[0].mxu0  ;;  %5065 = vmatprep.subr.bf16.mxu1 %v5064_v21  ;;  %v418_v21 = vld [vmem:[#allocation7 + $0xad8] sm:$0xff]  ;;  %v5082_v24 = vpack.c.bf16 %v385_v16, %v369_v11  ;;  %v511_v4 = vld [vmem:[#allocation7 + $0xdc0] sm:$0xff] }
 0x1d1   :  { %v5997_v39 = vpop.f32.mrb[0].mxu1  ;;  %v5999_v36 = vpop.f32.mrb[1].mxu0  ;;  %v530_v11 = vld [vmem:[#allocation7 + $0xe58] sm:$0xff]  ;;  %v4906_v16 = vpack.c.bf16 %v511_v4, %v495_v3  ;;  %v656_v3 = vld [vmem:[#allocation7 + $0x1248] sm:$0xff] }
 0x1d2   :  { %v6001_v42 = vpop.f32.mrb[1].mxu1  ;;  %4875 = vmatpush1.bf16.msra.mxu0 %v4874_v28  ;;  %v401_v28 = vld [vmem:[#allocation7 + $0xa50] sm:$0xff]  ;;  %v672_v4 = vld [vmem:[#allocation7 + $0x12c8] sm:$0xff] }
 0x1d3   :  { %5067 = vmatpush1.bf16.msra.mxu1 %v5066_v12  ;;  %4877 = vmatprep.subr.bf16.mxu0 %v4876_v13  ;;  %v5084_v12 = vpack.c.bf16 %v418_v21, %v402_v20  ;;  %v417_v13 = vld [vmem:[#allocation7 + $0xad0] sm:$0xff]  ;;  %v527_v20 = vld [vmem:[#allocation7 + $0xe40] sm:$0xff]  ;;  %v4924_v10 = vpack.c.bf16 %v672_v4, %v656_v3 }
 0x1d4   :  { %5069 = vmatprep.subr.bf16.mxu1 %v5068_v33  ;;  %v450_v33 = vld [vmem:[#allocation7 + $0xbd8] sm:$0xff]  ;;  %v5086_v35 = vpack.c.bf16 %v417_v13, %v401_v28  ;;  %v543_v21 = vld [vmem:[#allocation7 + $0xec0] sm:$0xff] }
 0x1d5   :  { %v562_v28 = vld [vmem:[#allocation7 + $0xf58] sm:$0xff]  ;;  %v4910_v13 = vpack.c.bf16 %v543_v21, %v527_v20  ;;  %v688_v20 = vld [vmem:[#allocation7 + $0x1348] sm:$0xff] }
 0x1d6   :  { %4879 = vmatpush1.bf16.msra.mxu0 %v4878_v43  ;;  %v433_v43 = vld [vmem:[#allocation7 + $0xb50] sm:$0xff]  ;;  %v704_v21 = vld [vmem:[#allocation7 + $0x13c8] sm:$0xff] }
 0x1d7   :  { %5071 = vmatpush1.bf16.msra.mxu1 %v5070_v44  ;;  %4881 = vmatprep.subr.bf16.mxu0 %v4880_v45  ;;  %v5088_v44 = vpack.c.bf16 %v450_v33, %v434_v31  ;;  %v449_v45 = vld [vmem:[#allocation7 + $0xbd0] sm:$0xff]  ;;  %v559_v31 = vld [vmem:[#allocation7 + $0xf40] sm:$0xff]  ;;  %v4928_v27 = vpack.c.bf16 %v704_v21, %v688_v20 }
 0x1d8   :  { %5073 = vmatprep.subr.bf16.mxu1 %v5072_v52  ;;  %v482_v52 = vld [vmem:[#allocation7 + $0xcd8] sm:$0xff]  ;;  %v5090_v54 = vpack.c.bf16 %v449_v45, %v433_v43  ;;  %v575_v33 = vld [vmem:[#allocation7 + $0xfc0] sm:$0xff] }
 0x1d9   :  { %v594_v43 = vld [vmem:[#allocation7 + $0x1058] sm:$0xff]  ;;  %v4914_v45 = vpack.c.bf16 %v575_v33, %v559_v31  ;;  %v720_v31 = vld [vmem:[#allocation7 + $0x1448] sm:$0xff] }
 0x1da   :  { %4883 = vmatpush1.bf16.msra.mxu0 %v4882_v59  ;;  %v465_v59 = vld [vmem:[#allocation7 + $0xc50] sm:$0xff]  ;;  %v736_v33 = vld [vmem:[#allocation7 + $0x14c8] sm:$0xff] }
 0x1db   :  { %5075 = vmatpush1.bf16.msra.mxu1 %v5074_v60  ;;  %4885 = vmatprep.subr.bf16.mxu0 %v4884_v61  ;;  %v5092_v60 = vpack.c.bf16 %v482_v52, %v466_v51  ;;  %v481_v61 = vld [vmem:[#allocation7 + $0xcd0] sm:$0xff]  ;;  %v591_v51 = vld [vmem:[#allocation7 + $0x1040] sm:$0xff]  ;;  %v4932_v40 = vpack.c.bf16 %v736_v33, %v720_v31 }
 0x1dc   :  { %5077 = vmatprep.subr.bf16.mxu1 %v5076_v49  ;;  %v514_v49 = vld [vmem:[#allocation7 + $0xdd8] sm:$0xff]  ;;  %v5094_v1 = vpack.c.bf16 %v481_v61, %v465_v59  ;;  %v607_v52 = vld [vmem:[#allocation7 + $0x10c0] sm:$0xff] }
 0x1dd   :  { %v626_v59 = vld [vmem:[#allocation7 + $0x1158] sm:$0xff]  ;;  %v4918_v61 = vpack.c.bf16 %v607_v52, %v591_v51  ;;  %v752_v51 = vld [vmem:[#allocation7 + $0x1548] sm:$0xff] }
 0x1de   :  { %4887 = vmatpush1.bf16.msra.mxu0 %v4886_v5  ;;  %v497_v5 = vld [vmem:[#allocation7 + $0xd50] sm:$0xff]  ;;  %v768_v52 = vld [vmem:[#allocation7 + $0x15c8] sm:$0xff] }
 0x1df   :  { %5079 = vmatpush1.bf16.msra.mxu1 %v5078_v6  ;;  %4889 = vmatprep.subr.bf16.mxu0 %v4888_v8  ;;  %v5096_v6 = vpack.c.bf16 %v514_v49, %v498_v0  ;;  %v513_v8 = vld [vmem:[#allocation7 + $0xdd0] sm:$0xff]  ;;  %v623_v0 = vld [vmem:[#allocation7 + $0x1140] sm:$0xff]  ;;  %v4936_v58 = vpack.c.bf16 %v768_v52, %v752_v51 }
 0x1e0   :  { %5081 = vmatprep.subr.bf16.mxu1 %v5080_v15  ;;  %v546_v15 = vld [vmem:[#allocation7 + $0xed8] sm:$0xff]  ;;  %v5098_v18 = vpack.c.bf16 %v513_v8, %v497_v5  ;;  %v639_v49 = vld [vmem:[#allocation7 + $0x11c0] sm:$0xff] }
 0x1e1   :  { %v658_v5 = vld [vmem:[#allocation7 + $0x1258] sm:$0xff]  ;;  %v4922_v8 = vpack.c.bf16 %v639_v49, %v623_v0  ;;  %v784_v0 = vld [vmem:[#allocation7 + $0x1648] sm:$0xff] }
 0x1e2   :  { %4891 = vmatpush1.bf16.msra.mxu0 %v4890_v22  ;;  %v529_v22 = vld [vmem:[#allocation7 + $0xe50] sm:$0xff]  ;;  %v800_v49 = vld [vmem:[#allocation7 + $0x16c8] sm:$0xff] }
 0x1e3   :  { %5083 = vmatpush1.bf16.msra.mxu1 %v5082_v24  ;;  %4893 = vmatprep.subr.bf16.mxu0 %v4892_v26  ;;  %v5100_v24 = vpack.c.bf16 %v546_v15, %v530_v11  ;;  %v545_v26 = vld [vmem:[#allocation7 + $0xed0] sm:$0xff]  ;;  %v655_v11 = vld [vmem:[#allocation7 + $0x1240] sm:$0xff]  ;;  %v4940_v4 = vpack.c.bf16 %v800_v49, %v784_v0 }
 0x1e4   :  { %5085 = vmatprep.subr.bf16.mxu1 %v5084_v12  ;;  %v578_v12 = vld [vmem:[#allocation7 + $0xfd8] sm:$0xff]  ;;  %v5102_v29 = vpack.c.bf16 %v545_v26, %v529_v22  ;;  %v671_v15 = vld [vmem:[#allocation7 + $0x12c0] sm:$0xff] }
 0x1e5   :  { %v690_v22 = vld [vmem:[#allocation7 + $0x1358] sm:$0xff]  ;;  %v4926_v26 = vpack.c.bf16 %v671_v15, %v655_v11  ;;  %v816_v11 = vld [vmem:[#allocation7 + $0x1748] sm:$0xff] }
 0x1e6   :  { %4895 = vmatpush1.bf16.msra.mxu0 %v4894_v34  ;;  %v561_v34 = vld [vmem:[#allocation7 + $0xf50] sm:$0xff]  ;;  %v832_v15 = vld [vmem:[#allocation7 + $0x17c8] sm:$0xff] }
 0x1e7   :  { %5087 = vmatpush1.bf16.msra.mxu1 %v5086_v35  ;;  %4897 = vmatprep.subr.bf16.mxu0 %v4896_v38  ;;  %v5104_v35 = vpack.c.bf16 %v578_v12, %v562_v28  ;;  %v577_v38 = vld [vmem:[#allocation7 + $0xfd0] sm:$0xff]  ;;  %v687_v28 = vld [vmem:[#allocation7 + $0x1340] sm:$0xff]  ;;  %v4944_v21 = vpack.c.bf16 %v832_v15, %v816_v11 }
 0x1e8   :  { %5089 = vmatprep.subr.bf16.mxu1 %v5088_v44  ;;  %v610_v44 = vld [vmem:[#allocation7 + $0x10d8] sm:$0xff]  ;;  %v5106_v46 = vpack.c.bf16 %v577_v38, %v561_v34  ;;  %v703_v12 = vld [vmem:[#allocation7 + $0x13c0] sm:$0xff] }
 0x1e9   :  { %v722_v34 = vld [vmem:[#allocation7 + $0x1458] sm:$0xff]  ;;  %v4930_v38 = vpack.c.bf16 %v703_v12, %v687_v28  ;;  %v848_v28 = vld [vmem:[#allocation7 + $0x1848] sm:$0xff] }
 0x1ea   :  { %4899 = vmatpush1.bf16.msra.mxu0 %v4898_v53  ;;  %v593_v53 = vld [vmem:[#allocation7 + $0x1050] sm:$0xff]  ;;  %v864_v12 = vld [vmem:[#allocation7 + $0x18c8] sm:$0xff] }
 0x1eb   :  { %5091 = vmatpush1.bf16.msra.mxu1 %v5090_v54  ;;  %4901 = vmatprep.subr.bf16.mxu0 %v4900_v55  ;;  %v5108_v54 = vpack.c.bf16 %v610_v44, %v594_v43  ;;  %v609_v55 = vld [vmem:[#allocation7 + $0x10d0] sm:$0xff]  ;;  %v719_v43 = vld [vmem:[#allocation7 + $0x1440] sm:$0xff]  ;;  %v4948_v33 = vpack.c.bf16 %v864_v12, %v848_v28 }
 0x1ec   :  { %5093 = vmatprep.subr.bf16.mxu1 %v5092_v60  ;;  %v642_v60 = vld [vmem:[#allocation7 + $0x11d8] sm:$0xff]  ;;  %v5110_v62 = vpack.c.bf16 %v609_v55, %v593_v53  ;;  %v735_v44 = vld [vmem:[#allocation7 + $0x14c0] sm:$0xff] }
 0x1ed   :  { %v754_v53 = vld [vmem:[#allocation7 + $0x1558] sm:$0xff]  ;;  %v4934_v55 = vpack.c.bf16 %v735_v44, %v719_v43  ;;  %v880_v43 = vld [vmem:[#allocation7 + $0x1948] sm:$0xff] }
 0x1ee   :  { %4903 = vmatpush1.bf16.msra.mxu0 %v4902_v50  ;;  %v625_v50 = vld [vmem:[#allocation7 + $0x1150] sm:$0xff]  ;;  %v896_v44 = vld [vmem:[#allocation7 + $0x19c8] sm:$0xff] }
 0x1ef   :  { %5095 = vmatpush1.bf16.msra.mxu1 %v5094_v1  ;;  %4905 = vmatprep.subr.bf16.mxu0 %v4904_v2  ;;  %v5112_v1 = vpack.c.bf16 %v642_v60, %v626_v59  ;;  %v641_v2 = vld [vmem:[#allocation7 + $0x11d0] sm:$0xff]  ;;  %v751_v59 = vld [vmem:[#allocation7 + $0x1540] sm:$0xff]  ;;  %v4952_v52 = vpack.c.bf16 %v896_v44, %v880_v43 }
 0x1f0   :  { %5097 = vmatprep.subr.bf16.mxu1 %v5096_v6  ;;  %v674_v6 = vld [vmem:[#allocation7 + $0x12d8] sm:$0xff]  ;;  %v5114_v9 = vpack.c.bf16 %v641_v2, %v625_v50  ;;  %v767_v60 = vld [vmem:[#allocation7 + $0x15c0] sm:$0xff] }
 0x1f1   :  { %v786_v50 = vld [vmem:[#allocation7 + $0x1658] sm:$0xff]  ;;  %v4938_v2 = vpack.c.bf16 %v767_v60, %v751_v59  ;;  %v912_v59 = vld [vmem:[#allocation7 + $0x1a48] sm:$0xff] }
 0x1f2   :  { %4907 = vmatpush1.bf16.msra.mxu0 %v4906_v16  ;;  %v657_v16 = vld [vmem:[#allocation7 + $0x1250] sm:$0xff]  ;;  %v928_v60 = vld [vmem:[#allocation7 + $0x1ac8] sm:$0xff] }
 0x1f3   :  { %5099 = vmatpush1.bf16.msra.mxu1 %v5098_v18  ;;  %4909 = vmatprep.subr.bf16.mxu0 %v4908_v19  ;;  %v5116_v18 = vpack.c.bf16 %v674_v6, %v658_v5  ;;  %v673_v19 = vld [vmem:[#allocation7 + $0x12d0] sm:$0xff]  ;;  %v783_v5 = vld [vmem:[#allocation7 + $0x1640] sm:$0xff]  ;;  %v4956_v49 = vpack.c.bf16 %v928_v60, %v912_v59 }
 0x1f4   :  { %5101 = vmatprep.subr.bf16.mxu1 %v5100_v24  ;;  %v706_v24 = vld [vmem:[#allocation7 + $0x13d8] sm:$0xff]  ;;  %v5118_v23 = vpack.c.bf16 %v673_v19, %v657_v16  ;;  %v799_v6 = vld [vmem:[#allocation7 + $0x16c0] sm:$0xff] }
 0x1f5   :  { %v818_v16 = vld [vmem:[#allocation7 + $0x1758] sm:$0xff]  ;;  %v4942_v19 = vpack.c.bf16 %v799_v6, %v783_v5  ;;  %v944_v5 = vld [vmem:[#allocation7 + $0x1b48] sm:$0xff] }
 0x1f6   :  { %4911 = vmatpush1.bf16.msra.mxu0 %v4910_v13  ;;  %v689_v13 = vld [vmem:[#allocation7 + $0x1350] sm:$0xff]  ;;  %v960_v6 = vld [vmem:[#allocation7 + $0x1bc8] sm:$0xff] }
 0x1f7   :  { %5103 = vmatpush1.bf16.msra.mxu1 %v5102_v29  ;;  %4913 = vmatprep.subr.bf16.mxu0 %v4912_v30  ;;  %v5120_v29 = vpack.c.bf16 %v706_v24, %v690_v22  ;;  %v705_v30 = vld [vmem:[#allocation7 + $0x13d0] sm:$0xff]  ;;  %v815_v22 = vld [vmem:[#allocation7 + $0x1740] sm:$0xff]  ;;  %v4960_v15 = vpack.c.bf16 %v960_v6, %v944_v5 }
 0x1f8   :  { %5105 = vmatprep.subr.bf16.mxu1 %v5104_v35  ;;  %v738_v35 = vld [vmem:[#allocation7 + $0x14d8] sm:$0xff]  ;;  %v5122_v37 = vpack.c.bf16 %v705_v30, %v689_v13  ;;  %v831_v24 = vld [vmem:[#allocation7 + $0x17c0] sm:$0xff] }
 0x1f9   :  { %v850_v13 = vld [vmem:[#allocation7 + $0x1858] sm:$0xff]  ;;  %v4946_v30 = vpack.c.bf16 %v831_v24, %v815_v22  ;;  %v976_v22 = vld [vmem:[#allocation7 + $0x1c48] sm:$0xff] }
 0x1fa   :  { %4915 = vmatpush1.bf16.msra.mxu0 %v4914_v45  ;;  %v721_v45 = vld [vmem:[#allocation7 + $0x1450] sm:$0xff]  ;;  %v992_v24 = vld [vmem:[#allocation7 + $0x1cc8] sm:$0xff] }
 0x1fb   :  { %5107 = vmatpush1.bf16.msra.mxu1 %v5106_v46  ;;  %4917 = vmatprep.subr.bf16.mxu0 %v4916_v48  ;;  %v5124_v46 = vpack.c.bf16 %v738_v35, %v722_v34  ;;  %v737_v48 = vld [vmem:[#allocation7 + $0x14d0] sm:$0xff]  ;;  %v847_v34 = vld [vmem:[#allocation7 + $0x1840] sm:$0xff]  ;;  %v4964_v12 = vpack.c.bf16 %v992_v24, %v976_v22 }
 0x1fc   :  { %5109 = vmatprep.subr.bf16.mxu1 %v5108_v54  ;;  %v770_v54 = vld [vmem:[#allocation7 + $0x15d8] sm:$0xff]  ;;  %v5126_v56 = vpack.c.bf16 %v737_v48, %v721_v45  ;;  %v863_v35 = vld [vmem:[#allocation7 + $0x18c0] sm:$0xff] }
 0x1fd   :  { %2676 = vmatmul.mubr.f32.vlgmr.msra.gmra.mrb[4].mxu0 %v5941_v25  ;;  %v882_v45 = vld [vmem:[#allocation7 + $0x1958] sm:$0xff]  ;;  %v4950_v48 = vpack.c.bf16 %v863_v35, %v847_v34  ;;  %v1008_v34 = vld [vmem:[#allocation7 + $0x1d48] sm:$0xff] }
 0x1fe   :  { %4919 = vmatpush1.bf16.msra.mxu0 %v4918_v61  ;;  %2889 = vmatmul.mubr.f32.vlgmr.msra.gmra.mrb[4].mxu1 %v5941_v25  ;;  %v753_v61 = vld [vmem:[#allocation7 + $0x1550] sm:$0xff]  ;;  %v1024_v35 = vld [vmem:[#allocation7 + $0x1dc8] sm:$0xff] }
 0x1ff   :  { %5111 = vmatpush1.bf16.msra.mxu1 %v5110_v62  ;;  %4921 = vmatprep.subr.bf16.mxu0 %v4920_v63  ;;  %v5128_v62 = vpack.c.bf16 %v770_v54, %v754_v53  ;;  %v769_v63 = vld [vmem:[#allocation7 + $0x15d0] sm:$0xff]  ;;  %v879_v53 = vld [vmem:[#allocation7 + $0x1940] sm:$0xff]  ;;  %v4968_v44 = vpack.c.bf16 %v1024_v35, %v1008_v34 }
 0x200   :  { %5113 = vmatprep.subr.bf16.mxu1 %v5112_v1  ;;  %2746 = vmatprep.mubr.f32.mxu0 %v5953_v57  ;;  %v802_v1 = vld [vmem:[#allocation7 + $0x16d8] sm:$0xff]  ;;  %v5130_v3 = vpack.c.bf16 %v769_v63, %v753_v61  ;;  %v895_v54 = vld [vmem:[#allocation7 + $0x19c0] sm:$0xff] }
 0x201   :  { %2959 = vmatprep.mubr.f32.mxu1 %v5953_v57  ;;  %v914_v61 = vld [vmem:[#allocation7 + $0x1a58] sm:$0xff]  ;;  %v4954_v63 = vpack.c.bf16 %v895_v54, %v879_v53  ;;  %v1040_v53 = vld [vmem:[#allocation7 + $0x1e48] sm:$0xff] }
 0x202   :  { %4923 = vmatpush1.bf16.msra.mxu0 %v4922_v8  ;;  %v785_v8 = vld [vmem:[#allocation7 + $0x1650] sm:$0xff]  ;;  %v1056_v54 = vld [vmem:[#allocation7 + $0x1ec8] sm:$0xff] }
 0x203   :  { %5115 = vmatpush1.bf16.msra.mxu1 %v5114_v9  ;;  %4925 = vmatprep.subr.bf16.mxu0 %v4924_v10  ;;  %v5132_v9 = vpack.c.bf16 %v802_v1, %v786_v50  ;;  %v801_v10 = vld [vmem:[#allocation7 + $0x16d0] sm:$0xff]  ;;  %v911_v50 = vld [vmem:[#allocation7 + $0x1a40] sm:$0xff]  ;;  %v4972_v60 = vpack.c.bf16 %v1056_v54, %v1040_v53 }
 0x204   :  { %5117 = vmatprep.subr.bf16.mxu1 %v5116_v18  ;;  %v834_v18 = vld [vmem:[#allocation7 + $0x17d8] sm:$0xff]  ;;  %v5134_v20 = vpack.c.bf16 %v801_v10, %v785_v8  ;;  %v927_v1 = vld [vmem:[#allocation7 + $0x1ac0] sm:$0xff] }
 0x205   :  { %v946_v8 = vld [vmem:[#allocation7 + $0x1b58] sm:$0xff]  ;;  %v4958_v10 = vpack.c.bf16 %v927_v1, %v911_v50  ;;  %v1072_v50 = vld [vmem:[#allocation7 + $0x1f48] sm:$0xff] }
 0x206   :  { %4927 = vmatpush1.bf16.msra.mxu0 %v4926_v26  ;;  %v817_v26 = vld [vmem:[#allocation7 + $0x1750] sm:$0xff]  ;;  %v1088_v1 = vld [vmem:[#allocation7 + $0x1fc8] sm:$0xff] }
 0x207   :  { %5119 = vmatpush1.bf16.msra.mxu1 %v5118_v23  ;;  %4929 = vmatprep.subr.bf16.mxu0 %v4928_v27  ;;  %v5136_v23 = vpack.c.bf16 %v834_v18, %v818_v16  ;;  %v833_v27 = vld [vmem:[#allocation7 + $0x17d0] sm:$0xff]  ;;  %v943_v16 = vld [vmem:[#allocation7 + $0x1b40] sm:$0xff]  ;;  %v4976_v6 = vpack.c.bf16 %v1088_v1, %v1072_v50 }
 0x208   :  { %5121 = vmatprep.subr.bf16.mxu1 %v5120_v29  ;;  %v866_v29 = vld [vmem:[#allocation7 + $0x18d8] sm:$0xff]  ;;  %v5138_v31 = vpack.c.bf16 %v833_v27, %v817_v26  ;;  %v959_v18 = vld [vmem:[#allocation7 + $0x1bc0] sm:$0xff] }
 0x209   :  { %v978_v26 = vld [vmem:[#allocation7 + $0x1c58] sm:$0xff]  ;;  %v4962_v27 = vpack.c.bf16 %v959_v18, %v943_v16  ;;  %v1104_v16 = vld [vmem:[#allocation7 + $0x2048] sm:$0xff] }
 0x20a   :  { %4931 = vmatpush1.bf16.msra.mxu0 %v4930_v38  ;;  %v849_v38 = vld [vmem:[#allocation7 + $0x1850] sm:$0xff]  ;;  %v1120_v18 = vld [vmem:[#allocation7 + $0x20c8] sm:$0xff] }
 0x20b   :  { %5123 = vmatpush1.bf16.msra.mxu1 %v5122_v37  ;;  %4933 = vmatprep.subr.bf16.mxu0 %v4932_v40  ;;  %v5140_v37 = vpack.c.bf16 %v866_v29, %v850_v13  ;;  %v865_v40 = vld [vmem:[#allocation7 + $0x18d0] sm:$0xff]  ;;  %v975_v13 = vld [vmem:[#allocation7 + $0x1c40] sm:$0xff]  ;;  %v4980_v24 = vpack.c.bf16 %v1120_v18, %v1104_v16 }
 0x20c   :  { %5125 = vmatprep.subr.bf16.mxu1 %v5124_v46  ;;  %v898_v46 = vld [vmem:[#allocation7 + $0x19d8] sm:$0xff]  ;;  %v5142_v51 = vpack.c.bf16 %v865_v40, %v849_v38  ;;  %v991_v29 = vld [vmem:[#allocation7 + $0x1cc0] sm:$0xff] }
 0x20d   :  { %v1010_v38 = vld [vmem:[#allocation7 + $0x1d58] sm:$0xff]  ;;  %v4966_v40 = vpack.c.bf16 %v991_v29, %v975_v13  ;;  %v1136_v13 = vld [vmem:[#allocation7 + $0x2148] sm:$0xff] }
 0x20e   :  { %4935 = vmatpush1.bf16.msra.mxu0 %v4934_v55  ;;  %v881_v55 = vld [vmem:[#allocation7 + $0x1950] sm:$0xff]  ;;  %v1152_v29 = vld [vmem:[#allocation7 + $0x21c8] sm:$0xff] }
 0x20f   :  { %5127 = vmatpush1.bf16.msra.mxu1 %v5126_v56  ;;  %4937 = vmatprep.subr.bf16.mxu0 %v4936_v58  ;;  %v5144_v56 = vpack.c.bf16 %v898_v46, %v882_v45  ;;  %v897_v58 = vld [vmem:[#allocation7 + $0x19d0] sm:$0xff]  ;;  %v1007_v45 = vld [vmem:[#allocation7 + $0x1d40] sm:$0xff]  ;;  %v4984_v35 = vpack.c.bf16 %v1152_v29, %v1136_v13 }
 0x210   :  { %5129 = vmatprep.subr.bf16.mxu1 %v5128_v62  ;;  %v930_v62 = vld [vmem:[#allocation7 + $0x1ad8] sm:$0xff]  ;;  %v5146_v0 = vpack.c.bf16 %v897_v58, %v881_v55  ;;  %v1023_v46 = vld [vmem:[#allocation7 + $0x1dc0] sm:$0xff] }
 0x211   :  { %v1042_v55 = vld [vmem:[#allocation7 + $0x1e58] sm:$0xff]  ;;  %v4970_v58 = vpack.c.bf16 %v1023_v46, %v1007_v45  ;;  %v1168_v45 = vld [vmem:[#allocation7 + $0x2248] sm:$0xff] }
 0x212   :  { %4939 = vmatpush1.bf16.msra.mxu0 %v4938_v2  ;;  %v913_v2 = vld [vmem:[#allocation7 + $0x1a50] sm:$0xff]  ;;  %v1184_v46 = vld [vmem:[#allocation7 + $0x22c8] sm:$0xff] }
 0x213   :  { %5131 = vmatpush1.bf16.msra.mxu1 %v5130_v3  ;;  %4941 = vmatprep.subr.bf16.mxu0 %v4940_v4  ;;  %v5148_v3 = vpack.c.bf16 %v930_v62, %v914_v61  ;;  %v929_v4 = vld [vmem:[#allocation7 + $0x1ad0] sm:$0xff]  ;;  %v1039_v61 = vld [vmem:[#allocation7 + $0x1e40] sm:$0xff]  ;;  %v4988_v54 = vpack.c.bf16 %v1184_v46, %v1168_v45 }
 0x214   :  { %5133 = vmatprep.subr.bf16.mxu1 %v5132_v9  ;;  %v962_v9 = vld [vmem:[#allocation7 + $0x1bd8] sm:$0xff]  ;;  %v5150_v11 = vpack.c.bf16 %v929_v4, %v913_v2  ;;  %v1055_v62 = vld [vmem:[#allocation7 + $0x1ec0] sm:$0xff] }
 0x215   :  { %v1074_v2 = vld [vmem:[#allocation7 + $0x1f58] sm:$0xff]  ;;  %v4974_v4 = vpack.c.bf16 %v1055_v62, %v1039_v61  ;;  %v1200_v61 = vld [vmem:[#allocation7 + $0x2348] sm:$0xff] }
 0x216   :  { %4943 = vmatpush1.bf16.msra.mxu0 %v4942_v19  ;;  %v945_v19 = vld [vmem:[#allocation7 + $0x1b50] sm:$0xff]  ;;  %v1216_v62 = vld [vmem:[#allocation7 + $0x23c8] sm:$0xff] }
 0x217   :  { %5135 = vmatpush1.bf16.msra.mxu1 %v5134_v20  ;;  %4945 = vmatprep.subr.bf16.mxu0 %v4944_v21  ;;  %v5152_v20 = vpack.c.bf16 %v962_v9, %v946_v8  ;;  %v961_v21 = vld [vmem:[#allocation7 + $0x1bd0] sm:$0xff]  ;;  %v1071_v8 = vld [vmem:[#allocation7 + $0x1f40] sm:$0xff]  ;;  %v4992_v1 = vpack.c.bf16 %v1216_v62, %v1200_v61 }
 0x218   :  { %5137 = vmatprep.subr.bf16.mxu1 %v5136_v23  ;;  %v994_v23 = vld [vmem:[#allocation7 + $0x1cd8] sm:$0xff]  ;;  %v5154_v28 = vpack.c.bf16 %v961_v21, %v945_v19  ;;  %v1087_v9 = vld [vmem:[#allocation7 + $0x1fc0] sm:$0xff] }
 0x219   :  { %v1106_v19 = vld [vmem:[#allocation7 + $0x2058] sm:$0xff]  ;;  %v4978_v21 = vpack.c.bf16 %v1087_v9, %v1071_v8  ;;  %v1232_v8 = vld [vmem:[#allocation7 + $0x2448] sm:$0xff] }
 0x21a   :  { %4947 = vmatpush1.bf16.msra.mxu0 %v4946_v30  ;;  %v977_v30 = vld [vmem:[#allocation7 + $0x1c50] sm:$0xff]  ;;  %v1248_v9 = vld [vmem:[#allocation7 + $0x24c8] sm:$0xff] }
 0x21b   :  { %5139 = vmatpush1.bf16.msra.mxu1 %v5138_v31  ;;  %4949 = vmatprep.subr.bf16.mxu0 %v4948_v33  ;;  %v5156_v31 = vpack.c.bf16 %v994_v23, %v978_v26  ;;  %v993_v33 = vld [vmem:[#allocation7 + $0x1cd0] sm:$0xff]  ;;  %v1103_v26 = vld [vmem:[#allocation7 + $0x2040] sm:$0xff]  ;;  %v4996_v18 = vpack.c.bf16 %v1248_v9, %v1232_v8 }
 0x21c   :  { %5141 = vmatprep.subr.bf16.mxu1 %v5140_v37  ;;  %v1026_v37 = vld [vmem:[#allocation7 + $0x1dd8] sm:$0xff]  ;;  %v5158_v43 = vpack.c.bf16 %v993_v33, %v977_v30  ;;  %v1119_v23 = vld [vmem:[#allocation7 + $0x20c0] sm:$0xff] }
 0x21d   :  { %v1138_v30 = vld [vmem:[#allocation7 + $0x2158] sm:$0xff]  ;;  %v4982_v33 = vpack.c.bf16 %v1119_v23, %v1103_v26  ;;  %v1264_v26 = vld [vmem:[#allocation7 + $0x2548] sm:$0xff] }
 0x21e   :  { %4951 = vmatpush1.bf16.msra.mxu0 %v4950_v48  ;;  %v1009_v48 = vld [vmem:[#allocation7 + $0x1d50] sm:$0xff]  ;;  %v1280_v23 = vld [vmem:[#allocation7 + $0x25c8] sm:$0xff] }
 0x21f   :  { %5143 = vmatpush1.bf16.msra.mxu1 %v5142_v51  ;;  %4953 = vmatprep.subr.bf16.mxu0 %v4952_v52  ;;  %v5160_v51 = vpack.c.bf16 %v1026_v37, %v1010_v38  ;;  %v1025_v52 = vld [vmem:[#allocation7 + $0x1dd0] sm:$0xff]  ;;  %v1135_v38 = vld [vmem:[#allocation7 + $0x2140] sm:$0xff]  ;;  %v5000_v29 = vpack.c.bf16 %v1280_v23, %v1264_v26 }
 0x220   :  { %5145 = vmatprep.subr.bf16.mxu1 %v5144_v56  ;;  %v1058_v56 = vld [vmem:[#allocation7 + $0x1ed8] sm:$0xff]  ;;  %v5162_v59 = vpack.c.bf16 %v1025_v52, %v1009_v48  ;;  %v1151_v37 = vld [vmem:[#allocation7 + $0x21c0] sm:$0xff] }
 0x221   :  { %v1170_v48 = vld [vmem:[#allocation7 + $0x2258] sm:$0xff]  ;;  %v4986_v52 = vpack.c.bf16 %v1151_v37, %v1135_v38  ;;  %v1296_v38 = vld [vmem:[#allocation7 + $0x2648] sm:$0xff] }
 0x222   :  { %4955 = vmatpush1.bf16.msra.mxu0 %v4954_v63  ;;  %v1041_v63 = vld [vmem:[#allocation7 + $0x1e50] sm:$0xff]  ;;  %v1312_v37 = vld [vmem:[#allocation7 + $0x26c8] sm:$0xff] }
 0x223   :  { %5147 = vmatpush1.bf16.msra.mxu1 %v5146_v0  ;;  %4957 = vmatprep.subr.bf16.mxu0 %v4956_v49  ;;  %v5164_v0 = vpack.c.bf16 %v1058_v56, %v1042_v55  ;;  %v1057_v49 = vld [vmem:[#allocation7 + $0x1ed0] sm:$0xff]  ;;  %v1167_v55 = vld [vmem:[#allocation7 + $0x2240] sm:$0xff]  ;;  %v5004_v46 = vpack.c.bf16 %v1312_v37, %v1296_v38 }
 0x224   :  { %5149 = vmatprep.subr.bf16.mxu1 %v5148_v3  ;;  %v1090_v3 = vld [vmem:[#allocation7 + $0x1fd8] sm:$0xff]  ;;  %v5166_v5 = vpack.c.bf16 %v1057_v49, %v1041_v63  ;;  %v1183_v56 = vld [vmem:[#allocation7 + $0x22c0] sm:$0xff] }
 0x225   :  { %v1202_v63 = vld [vmem:[#allocation7 + $0x2358] sm:$0xff]  ;;  %v4990_v49 = vpack.c.bf16 %v1183_v56, %v1167_v55  ;;  %v1328_v55 = vld [vmem:[#allocation7 + $0x2748] sm:$0xff] }
 0x226   :  { %4959 = vmatpush1.bf16.msra.mxu0 %v4958_v10  ;;  %v1073_v10 = vld [vmem:[#allocation7 + $0x1f50] sm:$0xff]  ;;  %v1344_v56 = vld [vmem:[#allocation7 + $0x27c8] sm:$0xff] }
 0x227   :  { %5151 = vmatpush1.bf16.msra.mxu1 %v5150_v11  ;;  %4961 = vmatprep.subr.bf16.mxu0 %v4960_v15  ;;  %v5168_v11 = vpack.c.bf16 %v1090_v3, %v1074_v2  ;;  %v1089_v15 = vld [vmem:[#allocation7 + $0x1fd0] sm:$0xff]  ;;  %v1199_v2 = vld [vmem:[#allocation7 + $0x2340] sm:$0xff]  ;;  %v5008_v62 = vpack.c.bf16 %v1344_v56, %v1328_v55 }
 0x228   :  { %5153 = vmatprep.subr.bf16.mxu1 %v5152_v20  ;;  %v1122_v20 = vld [vmem:[#allocation7 + $0x20d8] sm:$0xff]  ;;  %v5170_v22 = vpack.c.bf16 %v1089_v15, %v1073_v10  ;;  %v1215_v3 = vld [vmem:[#allocation7 + $0x23c0] sm:$0xff] }
 0x229   :  { %v1234_v10 = vld [vmem:[#allocation7 + $0x2458] sm:$0xff]  ;;  %v4994_v15 = vpack.c.bf16 %v1215_v3, %v1199_v2  ;;  %v1360_v2 = vld [vmem:[#allocation7 + $0x2848] sm:$0xff] }
 0x22a   :  { %4963 = vmatpush1.bf16.msra.mxu0 %v4962_v27  ;;  %v1105_v27 = vld [vmem:[#allocation7 + $0x2050] sm:$0xff]  ;;  %v1376_v3 = vld [vmem:[#allocation7 + $0x28c8] sm:$0xff] }
 0x22b   :  { %5155 = vmatpush1.bf16.msra.mxu1 %v5154_v28  ;;  %4965 = vmatprep.subr.bf16.mxu0 %v4964_v12  ;;  %v5172_v28 = vpack.c.bf16 %v1122_v20, %v1106_v19  ;;  %v1121_v12 = vld [vmem:[#allocation7 + $0x20d0] sm:$0xff]  ;;  %v1231_v19 = vld [vmem:[#allocation7 + $0x2440] sm:$0xff]  ;;  %v5012_v9 = vpack.c.bf16 %v1376_v3, %v1360_v2 }
 0x22c   :  { %5157 = vmatprep.subr.bf16.mxu1 %v5156_v31  ;;  %v1154_v31 = vld [vmem:[#allocation7 + $0x21d8] sm:$0xff]  ;;  %v5174_v34 = vpack.c.bf16 %v1121_v12, %v1105_v27  ;;  %v1247_v20 = vld [vmem:[#allocation7 + $0x24c0] sm:$0xff] }
 0x22d   :  { %v1266_v27 = vld [vmem:[#allocation7 + $0x2558] sm:$0xff]  ;;  %v4998_v12 = vpack.c.bf16 %v1247_v20, %v1231_v19  ;;  %v1392_v19 = vld [vmem:[#allocation7 + $0x2948] sm:$0xff] }
 0x22e   :  { %4967 = vmatpush1.bf16.msra.mxu0 %v4966_v40  ;;  %v1137_v40 = vld [vmem:[#allocation7 + $0x2150] sm:$0xff]  ;;  %v1408_v20 = vld [vmem:[#allocation7 + $0x29c8] sm:$0xff] }
 0x22f   :  { %5159 = vmatpush1.bf16.msra.mxu1 %v5158_v43  ;;  %4969 = vmatprep.subr.bf16.mxu0 %v4968_v44  ;;  %v5176_v43 = vpack.c.bf16 %v1154_v31, %v1138_v30  ;;  %v1153_v44 = vld [vmem:[#allocation7 + $0x21d0] sm:$0xff]  ;;  %v1263_v30 = vld [vmem:[#allocation7 + $0x2540] sm:$0xff]  ;;  %v5016_v23 = vpack.c.bf16 %v1408_v20, %v1392_v19 }
 0x230   :  { %5161 = vmatprep.subr.bf16.mxu1 %v5160_v51  ;;  %v1186_v51 = vld [vmem:[#allocation7 + $0x22d8] sm:$0xff]  ;;  %v5178_v53 = vpack.c.bf16 %v1153_v44, %v1137_v40  ;;  %v1279_v31 = vld [vmem:[#allocation7 + $0x25c0] sm:$0xff] }
 0x231   :  { %v1298_v40 = vld [vmem:[#allocation7 + $0x2658] sm:$0xff]  ;;  %v5002_v44 = vpack.c.bf16 %v1279_v31, %v1263_v30  ;;  %v1424_v30 = vld [vmem:[#allocation7 + $0x2a48] sm:$0xff] }
 0x232   :  { %4971 = vmatpush1.bf16.msra.mxu0 %v4970_v58  ;;  %v1169_v58 = vld [vmem:[#allocation7 + $0x2250] sm:$0xff]  ;;  %v1440_v31 = vld [vmem:[#allocation7 + $0x2ac8] sm:$0xff] }
 0x233   :  { %5163 = vmatpush1.bf16.msra.mxu1 %v5162_v59  ;;  %4973 = vmatprep.subr.bf16.mxu0 %v4972_v60  ;;  %v5180_v59 = vpack.c.bf16 %v1186_v51, %v1170_v48  ;;  %v1185_v60 = vld [vmem:[#allocation7 + $0x22d0] sm:$0xff]  ;;  %v1295_v48 = vld [vmem:[#allocation7 + $0x2640] sm:$0xff]  ;;  %v5020_v37 = vpack.c.bf16 %v1440_v31, %v1424_v30 }
 0x234   :  { %5165 = vmatprep.subr.bf16.mxu1 %v5164_v0  ;;  %v1218_v0 = vld [vmem:[#allocation7 + $0x23d8] sm:$0xff]  ;;  %v5182_v50 = vpack.c.bf16 %v1185_v60, %v1169_v58  ;;  %v1311_v51 = vld [vmem:[#allocation7 + $0x26c0] sm:$0xff] }
 0x235   :  { %v1330_v58 = vld [vmem:[#allocation7 + $0x2758] sm:$0xff]  ;;  %v5006_v60 = vpack.c.bf16 %v1311_v51, %v1295_v48  ;;  %v1456_v48 = vld [vmem:[#allocation7 + $0x2b48] sm:$0xff] }
 0x236   :  { %4975 = vmatpush1.bf16.msra.mxu0 %v4974_v4  ;;  %v1201_v4 = vld [vmem:[#allocation7 + $0x2350] sm:$0xff]  ;;  %v1472_v51 = vld [vmem:[#allocation7 + $0x2bc8] sm:$0xff] }
 0x237   :  { %5167 = vmatpush1.bf16.msra.mxu1 %v5166_v5  ;;  %4977 = vmatprep.subr.bf16.mxu0 %v4976_v6  ;;  %v5184_v5 = vpack.c.bf16 %v1218_v0, %v1202_v63  ;;  %v1217_v6 = vld [vmem:[#allocation7 + $0x23d0] sm:$0xff]  ;;  %v1327_v63 = vld [vmem:[#allocation7 + $0x2740] sm:$0xff]  ;;  %v5024_v56 = vpack.c.bf16 %v1472_v51, %v1456_v48 }
 0x238   :  { %5169 = vmatprep.subr.bf16.mxu1 %v5168_v11  ;;  %v1250_v11 = vld [vmem:[#allocation7 + $0x24d8] sm:$0xff]  ;;  %v5186_v16 = vpack.c.bf16 %v1217_v6, %v1201_v4  ;;  %v1343_v0 = vld [vmem:[#allocation7 + $0x27c0] sm:$0xff] }
 0x239   :  { %v1362_v4 = vld [vmem:[#allocation7 + $0x2858] sm:$0xff]  ;;  %v5010_v6 = vpack.c.bf16 %v1343_v0, %v1327_v63  ;;  %v1488_v63 = vld [vmem:[#allocation7 + $0x2c48] sm:$0xff] }
 0x23a   :  { %4979 = vmatpush1.bf16.msra.mxu0 %v4978_v21  ;;  %v1233_v21 = vld [vmem:[#allocation7 + $0x2450] sm:$0xff]  ;;  %v1504_v0 = vld [vmem:[#allocation7 + $0x2cc8] sm:$0xff] }
 0x23b   :  { %5171 = vmatpush1.bf16.msra.mxu1 %v5170_v22  ;;  %4981 = vmatprep.subr.bf16.mxu0 %v4980_v24  ;;  %v5188_v22 = vpack.c.bf16 %v1250_v11, %v1234_v10  ;;  %v1249_v24 = vld [vmem:[#allocation7 + $0x24d0] sm:$0xff]  ;;  %v1359_v10 = vld [vmem:[#allocation7 + $0x2840] sm:$0xff]  ;;  %v5028_v3 = vpack.c.bf16 %v1504_v0, %v1488_v63 }
 0x23c   :  { %5173 = vmatprep.subr.bf16.mxu1 %v5172_v28  ;;  %v1282_v28 = vld [vmem:[#allocation7 + $0x25d8] sm:$0xff]  ;;  %v5190_v13 = vpack.c.bf16 %v1249_v24, %v1233_v21  ;;  %v1375_v11 = vld [vmem:[#allocation7 + $0x28c0] sm:$0xff] }
 0x23d   :  { %2747 = vmatmul.mubr.f32.vlgmr.msra.gmra.mrb[4].mxu0 %v5959_v47  ;;  %v1394_v21 = vld [vmem:[#allocation7 + $0x2958] sm:$0xff]  ;;  %v5014_v24 = vpack.c.bf16 %v1375_v11, %v1359_v10  ;;  %v1520_v10 = vld [vmem:[#allocation7 + $0x2d48] sm:$0xff] }
 0x23e   :  { %4983 = vmatpush1.bf16.msra.mxu0 %v4982_v33  ;;  %2960 = vmatmul.mubr.f32.vlgmr.msra.gmra.mrb[4].mxu1 %v5959_v47  ;;  %v1265_v33 = vld [vmem:[#allocation7 + $0x2550] sm:$0xff]  ;;  %v1536_v11 = vld [vmem:[#allocation7 + $0x2dc8] sm:$0xff] }
 0x23f   :  { %5175 = vmatpush1.bf16.msra.mxu1 %v5174_v34  ;;  %4985 = vmatprep.subr.bf16.mxu0 %v4984_v35  ;;  %v5192_v34 = vpack.c.bf16 %v1282_v28, %v1266_v27  ;;  %v1281_v35 = vld [vmem:[#allocation7 + $0x25d0] sm:$0xff]  ;;  %v1391_v27 = vld [vmem:[#allocation7 + $0x2940] sm:$0xff]  ;;  %v5032_v20 = vpack.c.bf16 %v1536_v11, %v1520_v10 }
 0x240   :  { %5177 = vmatprep.subr.bf16.mxu1 %v5176_v43  ;;  %2817 = vmatprep.mubr.f32.mxu0 %v5971_v17  ;;  %v1314_v43 = vld [vmem:[#allocation7 + $0x26d8] sm:$0xff]  ;;  %v5194_v45 = vpack.c.bf16 %v1281_v35, %v1265_v33  ;;  %v1407_v28 = vld [vmem:[#allocation7 + $0x29c0] sm:$0xff] }
 0x241   :  { %3030 = vmatprep.mubr.f32.mxu1 %v5971_v17  ;;  %v1426_v33 = vld [vmem:[#allocation7 + $0x2a58] sm:$0xff]  ;;  %v5018_v35 = vpack.c.bf16 %v1407_v28, %v1391_v27  ;;  %v1552_v27 = vld [vmem:[#allocation7 + $0x2e48] sm:$0xff] }
 0x242   :  { %4987 = vmatpush1.bf16.msra.mxu0 %v4986_v52  ;;  %v1297_v52 = vld [vmem:[#allocation7 + $0x2650] sm:$0xff]  ;;  %v1568_v28 = vld [vmem:[#allocation7 + $0x2ec8] sm:$0xff] }
 0x243   :  { %5179 = vmatpush1.bf16.msra.mxu1 %v5178_v53  ;;  %4989 = vmatprep.subr.bf16.mxu0 %v4988_v54  ;;  %v5196_v53 = vpack.c.bf16 %v1314_v43, %v1298_v40  ;;  %v1313_v54 = vld [vmem:[#allocation7 + $0x26d0] sm:$0xff]  ;;  %v1423_v40 = vld [vmem:[#allocation7 + $0x2a40] sm:$0xff]  ;;  %v5036_v31 = vpack.c.bf16 %v1568_v28, %v1552_v27 }
 0x244   :  { %5181 = vmatprep.subr.bf16.mxu1 %v5180_v59  ;;  %v1346_v59 = vld [vmem:[#allocation7 + $0x27d8] sm:$0xff]  ;;  %v5198_v61 = vpack.c.bf16 %v1313_v54, %v1297_v52  ;;  %v1439_v43 = vld [vmem:[#allocation7 + $0x2ac0] sm:$0xff] }
 0x245   :  { %v1458_v52 = vld [vmem:[#allocation7 + $0x2b58] sm:$0xff]  ;;  %v5022_v54 = vpack.c.bf16 %v1439_v43, %v1423_v40  ;;  %v1584_v40 = vld [vmem:[#allocation7 + $0x2f48] sm:$0xff] }
 0x246   :  { %4991 = vmatpush1.bf16.msra.mxu0 %v4990_v49  ;;  %v1329_v49 = vld [vmem:[#allocation7 + $0x2750] sm:$0xff]  ;;  %v1600_v43 = vld [vmem:[#allocation7 + $0x2fc8] sm:$0xff] }
 0x247   :  { %5183 = vmatpush1.bf16.msra.mxu1 %v5182_v50  ;;  %4993 = vmatprep.subr.bf16.mxu0 %v4992_v1  ;;  %v5200_v50 = vpack.c.bf16 %v1346_v59, %v1330_v58  ;;  %v1345_v1 = vld [vmem:[#allocation7 + $0x27d0] sm:$0xff]  ;;  %v1455_v58 = vld [vmem:[#allocation7 + $0x2b40] sm:$0xff]  ;;  %v5040_v51 = vpack.c.bf16 %v1600_v43, %v1584_v40 }
 0x248   :  { %5185 = vmatprep.subr.bf16.mxu1 %v5184_v5  ;;  %v1378_v5 = vld [vmem:[#allocation7 + $0x28d8] sm:$0xff]  ;;  %v5202_v8 = vpack.c.bf16 %v1345_v1, %v1329_v49  ;;  %v1471_v59 = vld [vmem:[#allocation7 + $0x2bc0] sm:$0xff] }
 0x249   :  { %v1490_v49 = vld [vmem:[#allocation7 + $0x2c58] sm:$0xff]  ;;  %v5026_v1 = vpack.c.bf16 %v1471_v59, %v1455_v58  ;;  %v84_v58 = vld [vmem:[#allocation7 + $0x68] sm:$0xff] }
 0x24a   :  { %4995 = vmatpush1.bf16.msra.mxu0 %v4994_v15  ;;  %v1361_v15 = vld [vmem:[#allocation7 + $0x2850] sm:$0xff]  ;;  %v100_v59 = vld [vmem:[#allocation7 + $0xe8] sm:$0xff] }
 0x24b   :  { %5187 = vmatpush1.bf16.msra.mxu1 %v5186_v16  ;;  %4997 = vmatprep.subr.bf16.mxu0 %v4996_v18  ;;  %v5204_v16 = vpack.c.bf16 %v1378_v5, %v1362_v4  ;;  %v1377_v18 = vld [vmem:[#allocation7 + $0x28d0] sm:$0xff]  ;;  %v1487_v4 = vld [vmem:[#allocation7 + $0x2c40] sm:$0xff]  ;;  %v5236_v0 = vpack.c.bf16 %v100_v59, %v84_v58 }
 0x24c   :  { %5189 = vmatprep.subr.bf16.mxu1 %v5188_v22  ;;  %v1410_v22 = vld [vmem:[#allocation7 + $0x29d8] sm:$0xff]  ;;  %v5206_v26 = vpack.c.bf16 %v1377_v18, %v1361_v15  ;;  %v1503_v5 = vld [vmem:[#allocation7 + $0x2cc0] sm:$0xff] }
 0x24d   :  { %v1522_v15 = vld [vmem:[#allocation7 + $0x2d58] sm:$0xff]  ;;  %v5030_v18 = vpack.c.bf16 %v1503_v5, %v1487_v4  ;;  %v116_v4 = vld [vmem:[#allocation7 + $0x168] sm:$0xff]  ;;  %v211_v59 = vld [vmem:[#allocation7 + $0x460] sm:$0xff] }
 0x24e   :  { %4999 = vmatpush1.bf16.msra.mxu0 %v4998_v12  ;;  %v1393_v12 = vld [vmem:[#allocation7 + $0x2950] sm:$0xff]  ;;  %v132_v5 = vld [vmem:[#allocation7 + $0x1e8] sm:$0xff] }
 0x24f   :  { %5191 = vmatpush1.bf16.msra.mxu1 %v5190_v13  ;;  %5001 = vmatprep.subr.bf16.mxu0 %v5000_v29  ;;  %v5208_v13 = vpack.c.bf16 %v1410_v22, %v1394_v21  ;;  %v1409_v29 = vld [vmem:[#allocation7 + $0x29d0] sm:$0xff]  ;;  %v1519_v21 = vld [vmem:[#allocation7 + $0x2d40] sm:$0xff]  ;;  %v5240_v11 = vpack.c.bf16 %v132_v5, %v116_v4 }
 0x250   :  { %5193 = vmatprep.subr.bf16.mxu1 %v5192_v34  ;;  %v1442_v34 = vld [vmem:[#allocation7 + $0x2ad8] sm:$0xff]  ;;  %v5210_v38 = vpack.c.bf16 %v1409_v29, %v1393_v12  ;;  %v1535_v22 = vld [vmem:[#allocation7 + $0x2dc0] sm:$0xff] }
 0x251   :  { %v1554_v12 = vld [vmem:[#allocation7 + $0x2e58] sm:$0xff]  ;;  %v5034_v29 = vpack.c.bf16 %v1535_v22, %v1519_v21  ;;  %v148_v21 = vld [vmem:[#allocation7 + $0x268] sm:$0xff]  ;;  %v243_v5 = vld [vmem:[#allocation7 + $0x560] sm:$0xff] }
 0x252   :  { %5003 = vmatpush1.bf16.msra.mxu0 %v5002_v44  ;;  %v1425_v44 = vld [vmem:[#allocation7 + $0x2a50] sm:$0xff]  ;;  %v164_v22 = vld [vmem:[#allocation7 + $0x2e8] sm:$0xff] }
 0x253   :  { %5195 = vmatpush1.bf16.msra.mxu1 %v5194_v45  ;;  %5005 = vmatprep.subr.bf16.mxu0 %v5004_v46  ;;  %v5212_v45 = vpack.c.bf16 %v1442_v34, %v1426_v33  ;;  %v1441_v46 = vld [vmem:[#allocation7 + $0x2ad0] sm:$0xff]  ;;  %v1551_v33 = vld [vmem:[#allocation7 + $0x2e40] sm:$0xff]  ;;  %v5244_v28 = vpack.c.bf16 %v164_v22, %v148_v21 }
 0x254   :  { %5197 = vmatprep.subr.bf16.mxu1 %v5196_v53  ;;  %v1474_v53 = vld [vmem:[#allocation7 + $0x2bd8] sm:$0xff]  ;;  %v5214_v55 = vpack.c.bf16 %v1441_v46, %v1425_v44  ;;  %v1567_v34 = vld [vmem:[#allocation7 + $0x2ec0] sm:$0xff] }
 0x255   :  { %v1586_v44 = vld [vmem:[#allocation7 + $0x2f58] sm:$0xff]  ;;  %v5038_v46 = vpack.c.bf16 %v1567_v34, %v1551_v33  ;;  %v180_v33 = vld [vmem:[#allocation7 + $0x368] sm:$0xff]  ;;  %v275_v22 = vld [vmem:[#allocation7 + $0x660] sm:$0xff] }
 0x256   :  { %5007 = vmatpush1.bf16.msra.mxu0 %v5006_v60  ;;  %v1457_v60 = vld [vmem:[#allocation7 + $0x2b50] sm:$0xff]  ;;  %v196_v34 = vld [vmem:[#allocation7 + $0x3e8] sm:$0xff] }
 0x257   :  { %5199 = vmatpush1.bf16.msra.mxu1 %v5198_v61  ;;  %5009 = vmatprep.subr.bf16.mxu0 %v5008_v62  ;;  %v5216_v61 = vpack.c.bf16 %v1474_v53, %v1458_v52  ;;  %v1473_v62 = vld [vmem:[#allocation7 + $0x2bd0] sm:$0xff]  ;;  %v1583_v52 = vld [vmem:[#allocation7 + $0x2f40] sm:$0xff]  ;;  %v5248_v43 = vpack.c.bf16 %v196_v34, %v180_v33  ;;  %v326_v33 = vld [vmem:[#allocation7 + $0x7f8] sm:$0xff] }
 0x258   :  { %5201 = vmatprep.subr.bf16.mxu1 %v5200_v50  ;;  %v1506_v50 = vld [vmem:[#allocation7 + $0x2cd8] sm:$0xff]  ;;  %v5218_v2 = vpack.c.bf16 %v1473_v62, %v1457_v60  ;;  %v1599_v53 = vld [vmem:[#allocation7 + $0x2fc0] sm:$0xff] }
 0x259   :  { %v86_v60 = vld [vmem:[#allocation7 + $0x78] sm:$0xff]  ;;  %v5042_v62 = vpack.c.bf16 %v1599_v53, %v1583_v52  ;;  %v212_v52 = vld [vmem:[#allocation7 + $0x468] sm:$0xff] }
 0x25a   :  { %5011 = vmatpush1.bf16.msra.mxu0 %v5010_v6  ;;  %v1489_v6 = vld [vmem:[#allocation7 + $0x2c50] sm:$0xff]  ;;  %v228_v53 = vld [vmem:[#allocation7 + $0x4e8] sm:$0xff] }
 0x25b   :  { %5203 = vmatpush1.bf16.msra.mxu1 %v5202_v8  ;;  %5013 = vmatprep.subr.bf16.mxu0 %v5012_v9  ;;  %v5220_v8 = vpack.c.bf16 %v1506_v50, %v1490_v49  ;;  %v1505_v9 = vld [vmem:[#allocation7 + $0x2cd0] sm:$0xff]  ;;  %v83_v49 = vld [vmem:[#allocation7 + $0x60] sm:$0xff]  ;;  %v5252_v58 = vpack.c.bf16 %v228_v53, %v212_v52  ;;  %v342_v52 = vld [vmem:[#allocation7 + $0x878] sm:$0xff] }
 0x25c   :  { %5205 = vmatprep.subr.bf16.mxu1 %v5204_v16  ;;  %v1538_v16 = vld [vmem:[#allocation7 + $0x2dd8] sm:$0xff]  ;;  %v5222_v19 = vpack.c.bf16 %v1505_v9, %v1489_v6  ;;  %v99_v50 = vld [vmem:[#allocation7 + $0xe0] sm:$0xff] }
 0x25d   :  { %v118_v6 = vld [vmem:[#allocation7 + $0x178] sm:$0xff]  ;;  %v5238_v9 = vpack.c.bf16 %v99_v50, %v83_v49  ;;  %v260_v49 = vld [vmem:[#allocation7 + $0x5e8] sm:$0xff] }
 0x25e   :  { %5015 = vmatpush1.bf16.msra.mxu0 %v5014_v24  ;;  %v1521_v24 = vld [vmem:[#allocation7 + $0x2d50] sm:$0xff]  ;;  %v246_v50 = vld [vmem:[#allocation7 + $0x578] sm:$0xff] }
 0x25f   :  { %5207 = vmatpush1.bf16.msra.mxu1 %v5206_v26  ;;  %5017 = vmatprep.subr.bf16.mxu0 %v5016_v23  ;;  %v5224_v26 = vpack.c.bf16 %v1538_v16, %v1522_v15  ;;  %v1537_v23 = vld [vmem:[#allocation7 + $0x2dd0] sm:$0xff]  ;;  %v115_v15 = vld [vmem:[#allocation7 + $0x160] sm:$0xff]  ;;  %v358_v53 = vld [vmem:[#allocation7 + $0x8f8] sm:$0xff] }
 0x260   :  { %5209 = vmatprep.subr.bf16.mxu1 %v5208_v13  ;;  %v1570_v13 = vld [vmem:[#allocation7 + $0x2ed8] sm:$0xff]  ;;  %v5226_v30 = vpack.c.bf16 %v1537_v23, %v1521_v24  ;;  %v131_v16 = vld [vmem:[#allocation7 + $0x1e0] sm:$0xff] }
 0x261   :  { %v150_v24 = vld [vmem:[#allocation7 + $0x278] sm:$0xff]  ;;  %v5242_v23 = vpack.c.bf16 %v131_v16, %v115_v15  ;;  %v292_v15 = vld [vmem:[#allocation7 + $0x6e8] sm:$0xff] }
 0x262   :  { %5019 = vmatpush1.bf16.msra.mxu0 %v5018_v35  ;;  %v1553_v35 = vld [vmem:[#allocation7 + $0x2e50] sm:$0xff]  ;;  %v278_v16 = vld [vmem:[#allocation7 + $0x678] sm:$0xff] }
 0x263   :  { %5211 = vmatpush1.bf16.msra.mxu1 %v5210_v38  ;;  %5021 = vmatprep.subr.bf16.mxu0 %v5020_v37  ;;  %v5228_v38 = vpack.c.bf16 %v1570_v13, %v1554_v12  ;;  %v1569_v37 = vld [vmem:[#allocation7 + $0x2ed0] sm:$0xff]  ;;  %v147_v12 = vld [vmem:[#allocation7 + $0x260] sm:$0xff] }
 0x264   :  { %5213 = vmatprep.subr.bf16.mxu1 %v5212_v45  ;;  %v1602_v45 = vld [vmem:[#allocation7 + $0x2fd8] sm:$0xff]  ;;  %v5230_v48 = vpack.c.bf16 %v1569_v37, %v1553_v35  ;;  %v163_v13 = vld [vmem:[#allocation7 + $0x2e0] sm:$0xff] }
 0x265   :  { %v182_v35 = vld [vmem:[#allocation7 + $0x378] sm:$0xff]  ;;  %v5246_v37 = vpack.c.bf16 %v163_v13, %v147_v12  ;;  %v308_v12 = vld [vmem:[#allocation7 + $0x768] sm:$0xff] }
 0x266   :  { %5023 = vmatpush1.bf16.msra.mxu0 %v5022_v54  ;;  %v1585_v54 = vld [vmem:[#allocation7 + $0x2f50] sm:$0xff]  ;;  %v324_v13 = vld [vmem:[#allocation7 + $0x7e8] sm:$0xff] }
 0x267   :  { %5215 = vmatpush1.bf16.msra.mxu1 %v5214_v55  ;;  %5025 = vmatprep.subr.bf16.mxu0 %v5024_v56  ;;  %v5232_v55 = vpack.c.bf16 %v1602_v45, %v1586_v44  ;;  %v1601_v56 = vld [vmem:[#allocation7 + $0x2fd0] sm:$0xff]  ;;  %v179_v44 = vld [vmem:[#allocation7 + $0x360] sm:$0xff] }
 0x268   :  { %5217 = vmatprep.subr.bf16.mxu1 %v5216_v61  ;;  %v102_v61 = vld [vmem:[#allocation7 + $0xf8] sm:$0xff]  ;;  %v5234_v63 = vpack.c.bf16 %v1601_v56, %v1585_v54  ;;  %v195_v45 = vld [vmem:[#allocation7 + $0x3e0] sm:$0xff] }
 0x269   :  { %v214_v54 = vld [vmem:[#allocation7 + $0x478] sm:$0xff]  ;;  %v5250_v56 = vpack.c.bf16 %v195_v45, %v179_v44  ;;  %v309_v44 = vld [vmem:[#allocation7 + $0x770] sm:$0xff] }
 0x26a   :  { %5027 = vmatpush1.bf16.msra.mxu0 %v5026_v1  ;;  %v85_v1 = vld [vmem:[#allocation7 + $0x70] sm:$0xff] }
 0x26b   :  { %5219 = vmatpush1.bf16.msra.mxu1 %v5218_v2  ;;  %5029 = vmatprep.subr.bf16.mxu0 %v5028_v3  ;;  %v5428_v2 = vpack.c.bf16 %v102_v61, %v86_v60  ;;  %v101_v3 = vld [vmem:[#allocation7 + $0xf0] sm:$0xff]  ;;  %v227_v60 = vld [vmem:[#allocation7 + $0x4e0] sm:$0xff] }
 0x26c   :  { %5221 = vmatprep.subr.bf16.mxu1 %v5220_v8  ;;  %v134_v8 = vld [vmem:[#allocation7 + $0x1f8] sm:$0xff]  ;;  %v5430_v10 = vpack.c.bf16 %v101_v3, %v85_v1  ;;  %v213_v61 = vld [vmem:[#allocation7 + $0x470] sm:$0xff] }
 0x26d   :  { %v262_v1 = vld [vmem:[#allocation7 + $0x5f8] sm:$0xff] }
 0x26e   :  { %5031 = vmatpush1.bf16.msra.mxu0 %v5030_v18  ;;  %v117_v18 = vld [vmem:[#allocation7 + $0x170] sm:$0xff] }
 0x26f   :  { %5223 = vmatpush1.bf16.msra.mxu1 %v5222_v19  ;;  %5033 = vmatprep.subr.bf16.mxu0 %v5032_v20  ;;  %v5432_v19 = vpack.c.bf16 %v134_v8, %v118_v6  ;;  %v133_v20 = vld [vmem:[#allocation7 + $0x1f0] sm:$0xff]  ;;  %v259_v6 = vld [vmem:[#allocation7 + $0x5e0] sm:$0xff] }
 0x270   :  { %5225 = vmatprep.subr.bf16.mxu1 %v5224_v26  ;;  %v166_v26 = vld [vmem:[#allocation7 + $0x2f8] sm:$0xff]  ;;  %v5434_v27 = vpack.c.bf16 %v133_v20, %v117_v18  ;;  %v245_v8 = vld [vmem:[#allocation7 + $0x570] sm:$0xff] }
 0x271   :  { %v294_v18 = vld [vmem:[#allocation7 + $0x6f8] sm:$0xff] }
 0x272   :  { %5035 = vmatpush1.bf16.msra.mxu0 %v5034_v29  ;;  %v149_v29 = vld [vmem:[#allocation7 + $0x270] sm:$0xff] }
 0x273   :  { %5227 = vmatpush1.bf16.msra.mxu1 %v5226_v30  ;;  %5037 = vmatprep.subr.bf16.mxu0 %v5036_v31  ;;  %v5436_v30 = vpack.c.bf16 %v166_v26, %v150_v24  ;;  %v165_v31 = vld [vmem:[#allocation7 + $0x2f0] sm:$0xff]  ;;  %v291_v24 = vld [vmem:[#allocation7 + $0x6e0] sm:$0xff] }
 0x274   :  { %5229 = vmatprep.subr.bf16.mxu1 %v5228_v38  ;;  %v198_v38 = vld [vmem:[#allocation7 + $0x3f8] sm:$0xff]  ;;  %v5438_v40 = vpack.c.bf16 %v165_v31, %v149_v29  ;;  %v277_v26 = vld [vmem:[#allocation7 + $0x670] sm:$0xff] }
 0x275   :  { %v310_v31 = vld [vmem:[#allocation7 + $0x778] sm:$0xff] }
 0x276   :  { %5039 = vmatpush1.bf16.msra.mxu0 %v5038_v46  ;;  %v181_v46 = vld [vmem:[#allocation7 + $0x370] sm:$0xff]  ;;  %v5456_v45 = vpack.c.bf16 %v326_v33, %v310_v31 }
 0x277   :  { %5231 = vmatpush1.bf16.msra.mxu1 %v5230_v48  ;;  %5041 = vmatprep.subr.bf16.mxu0 %v5040_v51  ;;  %v5440_v48 = vpack.c.bf16 %v198_v38, %v182_v35  ;;  %v197_v51 = vld [vmem:[#allocation7 + $0x3f0] sm:$0xff]  ;;  %v5262_v35 = vpack.c.bf16 %v291_v24, %v275_v22 }
 0x278   :  { %5233 = vmatprep.subr.bf16.mxu1 %v5232_v55  ;;  %v230_v55 = vld [vmem:[#allocation7 + $0x4f8] sm:$0xff]  ;;  %v405_v22 = vld [vmem:[#allocation7 + $0xa70] sm:$0xff] }
 0x27a   :  { %5043 = vmatpush1.bf16.msra.mxu0 %v5042_v62  ;;  %v5444_v62 = vpack.c.bf16 %v230_v55, %v214_v54 }
 0x27b   :  { %5235 = vmatpush1.bf16.msra.mxu1 %v5234_v63  ;;  %5237 = vmatprep.subr.bf16.mxu0 %v5236_v0  ;;  %v229_v63 = vld [vmem:[#allocation7 + $0x4f0] sm:$0xff]  ;;  %v244_v0 = vld [vmem:[#allocation7 + $0x568] sm:$0xff] }
 0x27c   :  { %5429 = vmatprep.subr.bf16.mxu1 %v5428_v2  ;;  %v5254_v2 = vpack.c.bf16 %v227_v60, %v211_v59  ;;  %v5446_v3 = vpack.c.bf16 %v229_v63, %v213_v61  ;;  %v5256_v4 = vpack.c.bf16 %v260_v49, %v244_v0  ;;  %v341_v59 = vld [vmem:[#allocation7 + $0x870] sm:$0xff]  ;;  %v5460_v60 = vpack.c.bf16 %v358_v53, %v342_v52  ;;  %v388_v63 = vld [vmem:[#allocation7 + $0x9e8] sm:$0xff]  ;;  %v374_v0 = vld [vmem:[#allocation7 + $0x978] sm:$0xff] }
 0x27d   :  { %2818 = vmatmul.mubr.f32.vlgmr.msra.gmra.mrb[4].mxu0 %v5977_v14  ;;  %v357_v61 = vld [vmem:[#allocation7 + $0x8f0] sm:$0xff]  ;;  %v390_v49 = vld [vmem:[#allocation7 + $0x9f8] sm:$0xff] }
 0x27e   :  { %3031 = vmatmul.mubr.f32.vlgmr.msra.gmra.mrb[4].mxu1 %v5977_v14  ;;  %5239 = vmatpush1.bf16.msra.mxu0 %v5238_v9  ;;  %v5448_v9 = vpack.c.bf16 %v262_v1, %v246_v50  ;;  %v5462_v1 = vpack.c.bf16 %v357_v61, %v341_v59  ;;  %v485_v59 = vld [vmem:[#allocation7 + $0xcf0] sm:$0xff]  ;;  %v516_v61 = vld [vmem:[#allocation7 + $0xde8] sm:$0xff] }
 0x27f   :  { %5431 = vmatpush1.bf16.msra.mxu1 %v5430_v10  ;;  %5241 = vmatprep.subr.bf16.mxu0 %v5240_v11  ;;  %v261_v10 = vld [vmem:[#allocation7 + $0x5f0] sm:$0xff]  ;;  %v276_v11 = vld [vmem:[#allocation7 + $0x668] sm:$0xff] }
 0x280   :  { %5433 = vmatprep.subr.bf16.mxu1 %v5432_v19  ;;  %3101 = vmatprep.mubr.f32.mxu0 %v5935_v41  ;;  %v5258_v19 = vpack.c.bf16 %v259_v6, %v243_v5  ;;  %v5450_v20 = vpack.c.bf16 %v261_v10, %v245_v8  ;;  %v5260_v21 = vpack.c.bf16 %v292_v15, %v276_v11  ;;  %v373_v5 = vld [vmem:[#allocation7 + $0x970] sm:$0xff]  ;;  %v420_v10 = vld [vmem:[#allocation7 + $0xae8] sm:$0xff]  ;;  %v406_v11 = vld [vmem:[#allocation7 + $0xa78] sm:$0xff] }
 0x281   :  { %3314 = vmatprep.mubr.f32.mxu1 %v5935_v41  ;;  %v5442_v41 = vpack.c.bf16 %v197_v51, %v181_v46  ;;  %v325_v46 = vld [vmem:[#allocation7 + $0x7f0] sm:$0xff]  ;;  %v356_v51 = vld [vmem:[#allocation7 + $0x8e8] sm:$0xff]  ;;  %v5464_v6 = vpack.c.bf16 %v390_v49, %v374_v0  ;;  %v422_v15 = vld [vmem:[#allocation7 + $0xaf8] sm:$0xff] }
 0x282   :  { %5243 = vmatpush1.bf16.msra.mxu0 %v5242_v23  ;;  %v5458_v55 = vpack.c.bf16 %v325_v46, %v309_v44  ;;  %v389_v8 = vld [vmem:[#allocation7 + $0x9f0] sm:$0xff]  ;;  %v5468_v24 = vpack.c.bf16 %v422_v15, %v406_v11  ;;  %v484_v46 = vld [vmem:[#allocation7 + $0xce8] sm:$0xff] }
 0x283   :  { %5435 = vmatpush1.bf16.msra.mxu1 %v5434_v27  ;;  %5245 = vmatprep.subr.bf16.mxu0 %v5244_v28  ;;  %v5452_v27 = vpack.c.bf16 %v294_v18, %v278_v16  ;;  %v293_v28 = vld [vmem:[#allocation7 + $0x6f0] sm:$0xff]  ;;  %v5466_v18 = vpack.c.bf16 %v389_v8, %v373_v5  ;;  %v548_v8 = vld [vmem:[#allocation7 + $0xee8] sm:$0xff] }
 0x284   :  { %5437 = vmatprep.subr.bf16.mxu1 %v5436_v30  ;;  %v5454_v38 = vpack.c.bf16 %v293_v28, %v277_v26  ;;  %v421_v26 = vld [vmem:[#allocation7 + $0xaf0] sm:$0xff]  ;;  %v452_v28 = vld [vmem:[#allocation7 + $0xbe8] sm:$0xff] }
 0x285   :  { %v5470_v33 = vpack.c.bf16 %v421_v26, %v405_v22  ;;  %v453_v44 = vld [vmem:[#allocation7 + $0xbf0] sm:$0xff]  ;;  %v580_v26 = vld [vmem:[#allocation7 + $0xfe8] sm:$0xff] }
 0x286   :  { %5247 = vmatpush1.bf16.msra.mxu0 %v5246_v37  ;;  %v5264_v37 = vpack.c.bf16 %v324_v13, %v308_v12  ;;  %v438_v12 = vld [vmem:[#allocation7 + $0xb78] sm:$0xff]  ;;  %v517_v5 = vld [vmem:[#allocation7 + $0xdf0] sm:$0xff] }
 0x287   :  { %5439 = vmatpush1.bf16.msra.mxu1 %v5438_v40  ;;  %5249 = vmatprep.subr.bf16.mxu0 %v5248_v43  ;;  %v307_v40 = vld [vmem:[#allocation7 + $0x760] sm:$0xff]  ;;  %v454_v13 = vld [vmem:[#allocation7 + $0xbf8] sm:$0xff]  ;;  %v549_v22 = vld [vmem:[#allocation7 + $0xef0] sm:$0xff] }
 0x288   :  { %5441 = vmatprep.subr.bf16.mxu1 %v5440_v48  ;;  %v323_v43 = vld [vmem:[#allocation7 + $0x7e0] sm:$0xff]  ;;  %v340_v48 = vld [vmem:[#allocation7 + $0x868] sm:$0xff] }
 0x289   :  { %v5266_v54 = vpack.c.bf16 %v323_v43, %v307_v40  ;;  %v437_v40 = vld [vmem:[#allocation7 + $0xb70] sm:$0xff]  ;;  %v5472_v43 = vpack.c.bf16 %v454_v13, %v438_v12 }
 0x28a   :  { %5251 = vmatpush1.bf16.msra.mxu0 %v5250_v56  ;;  %v5268_v56 = vpack.c.bf16 %v356_v51, %v340_v48  ;;  %v470_v48 = vld [vmem:[#allocation7 + $0xc78] sm:$0xff]  ;;  %v5474_v53 = vpack.c.bf16 %v453_v44, %v437_v40  ;;  %v581_v40 = vld [vmem:[#allocation7 + $0xff0] sm:$0xff]  ;;  %v612_v44 = vld [vmem:[#allocation7 + $0x10e8] sm:$0xff] }
 0x28b   :  { %5443 = vmatpush1.bf16.msra.mxu1 %v5442_v41  ;;  %5253 = vmatprep.subr.bf16.mxu0 %v5252_v58  ;;  %v339_v41 = vld [vmem:[#allocation7 + $0x860] sm:$0xff]  ;;  %v486_v51 = vld [vmem:[#allocation7 + $0xcf8] sm:$0xff] }
 0x28c   :  { %5445 = vmatprep.subr.bf16.mxu1 %v5444_v62  ;;  %v355_v58 = vld [vmem:[#allocation7 + $0x8e0] sm:$0xff]  ;;  %v372_v62 = vld [vmem:[#allocation7 + $0x968] sm:$0xff] }
 0x28d   :  { %v5270_v50 = vpack.c.bf16 %v355_v58, %v339_v41  ;;  %v469_v41 = vld [vmem:[#allocation7 + $0xc70] sm:$0xff]  ;;  %v5476_v58 = vpack.c.bf16 %v486_v51, %v470_v48 }
 0x28e   :  { %5255 = vmatpush1.bf16.msra.mxu0 %v5254_v2  ;;  %v5272_v2 = vpack.c.bf16 %v388_v63, %v372_v62  ;;  %v502_v62 = vld [vmem:[#allocation7 + $0xd78] sm:$0xff]  ;;  %v5478_v49 = vpack.c.bf16 %v485_v59, %v469_v41  ;;  %v613_v41 = vld [vmem:[#allocation7 + $0x10f0] sm:$0xff]  ;;  %v644_v59 = vld [vmem:[#allocation7 + $0x11e8] sm:$0xff] }
 0x28f   :  { %5447 = vmatpush1.bf16.msra.mxu1 %v5446_v3  ;;  %5257 = vmatprep.subr.bf16.mxu0 %v5256_v4  ;;  %v371_v3 = vld [vmem:[#allocation7 + $0x960] sm:$0xff]  ;;  %v518_v63 = vld [vmem:[#allocation7 + $0xdf8] sm:$0xff] }
 0x290   :  { %v6015_v23 = vpop.f32.mrb[2].mxu0  ;;  %5449 = vmatprep.subr.bf16.mxu1 %v5448_v9  ;;  %v387_v4 = vld [vmem:[#allocation7 + $0x9e0] sm:$0xff]  ;;  %v404_v9 = vld [vmem:[#allocation7 + $0xa68] sm:$0xff] }
 0x291   :  { %v6017_v29 = vpop.f32.mrb[2].mxu1  ;;  %v6019_v30 = vpop.f32.mrb[3].mxu0  ;;  %v5274_v16 = vpack.c.bf16 %v387_v4, %v371_v3  ;;  %v501_v3 = vld [vmem:[#allocation7 + $0xd70] sm:$0xff]  ;;  %v5480_v4 = vpack.c.bf16 %v518_v63, %v502_v62 }
 0x292   :  { %v6021_v34 = vpop.f32.mrb[3].mxu1  ;;  %5259 = vmatpush1.bf16.msra.mxu0 %v5258_v19  ;;  %v5276_v19 = vpack.c.bf16 %v420_v10, %v404_v9  ;;  %v534_v9 = vld [vmem:[#allocation7 + $0xe78] sm:$0xff]  ;;  %v5482_v15 = vpack.c.bf16 %v517_v5, %v501_v3  ;;  %v645_v3 = vld [vmem:[#allocation7 + $0x11f0] sm:$0xff]  ;;  %v676_v5 = vld [vmem:[#allocation7 + $0x12e8] sm:$0xff] }
 0x293   :  { %5451 = vmatpush1.bf16.msra.mxu1 %v5450_v20  ;;  %5261 = vmatprep.subr.bf16.mxu0 %v5260_v21  ;;  %v403_v20 = vld [vmem:[#allocation7 + $0xa60] sm:$0xff]  ;;  %v550_v10 = vld [vmem:[#allocation7 + $0xef8] sm:$0xff] }
 0x294   :  { %5453 = vmatprep.subr.bf16.mxu1 %v5452_v27  ;;  %v419_v21 = vld [vmem:[#allocation7 + $0xae0] sm:$0xff]  ;;  %v436_v27 = vld [vmem:[#allocation7 + $0xb68] sm:$0xff] }
 0x295   :  { %v5278_v31 = vpack.c.bf16 %v419_v21, %v403_v20  ;;  %v533_v20 = vld [vmem:[#allocation7 + $0xe70] sm:$0xff]  ;;  %v5484_v21 = vpack.c.bf16 %v550_v10, %v534_v9 }
 0x296   :  { %5263 = vmatpush1.bf16.msra.mxu0 %v5262_v35  ;;  %v5280_v35 = vpack.c.bf16 %v452_v28, %v436_v27  ;;  %v566_v27 = vld [vmem:[#allocation7 + $0xf78] sm:$0xff]  ;;  %v5486_v13 = vpack.c.bf16 %v549_v22, %v533_v20  ;;  %v677_v20 = vld [vmem:[#allocation7 + $0x12f0] sm:$0xff]  ;;  %v708_v22 = vld [vmem:[#allocation7 + $0x13e8] sm:$0xff] }
 0x297   :  { %5455 = vmatpush1.bf16.msra.mxu1 %v5454_v38  ;;  %5265 = vmatprep.subr.bf16.mxu0 %v5264_v37  ;;  %v435_v38 = vld [vmem:[#allocation7 + $0xb60] sm:$0xff]  ;;  %v582_v28 = vld [vmem:[#allocation7 + $0xff8] sm:$0xff] }
 0x298   :  { %5457 = vmatprep.subr.bf16.mxu1 %v5456_v45  ;;  %v451_v37 = vld [vmem:[#allocation7 + $0xbe0] sm:$0xff]  ;;  %v468_v45 = vld [vmem:[#allocation7 + $0xc68] sm:$0xff] }
 0x299   :  { %v5282_v52 = vpack.c.bf16 %v451_v37, %v435_v38  ;;  %v565_v38 = vld [vmem:[#allocation7 + $0xf70] sm:$0xff]  ;;  %v5488_v37 = vpack.c.bf16 %v582_v28, %v566_v27 }
 0x29a   :  { %5267 = vmatpush1.bf16.msra.mxu0 %v5266_v54  ;;  %v5284_v54 = vpack.c.bf16 %v484_v46, %v468_v45  ;;  %v598_v45 = vld [vmem:[#allocation7 + $0x1078] sm:$0xff]  ;;  %v5490_v51 = vpack.c.bf16 %v581_v40, %v565_v38  ;;  %v724_v38 = vld [vmem:[#allocation7 + $0x1468] sm:$0xff] }
 0x29b   :  { %5459 = vmatpush1.bf16.msra.mxu1 %v5458_v55  ;;  %5269 = vmatprep.subr.bf16.mxu0 %v5268_v56  ;;  %v467_v55 = vld [vmem:[#allocation7 + $0xc60] sm:$0xff]  ;;  %v614_v46 = vld [vmem:[#allocation7 + $0x10f8] sm:$0xff] }
 0x29c   :  { %5461 = vmatprep.subr.bf16.mxu1 %v5460_v60  ;;  %v483_v56 = vld [vmem:[#allocation7 + $0xce0] sm:$0xff]  ;;  %v500_v60 = vld [vmem:[#allocation7 + $0xd68] sm:$0xff]  ;;  %v726_v40 = vld [vmem:[#allocation7 + $0x1478] sm:$0xff] }
 0x29d   :  { %v5286_v0 = vpack.c.bf16 %v483_v56, %v467_v55  ;;  %v597_v55 = vld [vmem:[#allocation7 + $0x1070] sm:$0xff]  ;;  %v5492_v56 = vpack.c.bf16 %v614_v46, %v598_v45  ;;  %v723_v46 = vld [vmem:[#allocation7 + $0x1460] sm:$0xff] }
 0x29e   :  { %5271 = vmatpush1.bf16.msra.mxu0 %v5270_v50  ;;  %v5288_v50 = vpack.c.bf16 %v516_v61, %v500_v60  ;;  %v630_v60 = vld [vmem:[#allocation7 + $0x1178] sm:$0xff]  ;;  %v5494_v63 = vpack.c.bf16 %v613_v41, %v597_v55  ;;  %v772_v55 = vld [vmem:[#allocation7 + $0x15e8] sm:$0xff] }
 0x29f   :  { %5463 = vmatpush1.bf16.msra.mxu1 %v5462_v1  ;;  %5273 = vmatprep.subr.bf16.mxu0 %v5272_v2  ;;  %v499_v1 = vld [vmem:[#allocation7 + $0xd60] sm:$0xff]  ;;  %v646_v61 = vld [vmem:[#allocation7 + $0x11f8] sm:$0xff] }
 0x2a0   :  { %5465 = vmatprep.subr.bf16.mxu1 %v5464_v6  ;;  %v515_v2 = vld [vmem:[#allocation7 + $0xde0] sm:$0xff]  ;;  %v532_v6 = vld [vmem:[#allocation7 + $0xe68] sm:$0xff]  ;;  %v774_v41 = vld [vmem:[#allocation7 + $0x15f8] sm:$0xff] }
 0x2a1   :  { %v5290_v11 = vpack.c.bf16 %v515_v2, %v499_v1  ;;  %v629_v1 = vld [vmem:[#allocation7 + $0x1170] sm:$0xff]  ;;  %v5496_v2 = vpack.c.bf16 %v646_v61, %v630_v60  ;;  %v755_v61 = vld [vmem:[#allocation7 + $0x1560] sm:$0xff] }
 0x2a2   :  { %5275 = vmatpush1.bf16.msra.mxu0 %v5274_v16  ;;  %v5292_v16 = vpack.c.bf16 %v548_v8, %v532_v6  ;;  %v662_v6 = vld [vmem:[#allocation7 + $0x1278] sm:$0xff]  ;;  %v5498_v10 = vpack.c.bf16 %v645_v3, %v629_v1  ;;  %v804_v1 = vld [vmem:[#allocation7 + $0x16e8] sm:$0xff] }
 0x2a3   :  { %5467 = vmatpush1.bf16.msra.mxu1 %v5466_v18  ;;  %5277 = vmatprep.subr.bf16.mxu0 %v5276_v19  ;;  %v531_v18 = vld [vmem:[#allocation7 + $0xe60] sm:$0xff]  ;;  %v678_v8 = vld [vmem:[#allocation7 + $0x12f8] sm:$0xff] }
 0x2a4   :  { %5469 = vmatprep.subr.bf16.mxu1 %v5468_v24  ;;  %v547_v19 = vld [vmem:[#allocation7 + $0xee0] sm:$0xff]  ;;  %v564_v24 = vld [vmem:[#allocation7 + $0xf68] sm:$0xff]  ;;  %v806_v3 = vld [vmem:[#allocation7 + $0x16f8] sm:$0xff] }
 0x2a5   :  { %v5294_v12 = vpack.c.bf16 %v547_v19, %v531_v18  ;;  %v661_v18 = vld [vmem:[#allocation7 + $0x1270] sm:$0xff]  ;;  %v5500_v19 = vpack.c.bf16 %v678_v8, %v662_v6  ;;  %v787_v8 = vld [vmem:[#allocation7 + $0x1660] sm:$0xff] }
 0x2a6   :  { %5279 = vmatpush1.bf16.msra.mxu0 %v5278_v31  ;;  %v5296_v31 = vpack.c.bf16 %v580_v26, %v564_v24  ;;  %v694_v24 = vld [vmem:[#allocation7 + $0x1378] sm:$0xff]  ;;  %v5502_v27 = vpack.c.bf16 %v677_v20, %v661_v18  ;;  %v836_v18 = vld [vmem:[#allocation7 + $0x17e8] sm:$0xff] }
 0x2a7   :  { %5471 = vmatpush1.bf16.msra.mxu1 %v5470_v33  ;;  %5281 = vmatprep.subr.bf16.mxu0 %v5280_v35  ;;  %v563_v33 = vld [vmem:[#allocation7 + $0xf60] sm:$0xff]  ;;  %v710_v26 = vld [vmem:[#allocation7 + $0x13f8] sm:$0xff] }
 0x2a8   :  { %5473 = vmatprep.subr.bf16.mxu1 %v5472_v43  ;;  %v579_v35 = vld [vmem:[#allocation7 + $0xfe0] sm:$0xff]  ;;  %v596_v43 = vld [vmem:[#allocation7 + $0x1068] sm:$0xff]  ;;  %v838_v20 = vld [vmem:[#allocation7 + $0x17f8] sm:$0xff] }
 0x2a9   :  { %v5298_v48 = vpack.c.bf16 %v579_v35, %v563_v33  ;;  %v5504_v33 = vpack.c.bf16 %v710_v26, %v694_v24  ;;  %v709_v35 = vld [vmem:[#allocation7 + $0x13f0] sm:$0xff]  ;;  %v819_v26 = vld [vmem:[#allocation7 + $0x1760] sm:$0xff] }
 0x2aa   :  { %5283 = vmatpush1.bf16.msra.mxu0 %v5282_v52  ;;  %v5300_v52 = vpack.c.bf16 %v612_v44, %v596_v43  ;;  %v742_v43 = vld [vmem:[#allocation7 + $0x14f8] sm:$0xff] }
 0x2ab   :  { %5475 = vmatpush1.bf16.msra.mxu1 %v5474_v53  ;;  %5285 = vmatprep.subr.bf16.mxu0 %v5284_v54  ;;  %v595_v53 = vld [vmem:[#allocation7 + $0x1060] sm:$0xff] }
 0x2ac   :  { %5477 = vmatprep.subr.bf16.mxu1 %v5476_v58  ;;  %v611_v54 = vld [vmem:[#allocation7 + $0x10e0] sm:$0xff]  ;;  %v628_v58 = vld [vmem:[#allocation7 + $0x1168] sm:$0xff] }
 0x2ad   :  { %v5302_v62 = vpack.c.bf16 %v611_v54, %v595_v53  ;;  %v741_v53 = vld [vmem:[#allocation7 + $0x14f0] sm:$0xff]  ;;  %v756_v54 = vld [vmem:[#allocation7 + $0x1568] sm:$0xff] }
 0x2ae   :  { %5287 = vmatpush1.bf16.msra.mxu0 %v5286_v0  ;;  %v5304_v0 = vpack.c.bf16 %v644_v59, %v628_v58  ;;  %v5320_v60 = vpack.c.bf16 %v772_v55, %v756_v54 }
 0x2af   :  { %5479 = vmatpush1.bf16.msra.mxu1 %v5478_v49  ;;  %5289 = vmatprep.subr.bf16.mxu0 %v5288_v50  ;;  %v627_v49 = vld [vmem:[#allocation7 + $0x1160] sm:$0xff] }
 0x2b0   :  { %5481 = vmatprep.subr.bf16.mxu1 %v5480_v4  ;;  %v643_v50 = vld [vmem:[#allocation7 + $0x11e0] sm:$0xff]  ;;  %v660_v4 = vld [vmem:[#allocation7 + $0x1268] sm:$0xff] }
 0x2b1   :  { %v5306_v9 = vpack.c.bf16 %v643_v50, %v627_v49  ;;  %v773_v49 = vld [vmem:[#allocation7 + $0x15f0] sm:$0xff]  ;;  %v788_v50 = vld [vmem:[#allocation7 + $0x1668] sm:$0xff] }
 0x2b2   :  { %5291 = vmatpush1.bf16.msra.mxu0 %v5290_v11  ;;  %v5308_v11 = vpack.c.bf16 %v676_v5, %v660_v4  ;;  %v5324_v6 = vpack.c.bf16 %v804_v1, %v788_v50 }
 0x2b3   :  { %5483 = vmatpush1.bf16.msra.mxu1 %v5482_v15  ;;  %5293 = vmatprep.subr.bf16.mxu0 %v5292_v16  ;;  %v659_v15 = vld [vmem:[#allocation7 + $0x1260] sm:$0xff] }
 0x2b4   :  { %5485 = vmatprep.subr.bf16.mxu1 %v5484_v21  ;;  %v675_v16 = vld [vmem:[#allocation7 + $0x12e0] sm:$0xff]  ;;  %v692_v21 = vld [vmem:[#allocation7 + $0x1368] sm:$0xff] }
 0x2b5   :  { %v5312_v28 = vpack.c.bf16 %v708_v22, %v692_v21 }
 0x2b6   :  { %5295 = vmatpush1.bf16.msra.mxu0 %v5294_v12  ;;  %v691_v12 = vld [vmem:[#allocation7 + $0x1360] sm:$0xff] }
 0x2b7   :  { %5487 = vmatpush1.bf16.msra.mxu1 %v5486_v13  ;;  %5297 = vmatprep.subr.bf16.mxu0 %v5296_v31  ;;  %v707_v13 = vld [vmem:[#allocation7 + $0x13e0] sm:$0xff]  ;;  %v693_v31 = vld [vmem:[#allocation7 + $0x1370] sm:$0xff] }
 0x2b8   :  { %5489 = vmatprep.subr.bf16.mxu1 %v5488_v37  ;;  %v740_v37 = vld [vmem:[#allocation7 + $0x14e8] sm:$0xff]  ;;  %v5314_v44 = vpack.c.bf16 %v707_v13, %v691_v12  ;;  %v837_v12 = vld [vmem:[#allocation7 + $0x17f0] sm:$0xff] }
 0x2b9   :  { %v5316_v45 = vpack.c.bf16 %v740_v37, %v724_v38  ;;  %v852_v13 = vld [vmem:[#allocation7 + $0x1868] sm:$0xff] }
 0x2ba   :  { %5299 = vmatpush1.bf16.msra.mxu0 %v5298_v48  ;;  %v739_v48 = vld [vmem:[#allocation7 + $0x14e0] sm:$0xff] }
 0x2bb   :  { %5491 = vmatpush1.bf16.msra.mxu1 %v5490_v51  ;;  %5301 = vmatprep.subr.bf16.mxu0 %v5300_v52  ;;  %v725_v51 = vld [vmem:[#allocation7 + $0x1470] sm:$0xff]  ;;  %v5508_v52 = vpack.c.bf16 %v742_v43, %v726_v40  ;;  %v5318_v58 = vpack.c.bf16 %v739_v48, %v723_v46  ;;  %v851_v43 = vld [vmem:[#allocation7 + $0x1860] sm:$0xff]  ;;  %v884_v48 = vld [vmem:[#allocation7 + $0x1968] sm:$0xff] }
 0x2bc   :  { %5493 = vmatprep.subr.bf16.mxu1 %v5492_v56  ;;  %v758_v56 = vld [vmem:[#allocation7 + $0x1578] sm:$0xff]  ;;  %v5510_v59 = vpack.c.bf16 %v741_v53, %v725_v51  ;;  %v869_v46 = vld [vmem:[#allocation7 + $0x18f0] sm:$0xff]  ;;  %v900_v51 = vld [vmem:[#allocation7 + $0x19e8] sm:$0xff] }
 0x2bd   :  { %3102 = vmatmul.mubr.f32.vlgmr.msra.gmra.mrb[6].mxu0 %v5941_v25  ;;  %v902_v53 = vld [vmem:[#allocation7 + $0x19f8] sm:$0xff] }
 0x2be   :  { %5303 = vmatpush1.bf16.msra.mxu0 %v5302_v62  ;;  %3315 = vmatmul.mubr.f32.vlgmr.msra.gmra.mrb[6].mxu1 %v5941_v25  ;;  %v5310_v25 = vpack.c.bf16 %v675_v16, %v659_v15  ;;  %v771_v62 = vld [vmem:[#allocation7 + $0x15e0] sm:$0xff]  ;;  %v805_v15 = vld [vmem:[#allocation7 + $0x16f0] sm:$0xff]  ;;  %v820_v16 = vld [vmem:[#allocation7 + $0x1768] sm:$0xff] }
 0x2bf   :  { %5495 = vmatpush1.bf16.msra.mxu1 %v5494_v63  ;;  %5305 = vmatprep.subr.bf16.mxu0 %v5304_v0  ;;  %v757_v63 = vld [vmem:[#allocation7 + $0x1570] sm:$0xff]  ;;  %v5512_v0 = vpack.c.bf16 %v774_v41, %v758_v56  ;;  %v5322_v4 = vpack.c.bf16 %v771_v62, %v755_v61  ;;  %v5328_v24 = vpack.c.bf16 %v836_v18, %v820_v16  ;;  %v883_v41 = vld [vmem:[#allocation7 + $0x1960] sm:$0xff]  ;;  %v916_v62 = vld [vmem:[#allocation7 + $0x1a68] sm:$0xff] }
 0x2c0   :  { %5497 = vmatprep.subr.bf16.mxu1 %v5496_v2  ;;  %3172 = vmatprep.mubr.f32.mxu0 %v5953_v57  ;;  %v790_v2 = vld [vmem:[#allocation7 + $0x1678] sm:$0xff]  ;;  %v5514_v5 = vpack.c.bf16 %v773_v49, %v757_v63  ;;  %v5336_v56 = vpack.c.bf16 %v900_v51, %v884_v48  ;;  %v901_v61 = vld [vmem:[#allocation7 + $0x19f0] sm:$0xff]  ;;  %v932_v63 = vld [vmem:[#allocation7 + $0x1ae8] sm:$0xff] }
 0x2c1   :  { %3385 = vmatprep.mubr.f32.mxu1 %v5953_v57  ;;  %v5506_v57 = vpack.c.bf16 %v709_v35, %v693_v31  ;;  %v868_v31 = vld [vmem:[#allocation7 + $0x18e8] sm:$0xff]  ;;  %v870_v35 = vld [vmem:[#allocation7 + $0x18f8] sm:$0xff] }
 0x2c2   :  { %5307 = vmatpush1.bf16.msra.mxu0 %v5306_v9  ;;  %v803_v9 = vld [vmem:[#allocation7 + $0x16e0] sm:$0xff]  ;;  %v5332_v40 = vpack.c.bf16 %v868_v31, %v852_v13  ;;  %v934_v49 = vld [vmem:[#allocation7 + $0x1af8] sm:$0xff] }
 0x2c3   :  { %5499 = vmatpush1.bf16.msra.mxu1 %v5498_v10  ;;  %5309 = vmatprep.subr.bf16.mxu0 %v5308_v11  ;;  %v789_v10 = vld [vmem:[#allocation7 + $0x1670] sm:$0xff]  ;;  %v5516_v11 = vpack.c.bf16 %v806_v3, %v790_v2  ;;  %v5326_v21 = vpack.c.bf16 %v803_v9, %v787_v8  ;;  %v5340_v2 = vpack.c.bf16 %v932_v63, %v916_v62  ;;  %v915_v3 = vld [vmem:[#allocation7 + $0x1a60] sm:$0xff]  ;;  %v948_v9 = vld [vmem:[#allocation7 + $0x1b68] sm:$0xff] }
 0x2c4   :  { %5501 = vmatprep.subr.bf16.mxu1 %v5500_v19  ;;  %v822_v19 = vld [vmem:[#allocation7 + $0x1778] sm:$0xff]  ;;  %v5518_v22 = vpack.c.bf16 %v805_v15, %v789_v10  ;;  %v933_v8 = vld [vmem:[#allocation7 + $0x1af0] sm:$0xff]  ;;  %v964_v10 = vld [vmem:[#allocation7 + $0x1be8] sm:$0xff] }
 0x2c5   :  { %v966_v15 = vld [vmem:[#allocation7 + $0x1bf8] sm:$0xff] }
 0x2c6   :  { %5311 = vmatpush1.bf16.msra.mxu0 %v5310_v25  ;;  %v835_v25 = vld [vmem:[#allocation7 + $0x17e0] sm:$0xff] }
 0x2c7   :  { %5503 = vmatpush1.bf16.msra.mxu1 %v5502_v27  ;;  %5313 = vmatprep.subr.bf16.mxu0 %v5312_v28  ;;  %v821_v27 = vld [vmem:[#allocation7 + $0x1770] sm:$0xff]  ;;  %v5520_v28 = vpack.c.bf16 %v838_v20, %v822_v19  ;;  %v5330_v38 = vpack.c.bf16 %v835_v25, %v819_v26  ;;  %v5344_v19 = vpack.c.bf16 %v964_v10, %v948_v9  ;;  %v947_v20 = vld [vmem:[#allocation7 + $0x1b60] sm:$0xff]  ;;  %v980_v25 = vld [vmem:[#allocation7 + $0x1c68] sm:$0xff] }
 0x2c8   :  { %5505 = vmatprep.subr.bf16.mxu1 %v5504_v33  ;;  %v854_v33 = vld [vmem:[#allocation7 + $0x1878] sm:$0xff]  ;;  %v5522_v37 = vpack.c.bf16 %v837_v12, %v821_v27  ;;  %v965_v26 = vld [vmem:[#allocation7 + $0x1bf0] sm:$0xff]  ;;  %v996_v27 = vld [vmem:[#allocation7 + $0x1ce8] sm:$0xff] }
 0x2c9   :  { %v998_v12 = vld [vmem:[#allocation7 + $0x1cf8] sm:$0xff] }
 0x2ca   :  { %5315 = vmatpush1.bf16.msra.mxu0 %v5314_v44  ;;  %v867_v44 = vld [vmem:[#allocation7 + $0x18e0] sm:$0xff] }
 0x2cb   :  { %5507 = vmatpush1.bf16.msra.mxu1 %v5506_v57  ;;  %5317 = vmatprep.subr.bf16.mxu0 %v5316_v45  ;;  %v853_v57 = vld [vmem:[#allocation7 + $0x1870] sm:$0xff]  ;;  %v5524_v45 = vpack.c.bf16 %v870_v35, %v854_v33  ;;  %v5334_v54 = vpack.c.bf16 %v867_v44, %v851_v43  ;;  %v5348_v33 = vpack.c.bf16 %v996_v27, %v980_v25  ;;  %v979_v35 = vld [vmem:[#allocation7 + $0x1c60] sm:$0xff]  ;;  %v1012_v44 = vld [vmem:[#allocation7 + $0x1d68] sm:$0xff] }
 0x2cc   :  { %5509 = vmatprep.subr.bf16.mxu1 %v5508_v52  ;;  %v886_v52 = vld [vmem:[#allocation7 + $0x1978] sm:$0xff]  ;;  %v5526_v55 = vpack.c.bf16 %v869_v46, %v853_v57  ;;  %v997_v43 = vld [vmem:[#allocation7 + $0x1cf0] sm:$0xff]  ;;  %v1028_v57 = vld [vmem:[#allocation7 + $0x1de8] sm:$0xff] }
 0x2cd   :  { %v1030_v46 = vld [vmem:[#allocation7 + $0x1df8] sm:$0xff] }
 0x2ce   :  { %5319 = vmatpush1.bf16.msra.mxu0 %v5318_v58  ;;  %v899_v58 = vld [vmem:[#allocation7 + $0x19e0] sm:$0xff] }
 0x2cf   :  { %5511 = vmatpush1.bf16.msra.mxu1 %v5510_v59  ;;  %5321 = vmatprep.subr.bf16.mxu0 %v5320_v60  ;;  %v885_v59 = vld [vmem:[#allocation7 + $0x1970] sm:$0xff]  ;;  %v5528_v60 = vpack.c.bf16 %v902_v53, %v886_v52  ;;  %v5338_v50 = vpack.c.bf16 %v899_v58, %v883_v41  ;;  %v5352_v52 = vpack.c.bf16 %v1028_v57, %v1012_v44  ;;  %v1011_v53 = vld [vmem:[#allocation7 + $0x1d60] sm:$0xff]  ;;  %v1044_v58 = vld [vmem:[#allocation7 + $0x1e68] sm:$0xff] }
 0x2d0   :  { %5513 = vmatprep.subr.bf16.mxu1 %v5512_v0  ;;  %v918_v0 = vld [vmem:[#allocation7 + $0x1a78] sm:$0xff]  ;;  %v5530_v1 = vpack.c.bf16 %v901_v61, %v885_v59  ;;  %v1029_v41 = vld [vmem:[#allocation7 + $0x1df0] sm:$0xff]  ;;  %v1060_v59 = vld [vmem:[#allocation7 + $0x1ee8] sm:$0xff] }
 0x2d1   :  { %v1062_v61 = vld [vmem:[#allocation7 + $0x1ef8] sm:$0xff] }
 0x2d2   :  { %5323 = vmatpush1.bf16.msra.mxu0 %v5322_v4  ;;  %v931_v4 = vld [vmem:[#allocation7 + $0x1ae0] sm:$0xff] }
 0x2d3   :  { %5515 = vmatpush1.bf16.msra.mxu1 %v5514_v5  ;;  %5325 = vmatprep.subr.bf16.mxu0 %v5324_v6  ;;  %v917_v5 = vld [vmem:[#allocation7 + $0x1a70] sm:$0xff]  ;;  %v5532_v6 = vpack.c.bf16 %v934_v49, %v918_v0  ;;  %v5342_v16 = vpack.c.bf16 %v931_v4, %v915_v3  ;;  %v5356_v0 = vpack.c.bf16 %v1060_v59, %v1044_v58  ;;  %v1043_v49 = vld [vmem:[#allocation7 + $0x1e60] sm:$0xff]  ;;  %v1076_v4 = vld [vmem:[#allocation7 + $0x1f68] sm:$0xff] }
 0x2d4   :  { %5517 = vmatprep.subr.bf16.mxu1 %v5516_v11  ;;  %v950_v11 = vld [vmem:[#allocation7 + $0x1b78] sm:$0xff]  ;;  %v5534_v18 = vpack.c.bf16 %v933_v8, %v917_v5  ;;  %v1061_v3 = vld [vmem:[#allocation7 + $0x1ef0] sm:$0xff]  ;;  %v1092_v5 = vld [vmem:[#allocation7 + $0x1fe8] sm:$0xff] }
 0x2d5   :  { %v1094_v8 = vld [vmem:[#allocation7 + $0x1ff8] sm:$0xff] }
 0x2d6   :  { %5327 = vmatpush1.bf16.msra.mxu0 %v5326_v21  ;;  %v963_v21 = vld [vmem:[#allocation7 + $0x1be0] sm:$0xff] }
 0x2d7   :  { %5519 = vmatpush1.bf16.msra.mxu1 %v5518_v22  ;;  %5329 = vmatprep.subr.bf16.mxu0 %v5328_v24  ;;  %v949_v22 = vld [vmem:[#allocation7 + $0x1b70] sm:$0xff]  ;;  %v5536_v24 = vpack.c.bf16 %v966_v15, %v950_v11  ;;  %v5346_v13 = vpack.c.bf16 %v963_v21, %v947_v20  ;;  %v5360_v11 = vpack.c.bf16 %v1092_v5, %v1076_v4  ;;  %v1075_v15 = vld [vmem:[#allocation7 + $0x1f60] sm:$0xff]  ;;  %v1108_v21 = vld [vmem:[#allocation7 + $0x2068] sm:$0xff] }
 0x2d8   :  { %5521 = vmatprep.subr.bf16.mxu1 %v5520_v28  ;;  %v982_v28 = vld [vmem:[#allocation7 + $0x1c78] sm:$0xff]  ;;  %v5538_v31 = vpack.c.bf16 %v965_v26, %v949_v22  ;;  %v1093_v20 = vld [vmem:[#allocation7 + $0x1ff0] sm:$0xff]  ;;  %v1124_v22 = vld [vmem:[#allocation7 + $0x20e8] sm:$0xff] }
 0x2d9   :  { %v1126_v26 = vld [vmem:[#allocation7 + $0x20f8] sm:$0xff] }
 0x2da   :  { %5331 = vmatpush1.bf16.msra.mxu0 %v5330_v38  ;;  %v995_v38 = vld [vmem:[#allocation7 + $0x1ce0] sm:$0xff] }
 0x2db   :  { %5523 = vmatpush1.bf16.msra.mxu1 %v5522_v37  ;;  %5333 = vmatprep.subr.bf16.mxu0 %v5332_v40  ;;  %v981_v37 = vld [vmem:[#allocation7 + $0x1c70] sm:$0xff]  ;;  %v5540_v40 = vpack.c.bf16 %v998_v12, %v982_v28  ;;  %v5350_v48 = vpack.c.bf16 %v995_v38, %v979_v35  ;;  %v5364_v28 = vpack.c.bf16 %v1124_v22, %v1108_v21  ;;  %v1107_v12 = vld [vmem:[#allocation7 + $0x2060] sm:$0xff]  ;;  %v1140_v38 = vld [vmem:[#allocation7 + $0x2168] sm:$0xff] }
 0x2dc   :  { %5525 = vmatprep.subr.bf16.mxu1 %v5524_v45  ;;  %v1014_v45 = vld [vmem:[#allocation7 + $0x1d78] sm:$0xff]  ;;  %v5542_v51 = vpack.c.bf16 %v997_v43, %v981_v37  ;;  %v1125_v35 = vld [vmem:[#allocation7 + $0x20f0] sm:$0xff]  ;;  %v1156_v37 = vld [vmem:[#allocation7 + $0x21e8] sm:$0xff] }
 0x2dd   :  { %v1158_v43 = vld [vmem:[#allocation7 + $0x21f8] sm:$0xff]  ;;  %v1235_v22 = vld [vmem:[#allocation7 + $0x2460] sm:$0xff] }
 0x2de   :  { %5335 = vmatpush1.bf16.msra.mxu0 %v5334_v54  ;;  %v1027_v54 = vld [vmem:[#allocation7 + $0x1de0] sm:$0xff] }
 0x2df   :  { %5527 = vmatpush1.bf16.msra.mxu1 %v5526_v55  ;;  %5337 = vmatprep.subr.bf16.mxu0 %v5336_v56  ;;  %v1013_v55 = vld [vmem:[#allocation7 + $0x1d70] sm:$0xff]  ;;  %v5544_v56 = vpack.c.bf16 %v1030_v46, %v1014_v45  ;;  %v5354_v62 = vpack.c.bf16 %v1027_v54, %v1011_v53  ;;  %v5368_v45 = vpack.c.bf16 %v1156_v37, %v1140_v38  ;;  %v1139_v46 = vld [vmem:[#allocation7 + $0x2160] sm:$0xff]  ;;  %v1172_v54 = vld [vmem:[#allocation7 + $0x2268] sm:$0xff] }
 0x2e0   :  { %5529 = vmatprep.subr.bf16.mxu1 %v5528_v60  ;;  %v1046_v60 = vld [vmem:[#allocation7 + $0x1e78] sm:$0xff]  ;;  %v5546_v63 = vpack.c.bf16 %v1029_v41, %v1013_v55  ;;  %v1157_v53 = vld [vmem:[#allocation7 + $0x21f0] sm:$0xff]  ;;  %v1188_v55 = vld [vmem:[#allocation7 + $0x22e8] sm:$0xff] }
 0x2e1   :  { %v1190_v41 = vld [vmem:[#allocation7 + $0x22f8] sm:$0xff]  ;;  %v1267_v37 = vld [vmem:[#allocation7 + $0x2560] sm:$0xff] }
 0x2e2   :  { %5339 = vmatpush1.bf16.msra.mxu0 %v5338_v50  ;;  %v1059_v50 = vld [vmem:[#allocation7 + $0x1ee0] sm:$0xff] }
 0x2e3   :  { %5531 = vmatpush1.bf16.msra.mxu1 %v5530_v1  ;;  %5341 = vmatprep.subr.bf16.mxu0 %v5340_v2  ;;  %v1045_v1 = vld [vmem:[#allocation7 + $0x1e70] sm:$0xff]  ;;  %v5548_v2 = vpack.c.bf16 %v1062_v61, %v1046_v60  ;;  %v5358_v9 = vpack.c.bf16 %v1059_v50, %v1043_v49  ;;  %v5372_v60 = vpack.c.bf16 %v1188_v55, %v1172_v54  ;;  %v1171_v61 = vld [vmem:[#allocation7 + $0x2260] sm:$0xff]  ;;  %v1204_v50 = vld [vmem:[#allocation7 + $0x2368] sm:$0xff] }
 0x2e4   :  { %5533 = vmatprep.subr.bf16.mxu1 %v5532_v6  ;;  %v1078_v6 = vld [vmem:[#allocation7 + $0x1f78] sm:$0xff]  ;;  %v5550_v10 = vpack.c.bf16 %v1061_v3, %v1045_v1  ;;  %v1189_v49 = vld [vmem:[#allocation7 + $0x22f0] sm:$0xff]  ;;  %v1220_v1 = vld [vmem:[#allocation7 + $0x23e8] sm:$0xff] }
 0x2e5   :  { %v1222_v3 = vld [vmem:[#allocation7 + $0x23f8] sm:$0xff]  ;;  %v5376_v5 = vpack.c.bf16 %v1220_v1, %v1204_v50  ;;  %v1299_v55 = vld [vmem:[#allocation7 + $0x2660] sm:$0xff] }
 0x2e6   :  { %5343 = vmatpush1.bf16.msra.mxu0 %v5342_v16  ;;  %v1091_v16 = vld [vmem:[#allocation7 + $0x1fe0] sm:$0xff] }
 0x2e7   :  { %5535 = vmatpush1.bf16.msra.mxu1 %v5534_v18  ;;  %5345 = vmatprep.subr.bf16.mxu0 %v5344_v19  ;;  %v1077_v18 = vld [vmem:[#allocation7 + $0x1f70] sm:$0xff]  ;;  %v5552_v19 = vpack.c.bf16 %v1094_v8, %v1078_v6  ;;  %v5362_v25 = vpack.c.bf16 %v1091_v16, %v1075_v15  ;;  %v1203_v6 = vld [vmem:[#allocation7 + $0x2360] sm:$0xff]  ;;  %v1236_v15 = vld [vmem:[#allocation7 + $0x2468] sm:$0xff] }
 0x2e8   :  { %5537 = vmatprep.subr.bf16.mxu1 %v5536_v24  ;;  %v1110_v24 = vld [vmem:[#allocation7 + $0x2078] sm:$0xff]  ;;  %v5554_v27 = vpack.c.bf16 %v1093_v20, %v1077_v18  ;;  %v1219_v8 = vld [vmem:[#allocation7 + $0x23e0] sm:$0xff]  ;;  %v1252_v16 = vld [vmem:[#allocation7 + $0x24e8] sm:$0xff] }
 0x2e9   :  { %v1238_v18 = vld [vmem:[#allocation7 + $0x2478] sm:$0xff]  ;;  %v5378_v20 = vpack.c.bf16 %v1219_v8, %v1203_v6  ;;  %v5380_v21 = vpack.c.bf16 %v1252_v16, %v1236_v15  ;;  %v1331_v1 = vld [vmem:[#allocation7 + $0x2760] sm:$0xff]  ;;  %v1380_v6 = vld [vmem:[#allocation7 + $0x28e8] sm:$0xff] }
 0x2ea   :  { %5347 = vmatpush1.bf16.msra.mxu0 %v5346_v13  ;;  %v1123_v13 = vld [vmem:[#allocation7 + $0x20e0] sm:$0xff]  ;;  %v1366_v8 = vld [vmem:[#allocation7 + $0x2878] sm:$0xff] }
 0x2eb   :  { %5539 = vmatpush1.bf16.msra.mxu1 %v5538_v31  ;;  %5349 = vmatprep.subr.bf16.mxu0 %v5348_v33  ;;  %v1109_v31 = vld [vmem:[#allocation7 + $0x2070] sm:$0xff]  ;;  %v5556_v33 = vpack.c.bf16 %v1126_v26, %v1110_v24  ;;  %v5366_v44 = vpack.c.bf16 %v1123_v13, %v1107_v12  ;;  %v1251_v24 = vld [vmem:[#allocation7 + $0x24e0] sm:$0xff]  ;;  %v1284_v12 = vld [vmem:[#allocation7 + $0x25e8] sm:$0xff] }
 0x2ec   :  { %5541 = vmatprep.subr.bf16.mxu1 %v5540_v40  ;;  %v1142_v40 = vld [vmem:[#allocation7 + $0x2178] sm:$0xff]  ;;  %v5558_v57 = vpack.c.bf16 %v1125_v35, %v1109_v31  ;;  %v1237_v26 = vld [vmem:[#allocation7 + $0x2470] sm:$0xff]  ;;  %v1363_v16 = vld [vmem:[#allocation7 + $0x2860] sm:$0xff] }
 0x2ed   :  { %v1270_v13 = vld [vmem:[#allocation7 + $0x2578] sm:$0xff] }
 0x2ee   :  { %5351 = vmatpush1.bf16.msra.mxu0 %v5350_v48  ;;  %v1155_v48 = vld [vmem:[#allocation7 + $0x21e0] sm:$0xff]  ;;  %v1286_v31 = vld [vmem:[#allocation7 + $0x25f8] sm:$0xff] }
 0x2ef   :  { %5543 = vmatpush1.bf16.msra.mxu1 %v5542_v51  ;;  %5353 = vmatprep.subr.bf16.mxu0 %v5352_v52  ;;  %v1141_v51 = vld [vmem:[#allocation7 + $0x2170] sm:$0xff]  ;;  %v5560_v52 = vpack.c.bf16 %v1158_v43, %v1142_v40  ;;  %v5370_v58 = vpack.c.bf16 %v1155_v48, %v1139_v46  ;;  %v1283_v40 = vld [vmem:[#allocation7 + $0x25e0] sm:$0xff]  ;;  %v1316_v46 = vld [vmem:[#allocation7 + $0x26e8] sm:$0xff] }
 0x2f0   :  { %5545 = vmatprep.subr.bf16.mxu1 %v5544_v56  ;;  %v1174_v56 = vld [vmem:[#allocation7 + $0x2278] sm:$0xff]  ;;  %v5562_v59 = vpack.c.bf16 %v1157_v53, %v1141_v51  ;;  %v1269_v43 = vld [vmem:[#allocation7 + $0x2570] sm:$0xff] }
 0x2f1   :  { %v1302_v48 = vld [vmem:[#allocation7 + $0x2678] sm:$0xff] }
 0x2f2   :  { %5355 = vmatpush1.bf16.msra.mxu0 %v5354_v62  ;;  %v1187_v62 = vld [vmem:[#allocation7 + $0x22e0] sm:$0xff]  ;;  %v1318_v51 = vld [vmem:[#allocation7 + $0x26f8] sm:$0xff] }
 0x2f3   :  { %5547 = vmatpush1.bf16.msra.mxu1 %v5546_v63  ;;  %5357 = vmatprep.subr.bf16.mxu0 %v5356_v0  ;;  %v1173_v63 = vld [vmem:[#allocation7 + $0x2270] sm:$0xff]  ;;  %v5564_v0 = vpack.c.bf16 %v1190_v41, %v1174_v56  ;;  %v1315_v56 = vld [vmem:[#allocation7 + $0x26e0] sm:$0xff] }
 0x2f4   :  { %5549 = vmatprep.subr.bf16.mxu1 %v5548_v2  ;;  %v1206_v2 = vld [vmem:[#allocation7 + $0x2378] sm:$0xff]  ;;  %v5566_v4 = vpack.c.bf16 %v1189_v49, %v1173_v63  ;;  %v1301_v41 = vld [vmem:[#allocation7 + $0x2670] sm:$0xff] }
 0x2f5   :  { %v1350_v63 = vld [vmem:[#allocation7 + $0x27f8] sm:$0xff] }
 0x2f6   :  { %5359 = vmatpush1.bf16.msra.mxu0 %v5358_v9  ;;  %v1205_v9 = vld [vmem:[#allocation7 + $0x2370] sm:$0xff] }
 0x2f7   :  { %5551 = vmatpush1.bf16.msra.mxu1 %v5550_v10  ;;  %5361 = vmatprep.subr.bf16.mxu0 %v5360_v11  ;;  %v5568_v10 = vpack.c.bf16 %v1222_v3, %v1206_v2  ;;  %v1221_v11 = vld [vmem:[#allocation7 + $0x23f0] sm:$0xff]  ;;  %v1347_v2 = vld [vmem:[#allocation7 + $0x27e0] sm:$0xff] }
 0x2f8   :  { %5553 = vmatprep.subr.bf16.mxu1 %v5552_v19  ;;  %v1254_v19 = vld [vmem:[#allocation7 + $0x24f8] sm:$0xff]  ;;  %v1333_v3 = vld [vmem:[#allocation7 + $0x2770] sm:$0xff] }
 0x2fa   :  { %5363 = vmatpush1.bf16.msra.mxu0 %v5362_v25  ;;  %v5572_v25 = vpack.c.bf16 %v1254_v19, %v1238_v18  ;;  %v1379_v18 = vld [vmem:[#allocation7 + $0x28e0] sm:$0xff]  ;;  %v1365_v19 = vld [vmem:[#allocation7 + $0x2870] sm:$0xff] }
 0x2fb   :  { %5555 = vmatpush1.bf16.msra.mxu1 %v5554_v27  ;;  %5365 = vmatprep.subr.bf16.mxu0 %v5364_v28  ;;  %v1253_v27 = vld [vmem:[#allocation7 + $0x24f0] sm:$0xff]  ;;  %v1268_v28 = vld [vmem:[#allocation7 + $0x2568] sm:$0xff] }
 0x2fc   :  { %5557 = vmatprep.subr.bf16.mxu1 %v5556_v33  ;;  %v5382_v33 = vpack.c.bf16 %v1251_v24, %v1235_v22  ;;  %v5574_v35 = vpack.c.bf16 %v1253_v27, %v1237_v26  ;;  %v5384_v38 = vpack.c.bf16 %v1284_v12, %v1268_v28  ;;  %v1412_v22 = vld [vmem:[#allocation7 + $0x29e8] sm:$0xff]  ;;  %v1398_v24 = vld [vmem:[#allocation7 + $0x2978] sm:$0xff]  ;;  %v1395_v12 = vld [vmem:[#allocation7 + $0x2960] sm:$0xff] }
 0x2fd   :  { %3173 = vmatmul.mubr.f32.vlgmr.msra.gmra.mrb[6].mxu0 %v5959_v47  ;;  %v1414_v26 = vld [vmem:[#allocation7 + $0x29f8] sm:$0xff] }
 0x2fe   :  { %5367 = vmatpush1.bf16.msra.mxu0 %v5366_v44  ;;  %3386 = vmatmul.mubr.f32.vlgmr.msra.gmra.mrb[6].mxu1 %v5959_v47  ;;  %v5374_v47 = vpack.c.bf16 %v1187_v62, %v1171_v61  ;;  %v5576_v44 = vpack.c.bf16 %v1286_v31, %v1270_v13  ;;  %v1348_v61 = vld [vmem:[#allocation7 + $0x27e8] sm:$0xff]  ;;  %v1334_v62 = vld [vmem:[#allocation7 + $0x2778] sm:$0xff]  ;;  %v1411_v13 = vld [vmem:[#allocation7 + $0x29e0] sm:$0xff] }
 0x2ff   :  { %5559 = vmatpush1.bf16.msra.mxu1 %v5558_v57  ;;  %5369 = vmatprep.subr.bf16.mxu0 %v5368_v45  ;;  %v1285_v57 = vld [vmem:[#allocation7 + $0x25f0] sm:$0xff]  ;;  %v1300_v45 = vld [vmem:[#allocation7 + $0x2668] sm:$0xff] }
 0x300   :  { %5561 = vmatprep.subr.bf16.mxu1 %v5560_v52  ;;  %3243 = vmatprep.mubr.f32.mxu0 %v5971_v17  ;;  %v5386_v52 = vpack.c.bf16 %v1283_v40, %v1267_v37  ;;  %v5578_v53 = vpack.c.bf16 %v1285_v57, %v1269_v43  ;;  %v5388_v54 = vpack.c.bf16 %v1316_v46, %v1300_v45  ;;  %v1397_v31 = vld [vmem:[#allocation7 + $0x2970] sm:$0xff]  ;;  %v1444_v37 = vld [vmem:[#allocation7 + $0x2ae8] sm:$0xff]  ;;  %v1430_v40 = vld [vmem:[#allocation7 + $0x2a78] sm:$0xff] }
 0x301   :  { %3456 = vmatprep.mubr.f32.mxu1 %v5971_v17  ;;  %v5570_v17 = vpack.c.bf16 %v1221_v11, %v1205_v9  ;;  %v1382_v9 = vld [vmem:[#allocation7 + $0x28f8] sm:$0xff]  ;;  %v1427_v46 = vld [vmem:[#allocation7 + $0x2a60] sm:$0xff] }
 0x302   :  { %5371 = vmatpush1.bf16.msra.mxu0 %v5370_v58  ;;  %v5580_v58 = vpack.c.bf16 %v1318_v51, %v1302_v48  ;;  %v1446_v43 = vld [vmem:[#allocation7 + $0x2af8] sm:$0xff]  ;;  %v1443_v48 = vld [vmem:[#allocation7 + $0x2ae0] sm:$0xff]  ;;  %v1429_v51 = vld [vmem:[#allocation7 + $0x2a70] sm:$0xff] }
 0x303   :  { %5563 = vmatpush1.bf16.msra.mxu1 %v5562_v59  ;;  %5373 = vmatprep.subr.bf16.mxu0 %v5372_v60  ;;  %v1317_v59 = vld [vmem:[#allocation7 + $0x26f0] sm:$0xff]  ;;  %v1332_v60 = vld [vmem:[#allocation7 + $0x2768] sm:$0xff] }
 0x304   :  { %5565 = vmatprep.subr.bf16.mxu1 %v5564_v0  ;;  %v5390_v0 = vpack.c.bf16 %v1315_v56, %v1299_v55  ;;  %v5582_v49 = vpack.c.bf16 %v1317_v59, %v1301_v41  ;;  %v5392_v50 = vpack.c.bf16 %v1348_v61, %v1332_v60  ;;  %v1476_v55 = vld [vmem:[#allocation7 + $0x2be8] sm:$0xff]  ;;  %v1462_v56 = vld [vmem:[#allocation7 + $0x2b78] sm:$0xff]  ;;  %v1459_v61 = vld [vmem:[#allocation7 + $0x2b60] sm:$0xff] }
 0x305   :  { %v1478_v41 = vld [vmem:[#allocation7 + $0x2bf8] sm:$0xff] }
 0x306   :  { %5375 = vmatpush1.bf16.msra.mxu0 %v5374_v47  ;;  %v5584_v47 = vpack.c.bf16 %v1350_v63, %v1334_v62  ;;  %v1475_v62 = vld [vmem:[#allocation7 + $0x2be0] sm:$0xff]  ;;  %v1461_v63 = vld [vmem:[#allocation7 + $0x2b70] sm:$0xff] }
 0x307   :  { %5567 = vmatpush1.bf16.msra.mxu1 %v5566_v4  ;;  %5377 = vmatprep.subr.bf16.mxu0 %v5376_v5  ;;  %v1349_v4 = vld [vmem:[#allocation7 + $0x27f0] sm:$0xff]  ;;  %v1364_v5 = vld [vmem:[#allocation7 + $0x2868] sm:$0xff] }
 0x308   :  { %5569 = vmatprep.subr.bf16.mxu1 %v5568_v10  ;;  %v5394_v10 = vpack.c.bf16 %v1347_v2, %v1331_v1  ;;  %v5586_v11 = vpack.c.bf16 %v1349_v4, %v1333_v3  ;;  %v5396_v15 = vpack.c.bf16 %v1380_v6, %v1364_v5  ;;  %v1508_v1 = vld [vmem:[#allocation7 + $0x2ce8] sm:$0xff]  ;;  %v1494_v2 = vld [vmem:[#allocation7 + $0x2c78] sm:$0xff]  ;;  %v1491_v6 = vld [vmem:[#allocation7 + $0x2c60] sm:$0xff] }
 0x309   :  { %v1510_v3 = vld [vmem:[#allocation7 + $0x2cf8] sm:$0xff] }
 0x30a   :  { %5379 = vmatpush1.bf16.msra.mxu0 %v5378_v20  ;;  %v5588_v20 = vpack.c.bf16 %v1382_v9, %v1366_v8  ;;  %v1507_v8 = vld [vmem:[#allocation7 + $0x2ce0] sm:$0xff]  ;;  %v1493_v9 = vld [vmem:[#allocation7 + $0x2c70] sm:$0xff] }
 0x30b   :  { %5571 = vmatpush1.bf16.msra.mxu1 %v5570_v17  ;;  %5381 = vmatprep.subr.bf16.mxu0 %v5380_v21  ;;  %v1381_v17 = vld [vmem:[#allocation7 + $0x28f0] sm:$0xff]  ;;  %v1396_v21 = vld [vmem:[#allocation7 + $0x2968] sm:$0xff] }
 0x30c   :  { %5573 = vmatprep.subr.bf16.mxu1 %v5572_v25  ;;  %v5398_v25 = vpack.c.bf16 %v1379_v18, %v1363_v16  ;;  %v5590_v27 = vpack.c.bf16 %v1381_v17, %v1365_v19  ;;  %v5400_v28 = vpack.c.bf16 %v1412_v22, %v1396_v21  ;;  %v1540_v16 = vld [vmem:[#allocation7 + $0x2de8] sm:$0xff]  ;;  %v1526_v18 = vld [vmem:[#allocation7 + $0x2d78] sm:$0xff]  ;;  %v1523_v22 = vld [vmem:[#allocation7 + $0x2d60] sm:$0xff] }
 0x30d   :  { %v1542_v19 = vld [vmem:[#allocation7 + $0x2df8] sm:$0xff] }
 0x30e   :  { %5383 = vmatpush1.bf16.msra.mxu0 %v5382_v33  ;;  %v5592_v33 = vpack.c.bf16 %v1414_v26, %v1398_v24  ;;  %v1539_v24 = vld [vmem:[#allocation7 + $0x2de0] sm:$0xff]  ;;  %v1525_v26 = vld [vmem:[#allocation7 + $0x2d70] sm:$0xff] }
 0x30f   :  { %5575 = vmatpush1.bf16.msra.mxu1 %v5574_v35  ;;  %5385 = vmatprep.subr.bf16.mxu0 %v5384_v38  ;;  %v1413_v35 = vld [vmem:[#allocation7 + $0x29f0] sm:$0xff]  ;;  %v1428_v38 = vld [vmem:[#allocation7 + $0x2a68] sm:$0xff] }
 0x310   :  { %5577 = vmatprep.subr.bf16.mxu1 %v5576_v44  ;;  %v5402_v44 = vpack.c.bf16 %v1411_v13, %v1395_v12  ;;  %v5594_v57 = vpack.c.bf16 %v1413_v35, %v1397_v31  ;;  %v5404_v45 = vpack.c.bf16 %v1444_v37, %v1428_v38  ;;  %v1572_v12 = vld [vmem:[#allocation7 + $0x2ee8] sm:$0xff]  ;;  %v1558_v13 = vld [vmem:[#allocation7 + $0x2e78] sm:$0xff]  ;;  %v1555_v37 = vld [vmem:[#allocation7 + $0x2e60] sm:$0xff] }
 0x311   :  { %v1574_v31 = vld [vmem:[#allocation7 + $0x2ef8] sm:$0xff] }
 0x312   :  { %5387 = vmatpush1.bf16.msra.mxu0 %v5386_v52  ;;  %v5596_v52 = vpack.c.bf16 %v1446_v43, %v1430_v40  ;;  %v1571_v40 = vld [vmem:[#allocation7 + $0x2ee0] sm:$0xff]  ;;  %v1557_v43 = vld [vmem:[#allocation7 + $0x2e70] sm:$0xff] }
 0x313   :  { %5579 = vmatpush1.bf16.msra.mxu1 %v5578_v53  ;;  %5389 = vmatprep.subr.bf16.mxu0 %v5388_v54  ;;  %v1445_v53 = vld [vmem:[#allocation7 + $0x2af0] sm:$0xff]  ;;  %v1460_v54 = vld [vmem:[#allocation7 + $0x2b68] sm:$0xff] }
 0x314   :  { %5581 = vmatprep.subr.bf16.mxu1 %v5580_v58  ;;  %v5406_v58 = vpack.c.bf16 %v1443_v48, %v1427_v46  ;;  %v5598_v59 = vpack.c.bf16 %v1445_v53, %v1429_v51  ;;  %v5408_v60 = vpack.c.bf16 %v1476_v55, %v1460_v54  ;;  %v1604_v46 = vld [vmem:[#allocation7 + $0x2fe8] sm:$0xff]  ;;  %v1590_v48 = vld [vmem:[#allocation7 + $0x2f78] sm:$0xff]  ;;  %v1587_v55 = vld [vmem:[#allocation7 + $0x2f60] sm:$0xff] }
 0x315   :  { %v1606_v51 = vld [vmem:[#allocation7 + $0x2ff8] sm:$0xff] }
 0x316   :  { %5391 = vmatpush1.bf16.msra.mxu0 %v5390_v0  ;;  %v5600_v0 = vpack.c.bf16 %v1478_v41, %v1462_v56  ;;  %v1603_v56 = vld [vmem:[#allocation7 + $0x2fe0] sm:$0xff]  ;;  %v5616_v41 = vpack.c.bf16 %v1606_v51, %v1590_v48 }
 0x317   :  { %5583 = vmatpush1.bf16.msra.mxu1 %v5582_v49  ;;  %5393 = vmatprep.subr.bf16.mxu0 %v5392_v50  ;;  %v1477_v49 = vld [vmem:[#allocation7 + $0x2bf0] sm:$0xff]  ;;  %v1492_v50 = vld [vmem:[#allocation7 + $0x2c68] sm:$0xff] }
 0x318   :  { %5585 = vmatprep.subr.bf16.mxu1 %v5584_v47  ;;  %v5410_v47 = vpack.c.bf16 %v1475_v62, %v1459_v61  ;;  %v5602_v4 = vpack.c.bf16 %v1477_v49, %v1461_v63  ;;  %v5412_v5 = vpack.c.bf16 %v1508_v1, %v1492_v50  ;;  %v6034_v50 = vsub.s32 0, %v5922_v7 }
 0x319   :  { %v6037_v1 = vsub.s32 2, %v5922_v7 }
 0x31a   :  { %5395 = vmatpush1.bf16.msra.mxu0 %v5394_v10  ;;  %v5604_v10 = vpack.c.bf16 %v1510_v3, %v1494_v2  ;;  %v1607_v2 = vld [vmem:[#allocation9] sm:$0xff] }
 0x31b   :  { %5587 = vmatpush1.bf16.msra.mxu1 %v5586_v11  ;;  %5397 = vmatprep.subr.bf16.mxu0 %v5396_v15  ;;  %v1509_v11 = vld [vmem:[#allocation7 + $0x2cf0] sm:$0xff]  ;;  %v1524_v15 = vld [vmem:[#allocation7 + $0x2d68] sm:$0xff]  ;;  %6394 = vst [vmem:[#allocation14_spill] sm:$0xff] %v6037_v1  ;;  %v1614_v3 = vrot.slane %v1607_v2, %v6034_v50 }
 0x31c   :  { %5589 = vmatprep.subr.bf16.mxu1 %v5588_v20  ;;  %v5414_v20 = vpack.c.bf16 %v1507_v8, %v1491_v6  ;;  %v5606_v17 = vpack.c.bf16 %v1509_v11, %v1493_v9  ;;  %v5416_v21 = vpack.c.bf16 %v1540_v16, %v1524_v15  ;;  %v6049_v8 = vsub.s32 3, %v5922_v7 }
 0x31d   :  { %v6052_v9 = vsub.s32 4, %v5922_v7 }
 0x31e   :  { %5399 = vmatpush1.bf16.msra.mxu0 %v5398_v25  ;;  %v5608_v25 = vpack.c.bf16 %v1542_v19, %v1526_v18  ;;  %6396 = vst [vmem:[#allocation16_spill] sm:$0xff] %v6049_v8  ;;  %v6072_v19 = vsub.s32 6, %v5922_v7 }
 0x31f   :  { %5591 = vmatpush1.bf16.msra.mxu1 %v5590_v27  ;;  %5401 = vmatprep.subr.bf16.mxu0 %v5400_v28  ;;  %v1541_v27 = vld [vmem:[#allocation7 + $0x2df0] sm:$0xff]  ;;  %v1556_v28 = vld [vmem:[#allocation7 + $0x2e68] sm:$0xff]  ;;  %6397 = vst [vmem:[#allocation17_spill] sm:$0xff] %v6052_v9  ;;  %v1630_v15 = vrot.slane %v1607_v2, %v6052_v9 }
 0x320   :  { %5593 = vmatprep.subr.bf16.mxu1 %v5592_v33  ;;  %v5418_v33 = vpack.c.bf16 %v1539_v24, %v1523_v22  ;;  %v5610_v35 = vpack.c.bf16 %v1541_v27, %v1525_v26  ;;  %v5420_v38 = vpack.c.bf16 %v1572_v12, %v1556_v28  ;;  %6398 = vst [vmem:[#allocation18_spill] sm:$0xff] %v6072_v19  ;;  %v6079_v22 = vsub.s32 5, %v5922_v7  ;;  %v1608_v12 = vld [vmem:[#allocation9 + $0x8] sm:$0xff] }
 0x321   :  { %v6093_v27 = vsub.s32 7, %v5922_v7 }
 0x322   :  { %5403 = vmatpush1.bf16.msra.mxu0 %v5402_v44  ;;  %v5612_v44 = vpack.c.bf16 %v1574_v31, %v1558_v13  ;;  %6399 = vst [vmem:[#allocation19_spill] sm:$0xff] %v6079_v22 }
 0x323   :  { %5595 = vmatpush1.bf16.msra.mxu1 %v5594_v57  ;;  %5405 = vmatprep.subr.bf16.mxu0 %v5404_v45  ;;  %v1573_v57 = vld [vmem:[#allocation7 + $0x2ef0] sm:$0xff]  ;;  %v1588_v45 = vld [vmem:[#allocation7 + $0x2f68] sm:$0xff]  ;;  %6400 = vst [vmem:[#allocation20_spill] sm:$0xff] %v6093_v27 }
 0x324   :  { %5597 = vmatprep.subr.bf16.mxu1 %v5596_v52  ;;  %v5422_v52 = vpack.c.bf16 %v1571_v40, %v1555_v37  ;;  %v5614_v53 = vpack.c.bf16 %v1573_v57, %v1557_v43  ;;  %v5424_v54 = vpack.c.bf16 %v1604_v46, %v1588_v45 }
 0x326   :  { %5407 = vmatpush1.bf16.msra.mxu0 %v5406_v58  ;;  %v1589_v58 = vld [vmem:[#allocation7 + $0x2f70] sm:$0xff] }
 0x327   :  { %5599 = vmatpush1.bf16.msra.mxu1 %v5598_v59  ;;  %5409 = vmatprep.subr.bf16.mxu0 %v5408_v60  ;;  %v1605_v59 = vld [vmem:[#allocation7 + $0x2ff0] sm:$0xff]  ;;  %v5426_v60 = vpack.c.bf16 %v1603_v56, %v1587_v55 }
 0x328   :  { %5601 = vmatprep.subr.bf16.mxu1 %v5600_v0  ;;  %v5618_v61 = vpack.c.bf16 %v1605_v59, %v1589_v58  ;;  %v1670_v59 = vrot.slane %v1608_v12, %v6072_v19 }
 0x32a   :  { %5411 = vmatpush1.bf16.msra.mxu0 %v5410_v47  ;;  %v1622_v47 = vrot.slane %v1607_v2, %v6037_v1 }
 0x32b   :  { %5603 = vmatpush1.bf16.msra.mxu1 %v5602_v4  ;;  %5413 = vmatprep.subr.bf16.mxu0 %v5412_v5  ;;  %v6042_v4 = vsub.s32 1, %v5922_v7 }
 0x32c   :  { %5605 = vmatprep.subr.bf16.mxu1 %v5604_v10  ;;  %v5622_v5 = vadd.f32 %v5997_v39, %v1622_v47  ;;  %v1626_v39 = vrot.slane %v1607_v2, %v6049_v8 }
 0x32d   :  { %6395 = vst [vmem:[#allocation15_spill] sm:$0xff] %v6042_v4  ;;  %v1618_v6 = vrot.slane %v1607_v2, %v6042_v4  ;;  %v1650_v48 = vrot.slane %v1608_v12, %v6042_v4 }
 0x32e   :  { %5415 = vmatpush1.bf16.msra.mxu0 %v5414_v20  ;;  %v6060_v11 = vsel %vm3468_vm0, %v5622_v5, 0.0  ;;  %v5623_v20 = vadd.f32 %v6001_v42, %v1626_v39 }
 0x32f   :  { %5607 = vmatpush1.bf16.msra.mxu1 %v5606_v17  ;;  %5417 = vmatprep.subr.bf16.mxu0 %v5416_v21  ;;  %v5624_v17 = vadd.f32 %v6015_v23, %v1630_v15  ;;  %v1638_v21 = vrot.slane %v1607_v2, %v6072_v19  ;;  %v1634_v23 = vrot.slane %v1607_v2, %v6079_v22 }
 0x330   :  { %5609 = vmatprep.subr.bf16.mxu1 %v5608_v25  ;;  %v6083_v24 = vsel %vm3468_vm0, %v5623_v20, 0.0 }
 0x331   :  { %v6087_v26 = vsel %vm3468_vm0, %v5624_v17, 0.0  ;;  %v5626_v42 = vadd.f32 %v6017_v29, %v1638_v21  ;;  %v5625_v31 = vadd.f32 %v6019_v30, %v1634_v23 }
 0x332   :  { %5419 = vmatpush1.bf16.msra.mxu0 %v5418_v33  ;;  %v1642_v33 = vrot.slane %v1607_v2, %v6093_v27 }
 0x333   :  { %5611 = vmatpush1.bf16.msra.mxu1 %v5610_v35  ;;  %5421 = vmatprep.subr.bf16.mxu0 %v5420_v38  ;;  %v6098_v13 = vsel %vm3468_vm0, %v5626_v42, 0.0  ;;  %v1646_v35 = vrot.slane %v1608_v12, %v6034_v50  ;;  %v3477_v38 = vsel %vm3468_vm0, %v5625_v31, 0.0 }
 0x334   :  { %5613 = vmatprep.subr.bf16.mxu1 %v5612_v44  ;;  %v5627_v37 = vadd.f32 %v6021_v34, %v1642_v33  ;;  %v1654_v44 = vrot.slane %v1608_v12, %v6037_v1 }
 0x336   :  { %5423 = vmatpush1.bf16.msra.mxu0 %v5422_v52  ;;  %v3479_v57 = vsel %vm3468_vm0, %v5627_v37, 0.0 }
 0x337   :  { %5615 = vmatpush1.bf16.msra.mxu1 %v5614_v53  ;;  %5425 = vmatprep.subr.bf16.mxu0 %v5424_v54  ;;  %v1658_v53 = vrot.slane %v1608_v12, %v6049_v8 }
 0x338   :  { %5617 = vmatprep.subr.bf16.mxu1 %v5616_v41  ;;  %v1662_v41 = vrot.slane %v1608_v12, %v6052_v9 }
 0x33a   :  { %5427 = vmatpush1.bf16.msra.mxu0 %v5426_v60  ;;  %v1666_v60 = vrot.slane %v1608_v12, %v6079_v22 }
 0x33b   :  { %5619 = vmatpush1.bf16.msra.mxu1 %v5618_v61 }
 0x33d   :  { %3244 = vmatmul.mubr.f32.vlgmr.msra.gmra.mrb[6].mxu0 %v5977_v14 }
 0x33e   :  { %3457 = vmatmul.mubr.f32.vlgmr.msra.gmra.mrb[6].mxu1 %v5977_v14  ;;  %v5620_v14 = vadd.f32 %v5995_v32, %v1614_v3  ;;  %v5621_v32 = vadd.f32 %v5999_v36, %v1618_v6  ;;  %v1674_v3 = vrot.slane %v1608_v12, %v6093_v27 }
 0x340   :  { %v6056_v10 = vsel %vm3468_vm0, %v5620_v14, 0.0  ;;  %v6069_v18 = vsel %vm3468_vm0, %v5621_v32, 0.0 }
 0x341   :  { %v3488_v16 = vmax.f32 %v6056_v10, %v6060_v11 }
 0x343   :  { %v3490_v36 = vmax.f32 %v6069_v18, %v3488_v16 }
 0x345   :  { %v3489_v25 = vmax.f32 %v6083_v24, %v3490_v36 }
 0x347   :  { %v3491_v28 = vmax.f32 %v6087_v26, %v3489_v25 }
 0x349   :  { %v3492_v29 = vmax.f32 %v6098_v13, %v3491_v28 }
 0x34b   :  { %v3494_v43 = vmax.f32 %v3477_v38, %v3492_v29 }
 0x34d   :  { %v3493_v45 = vmax.f32 %v3479_v57, %v3494_v43 }
 0x350   :  { %v2819_v62 = vpop.f32.mrb[4].mxu0 }
 0x351   :  { %v3032_v63 = vpop.f32.mrb[4].mxu1  ;;  %v2821_v0 = vpop.f32.mrb[5].mxu0  ;;  %v5628_v40 = vadd.f32 %v2819_v62, %v1646_v35 }
 0x352   :  { %v3034_v49 = vpop.f32.mrb[5].mxu1  ;;  %v5630_v46 = vadd.f32 %v3032_v63, %v1654_v44  ;;  %v5629_v52 = vadd.f32 %v2821_v0, %v1650_v48 }
 0x353   :  { %v6112_v30 = vsel %vm3468_vm0, %v5628_v40, 0.0  ;;  %v5631_v56 = vadd.f32 %v3034_v49, %v1658_v53 }
 0x354   :  { %v3495_v51 = vmax.f32 %v6112_v30, %v3493_v45  ;;  %v6118_v34 = vsel %vm3468_vm0, %v5630_v46, 0.0  ;;  %v3481_v55 = vsel %vm3468_vm0, %v5629_v52, 0.0 }
 0x355   :  { %v6129_v62 = vsel %vm3468_vm0, %v5631_v56, 0.0 }
 0x356   :  { %v3496_v54 = vmax.f32 %v6118_v34, %v3495_v51 }
 0x358   :  { %v3498_v58 = vmax.f32 %v3481_v55, %v3496_v54 }
 0x35a   :  { %v3497_v47 = vmax.f32 %v6129_v62, %v3498_v58 }
 0x410   :  { %v3245_v61 = vpop.f32.mrb[6].mxu0 }
 0x411   :  { %v5632_v63 = vadd.f32 %v3245_v61, %v1662_v41  ;;  %v3458_v0 = vpop.f32.mrb[6].mxu1  ;;  %v3247_v2 = vpop.f32.mrb[7].mxu0 }
 0x412   :  { %v5634_v49 = vadd.f32 %v3458_v0, %v1670_v59  ;;  %v3460_v14 = vpop.f32.mrb[7].mxu1  ;;  %v5633_v6 = vadd.f32 %v3247_v2, %v1666_v60 }
 0x413   :  { %v3484_v5 = vsel %vm3468_vm0, %v5632_v63, 0.0  ;;  %v5635_v15 = vadd.f32 %v3460_v14, %v1674_v3 }
 0x414   :  { %v3499_v32 = vmax.f32 %v3484_v5, %v3497_v47  ;;  %v6137_v39 = vsel %vm3468_vm0, %v5634_v49, 0.0  ;;  %v3485_v20 = vsel %vm3468_vm0, %v5633_v6, 0.0 }
 0x415   :  { %v6144_v36 = vsel %vm3468_vm0, %v5635_v15, 0.0 }
 0x416   :  { %v3500_v16 = vmax.f32 %v6137_v39, %v3499_v32 }
 0x418   :  { %v3501_v17 = vmax.f32 %v3485_v20, %v3500_v16 }
 0x41a   :  { %v3502_v21 = vmax.f32 %v6144_v36, %v3501_v17 }
 0x41c   :  { %3503 = vmax.xlane.f32.xlu0 %v3502_v21 }
 0x4a9   :  { %v3504_v25 = vpop.xlane.xlu0 %3503 }
 0x4aa   :  { %v3505_v42 = vsub.f32 %v6056_v10, %v3504_v25  ;;  %v3506_v23 = vsub.f32 %v6069_v18, %v3504_v25  ;;  %v3507_v28 = vsub.f32 %v6060_v11, %v3504_v25  ;;  %v3508_v12 = vsub.f32 %v6083_v24, %v3504_v25 }
 0x4ab   :  { %v3509_v35 = vsub.f32 %v6087_v26, %v3504_v25  ;;  %v3510_v37 = vsub.f32 %v3477_v38, %v3504_v25  ;;  %v3511_v43 = vsub.f32 %v6098_v13, %v3504_v25  ;;  %v3512_v10 = vsub.f32 %v3479_v57, %v3504_v25 }
 0x4ac   :  { %v3521_v31 = vmul.f32 1.442695, %v3505_v42  ;;  %v3523_v33 = vmul.f32 1.442695, %v3506_v23  ;;  %v3525_v29 = vmul.f32 1.442695, %v3507_v28  ;;  %v3513_v11 = vsub.f32 %v6112_v30, %v3504_v25 }
 0x4ad   :  { %v3527_v40 = vmul.f32 1.442695, %v3508_v12  ;;  %v3529_v44 = vmul.f32 1.442695, %v3509_v35  ;;  %v3531_v18 = vmul.f32 1.442695, %v3510_v37  ;;  %v3514_v45 = vsub.f32 %v3481_v55, %v3504_v25 }
 0x4ae   :  { %5689 = vpow2.f32 %v3521_v31  ;;  %v3533_v24 = vmul.f32 1.442695, %v3511_v43  ;;  %v3535_v46 = vmul.f32 1.442695, %v3512_v10  ;;  %v3515_v38 = vsub.f32 %v6118_v34, %v3504_v25 }
 0x4af   :  { %5691 = vpow2.f32 %v3523_v33  ;;  %v3537_v13 = vmul.f32 1.442695, %v3513_v11  ;;  %v3516_v52 = vsub.f32 %v6129_v62, %v3504_v25  ;;  %v3539_v30 = vmul.f32 1.442695, %v3514_v45 }
 0x4b0   :  { %5693 = vpow2.f32 %v3525_v29  ;;  %v3517_v55 = vsub.f32 %v3484_v5, %v3504_v25  ;;  %v3541_v56 = vmul.f32 1.442695, %v3515_v38  ;;  %v3518_v59 = vsub.f32 %v3485_v20, %v3504_v25 }
 0x4b1   :  { %5695 = vpow2.f32 %v3527_v40  ;;  %v3543_v34 = vmul.f32 1.442695, %v3516_v52  ;;  %v3519_v63 = vsub.f32 %v6137_v39, %v3504_v25  ;;  %v3520_v3 = vsub.f32 %v6144_v36, %v3504_v25 }
 0x4b2   :  { %5697 = vpow2.f32 %v3529_v44  ;;  %v3545_v0 = vmul.f32 1.442695, %v3517_v55  ;;  %v3547_v47 = vmul.f32 1.442695, %v3518_v59  ;;  %v6378_v44 = vmov 0.0  }
 0x4b3   :  { %5699 = vpow2.f32 %v3531_v18  ;;  %v3549_v5 = vmul.f32 1.442695, %v3519_v63  ;;  %v3551_v15 = vmul.f32 1.442695, %v3520_v3  ;;  %v6172_v10 = vsel %vm3468_vm0, 1.0, %v6378_v44 }
 0x4b4   :  { %5701 = vpow2.f32 %v3533_v24  ;;  %v5864_v63 = vmov 1966171168  }
 0x4b5   :  { %5703 = vpow2.f32 %v3535_v46 }
 0x4b6   :  { %5705 = vpow2.f32 %v3537_v13 }
 0x4b7   :  { %5707 = vpow2.f32 %v3539_v30 }
 0x4b8   :  { %v6154_v26 = vpop.eup %5689  ;;  %5709 = vpow2.f32 %v3541_v56 }
 0x4b9   :  { %v6156_v48 = vpop.eup %5691  ;;  %5711 = vpow2.f32 %v3543_v34 }
 0x4ba   :  { %v3553_v57 = vadd.f32 %v6156_v48, %v6154_v26  ;;  %v5694_v51 = vpop.eup %5693  ;;  %5713 = vpow2.f32 %v3545_v0  ;;  %v3722_v0 = vunpack.c.l.s4 %v5864_v63 }
 0x4bb   :  { %v5696_v54 = vpop.eup %5695  ;;  %5715 = vpow2.f32 %v3547_v47 }
 0x4bc   :  { %v3554_v53 = vadd.f32 %v5694_v51, %v3553_v57  ;;  %v5698_v58 = vpop.eup %5697  ;;  %5717 = vpow2.f32 %v3549_v5 }
 0x4bd   :  { %v5700_v61 = vpop.eup %5699  ;;  %5719 = vpow2.f32 %v3551_v15 }
 0x4be   :  { %v3555_v41 = vadd.f32 %v5696_v54, %v3554_v53  ;;  %v5702_v62 = vpop.eup %5701 }
 0x4bf   :  { %v5704_v14 = vpop.eup %5703 }
 0x4c0   :  { %v3556_v60 = vadd.f32 %v5698_v58, %v3555_v41  ;;  %v5706_v32 = vpop.eup %5705 }
 0x4c1   :  { %v5708_v20 = vpop.eup %5707 }
 0x4c2   :  { %v3557_v2 = vadd.f32 %v5700_v61, %v3556_v60  ;;  %v5710_v17 = vpop.eup %5709 }
 0x4c3   :  { %v5712_v42 = vpop.eup %5711 }
 0x4c4   :  { %v3558_v49 = vadd.f32 %v5702_v62, %v3557_v2  ;;  %v5714_v36 = vpop.eup %5713 }
 0x4c5   :  { %v5716_v28 = vpop.eup %5715 }
 0x4c6   :  { %v3559_v6 = vadd.f32 %v5704_v14, %v3558_v49  ;;  %v5718_v31 = vpop.eup %5717 }
 0x4c7   :  { %v5720_v35 = vpop.eup %5719 }
 0x4c8   :  { %v3560_v16 = vadd.f32 %v5706_v32, %v3559_v6 }
 0x4ca   :  { %v3561_v39 = vadd.f32 %v5708_v20, %v3560_v16 }
 0x4cc   :  { %v3562_v21 = vadd.f32 %v5710_v17, %v3561_v39 }
 0x4ce   :  { %v3563_v23 = vadd.f32 %v5712_v42, %v3562_v21 }
 0x4d0   :  { %v3564_v25 = vadd.f32 %v5714_v36, %v3563_v23 }
 0x4d2   :  { %v3565_v12 = vadd.f32 %v5716_v28, %v3564_v25 }
 0x4d4   :  { %v3566_v33 = vadd.f32 %v5718_v31, %v3565_v12 }
 0x4d6   :  { %v3567_v29 = vadd.f32 %v5720_v35, %v3566_v33 }
 0x4d8   :  { %3568 = vadd.xlane.f32.xlu0 %v3567_v29 }
 0x565   :  { %v3569_v37 = vpop.xlane.xlu0 %3568 }
 0x566   :  { %5721 = vrcp.f32 %v3569_v37 }
 0x570   :  { %v6164_v40 = vpop.eup %5721 }
 0x571   :  { %v6167_v43 = vmul.f32 %v6164_v40, %v5694_v51  ;;  %v6175_v18 = vmul.f32 %v6164_v40, %v5696_v54  ;;  %v6178_v11 = vmul.f32 %v6164_v40, %v5698_v58  ;;  %v6181_v24 = vmul.f32 %v6164_v40, %v5700_v61 }
 0x572   :  { %v6184_v45 = vmul.f32 %v6164_v40, %v5702_v62  ;;  %v6187_v46 = vmul.f32 %v6164_v40, %v5704_v14  ;;  %v6190_v38 = vmul.f32 %v6164_v40, %v5706_v32  ;;  %v6196_v57 = vmul.f32 %v6164_v40, %v6156_v48 }
 0x573   :  { %v3591_v13 = vmul.f32 %v6172_v10, %v6167_v43  ;;  %v3592_v51 = vmul.f32 %v6172_v10, %v6175_v18  ;;  %v3593_v52 = vmul.f32 %v6172_v10, %v6178_v11  ;;  %v3594_v30 = vmul.f32 %v6172_v10, %v6181_v24 }
 0x574   :  { %v6205_v53 = vmul.f32 %v6164_v40, %v5708_v20  ;;  %v3595_v54 = vmul.f32 %v6172_v10, %v6184_v45  ;;  %v3596_v55 = vmul.f32 %v6172_v10, %v6187_v46  ;;  %v3597_v48 = vmul.f32 %v6172_v10, %v6190_v38 }
 0x575   :  { %v6214_v56 = vmul.f32 %v6164_v40, %v5710_v17  ;;  %v6217_v41 = vmul.f32 %v6164_v40, %v5712_v42  ;;  %v6220_v58 = vmul.f32 %v6164_v40, %v5714_v36  ;;  %v6223_v59 = vmul.f32 %v6164_v40, %v5716_v28 }
 0x576   :  { %v6226_v34 = vmul.f32 %v6164_v40, %v5718_v31  ;;  %v6229_v60 = vmul.f32 %v6164_v40, %v5720_v35  ;;  %v3617_v61 = vrot.slane %v3591_v13, 4  ;;  %v3590_v2 = vmul.f32 %v6172_v10, %v6196_v57 }
 0x577   :  { %v3623_v62 = vrot.slane %v3592_v51, 4  ;;  %v3629_v3 = vrot.slane %v3593_v52, 4  ;;  %v3635_v47 = vrot.slane %v3594_v30, 4  ;;  %v3598_v49 = vmul.f32 %v6172_v10, %v6205_v53 }
 0x578   :  { %v3641_v14 = vrot.slane %v3595_v54, 4  ;;  %v3647_v5 = vrot.slane %v3596_v55, 4  ;;  %v3653_v6 = vrot.slane %v3597_v48, 4  ;;  %v3599_v32 = vmul.f32 %v6172_v10, %v6214_v56 }
 0x579   :  { %v3600_v15 = vmul.f32 %v6172_v10, %v6217_v41  ;;  %v3601_v16 = vmul.f32 %v6172_v10, %v6220_v58  ;;  %v3602_v20 = vmul.f32 %v6172_v10, %v6223_v59  ;;  %v3603_v39 = vmul.f32 %v6172_v10, %v6226_v34 }
 0x57a   :  { %v3604_v17 = vmul.f32 %v6172_v10, %v6229_v60  ;;  %v3618_v21 = vadd.f32 %v3617_v61, %v3591_v13  ;;  %v3723_v42 = vunpack.c.0.s8 %v3722_v0  ;;  %v3611_v23 = vrot.slane %v3590_v2, 4 }
 0x57b   :  { %v3624_v36 = vadd.f32 %v3623_v62, %v3592_v51  ;;  %v3630_v25 = vadd.f32 %v3629_v3, %v3593_v52  ;;  %v3636_v28 = vadd.f32 %v3635_v47, %v3594_v30  ;;  %v3642_v12 = vadd.f32 %v3641_v14, %v3595_v54 }
 0x57c   :  { %v3648_v31 = vadd.f32 %v3647_v5, %v3596_v55  ;;  %v3654_v33 = vadd.f32 %v3653_v6, %v3597_v48  ;;  %v3659_v35 = vrot.slane %v3598_v49, 4  ;;  %v3665_v29 = vrot.slane %v3599_v32, 4 }
 0x57d   :  { %v3671_v37 = vrot.slane %v3600_v15, 4  ;;  %v3677_v63 = vrot.slane %v3601_v16, 4  ;;  %v3683_v44 = vrot.slane %v3602_v20, 4  ;;  %v3619_v27 = vrot.slane %v3618_v21, 2 }
 0x57e   :  { %v3660_v19 = vadd.f32 %v3659_v35, %v3598_v49  ;;  %v3689_v22 = vrot.slane %v3603_v39, 4  ;;  %v3695_v9 = vrot.slane %v3604_v17, 4  ;;  %v3666_v8 = vadd.f32 %v3665_v29, %v3599_v32 }
 0x57f   :  { %v3672_v1 = vadd.f32 %v3671_v37, %v3600_v15  ;;  %v3678_v13 = vadd.f32 %v3677_v63, %v3601_v16  ;;  %v3684_v61 = vadd.f32 %v3683_v44, %v3602_v20  ;;  %v3631_v0 = vrot.slane %v3630_v25, 2 }
 0x580   :  { %v3637_v51 = vrot.slane %v3636_v28, 2  ;;  %v3690_v52 = vadd.f32 %v3689_v22, %v3603_v39  ;;  %v3696_v30 = vadd.f32 %v3695_v9, %v3604_v17  ;;  %v3612_v54 = vadd.f32 %v3611_v23, %v3590_v2 }
 0x581   :  { %v3643_v55 = vrot.slane %v3642_v12, 2  ;;  %v3649_v48 = vrot.slane %v3648_v31, 2  ;;  %v3655_v62 = vrot.slane %v3654_v33, 2  ;;  %v3625_v3 = vrot.slane %v3624_v36, 2 }
 0x582   :  { %v3661_v47 = vrot.slane %v3660_v19, 2  ;;  %v3667_v14 = vrot.slane %v3666_v8, 2  ;;  %v3673_v5 = vrot.slane %v3672_v1, 2  ;;  %v3620_v6 = vadd.f32 %v3619_v27, %v3618_v21 }
 0x583   :  { %v3679_v49 = vrot.slane %v3678_v13, 2  ;;  %v3685_v35 = vrot.slane %v3684_v61, 2  ;;  %v3691_v4 = vrot.slane %v3690_v52, 2  ;;  %v3632_v32 = vadd.f32 %v3631_v0, %v3630_v25 }
 0x584   :  { %v3638_v15 = vadd.f32 %v3637_v51, %v3636_v28  ;;  %v3697_v16 = vrot.slane %v3696_v30, 2  ;;  %v6248_v44 = vsub.s32 %v3723_v42, %v5922_v7  ;;  %v3613_v22 = vrot.slane %v3612_v54, 2 }
 0x585   :  { %v3644_v9 = vadd.f32 %v3643_v55, %v3642_v12  ;;  %v3650_v2 = vadd.f32 %v3649_v48, %v3648_v31  ;;  %v3656_v20 = vadd.f32 %v3655_v62, %v3654_v33  ;;  %v3626_v39 = vadd.f32 %v3625_v3, %v3624_v36 }
 0x586   :  { %v3662_v17 = vadd.f32 %v3661_v47, %v3660_v19  ;;  %v3668_v23 = vadd.f32 %v3667_v14, %v3666_v8  ;;  %v3674_v29 = vadd.f32 %v3673_v5, %v3672_v1  ;;  %v3621_v37 = vrot.slane %v3620_v6, 1 }
 0x587   :  { %v3680_v63 = vadd.f32 %v3679_v49, %v3678_v13  ;;  %v3686_v27 = vadd.f32 %v3685_v35, %v3684_v61  ;;  %v3692_v21 = vadd.f32 %v3691_v4, %v3690_v52  ;;  %v6252_v25 = vmul.f32 %v6164_v40, %v6154_v26 }
 0x588   :  { %v3633_v28 = vrot.slane %v3632_v32, 1  ;;  %v3639_v0 = vrot.slane %v3638_v15, 1  ;;  %v3698_v7 = vadd.f32 %v3697_v16, %v3696_v30  ;;  %v6254_v42 = vadd.f32 %v3613_v22, %v3612_v54 }
 0x589   :  { %v3645_v12 = vrot.slane %v3644_v9, 1  ;;  %v3651_v31 = vrot.slane %v3650_v2, 1  ;;  %v3657_v33 = vrot.slane %v3656_v20, 1  ;;  %v3627_v36 = vrot.slane %v3626_v39, 1 }
 0x58a   :  { %v3663_v19 = vrot.slane %v3662_v17, 1  ;;  %v3669_v8 = vrot.slane %v3668_v23, 1  ;;  %v3675_v1 = vrot.slane %v3674_v29, 1  ;;  %v3622_v51 = vadd.f32 %v3621_v37, %v3620_v6 }
 0x58b   :  { %v3681_v13 = vrot.slane %v3680_v63, 1  ;;  %v3687_v61 = vrot.slane %v3686_v27, 1  ;;  %v3693_v4 = vrot.slane %v3692_v21, 1  ;;  %v3634_v52 = vadd.f32 %v3633_v28, %v3632_v32 }
 0x58c   :  { %v3640_v55 = vadd.f32 %v3639_v0, %v3638_v15  ;;  %v3699_v26 = vrot.slane %v3698_v7, 1  ;;  %v3822_v40 = vadd.f32 1e-08, %v6252_v25  ;;  %v3646_v48 = vadd.f32 %v3645_v12, %v3644_v9 }
 0x58d   :  { %v3652_v30 = vadd.f32 %v3651_v31, %v3650_v2  ;;  %v3658_v54 = vadd.f32 %v3657_v33, %v3656_v20  ;;  %v3823_v62 = vadd.f32 1e-08, %v6196_v57  ;;  %v3664_v3 = vadd.f32 %v3663_v19, %v3662_v17 }
 0x58e   :  { %v3670_v47 = vadd.f32 %v3669_v8, %v3668_v23  ;;  %v3676_v14 = vadd.f32 %v3675_v1, %v3674_v29  ;;  %v3824_v5 = vadd.f32 1e-08, %v6167_v43  ;;  %v3682_v49 = vadd.f32 %v3681_v13, %v3680_v63 }
 0x58f   :  { %v3688_v6 = vadd.f32 %v3687_v61, %v3686_v27  ;;  %v3694_v35 = vadd.f32 %v3693_v4, %v3692_v21  ;;  %v3825_v16 = vadd.f32 1e-08, %v6175_v18  ;;  %v3700_v32 = vadd.f32 %v3699_v26, %v3698_v7 }
 0x590   :  { %v3826_v15 = vadd.f32 1e-08, %v6178_v11  ;;  %5723 = vlog2.f32 %v3822_v40  ;;  %v3589_v22 = vmul.f32 %v6172_v10, %v6252_v25  ;;  %v3628_v9 = vadd.f32 %v3627_v36, %v3626_v39 }
 0x591   :  { %v3719_v2 = vcombine.low %v3634_v52, %v3640_v55  ;;  %v3827_v20 = vadd.f32 1e-08, %v6181_v24  ;;  %5725 = vlog2.f32 %v3823_v62  ;;  %v3720_v17 = vcombine.low %v3646_v48, %v3652_v30 }
 0x592   :  { %v3828_v23 = vadd.f32 1e-08, %v6184_v45  ;;  %5727 = vlog2.f32 %v3824_v5  ;;  %v3605_v29 = vrot.slane %v3589_v22, 4  ;;  %v3766_v37 = vcombine.low %v3658_v54, %v3664_v3 }
 0x593   :  { %v3767_v63 = vcombine.low %v3670_v47, %v3676_v14  ;;  %v3829_v27 = vadd.f32 1e-08, %v6187_v46  ;;  %5729 = vlog2.f32 %v3825_v16  ;;  %v3768_v21 = vcombine.low %v3682_v49, %v3688_v6 }
 0x594   :  { %v3769_v28 = vcombine.low %v3694_v35, %v3700_v32  ;;  %5731 = vlog2.f32 %v3826_v15  ;;  %v3606_v0 = vadd.f32 %v3605_v29, %v3589_v22  ;;  %v3615_v39 = vrot.slane %v6254_v42, 1 }
 0x595   :  { %v3718_v7 = vcombine.low %v3622_v51, %v3628_v9  ;;  %v3830_v12 = vadd.f32 1e-08, %v6190_v38  ;;  %5733 = vlog2.f32 %v3827_v20  ;;  %v3741_v31 = vrot.slane %v3719_v2, %v6248_v44 }
 0x596   :  { %v3748_v33 = vrot.slane %v3720_v17, %v6248_v44  ;;  %5735 = vlog2.f32 %v3828_v23  ;;  %v3607_v36 = vrot.slane %v3606_v0, 2  ;;  %v3776_v19 = vrot.slane %v3766_v37, %v6248_v44 }
 0x597   :  { %v3783_v8 = vrot.slane %v3767_v63, %v6248_v44  ;;  %v3831_v1 = vadd.f32 1e-08, %v6205_v53  ;;  %5737 = vlog2.f32 %v3829_v27  ;;  %v3790_v13 = vrot.slane %v3768_v21, %v6248_v44 }
 0x598   :  { %v3797_v51 = vrot.slane %v3769_v28, %v6248_v44  ;;  %v3608_v61 = vadd.f32 %v3607_v36, %v3606_v0  ;;  %v3832_v4 = vadd.f32 1e-08, %v6214_v56  ;;  %5739 = vlog2.f32 %v3830_v12 }
 0x599   :  { %v3616_v55 = vadd.f32 %v3615_v39, %v6254_v42  ;;  %v3734_v26 = vrot.slane %v3718_v7, %v6248_v44  ;;  %v3750_v40 = vcombine.low %v3741_v31, %v3748_v33  ;;  %v3798_v54 = vcombine.low %v3776_v19, %v3783_v8 }
 0x59a   :  { %v5724_v52 = vpop.eup %5723  ;;  %v3609_v48 = vrot.slane %v3608_v61, 1  ;;  %v3833_v62 = vadd.f32 1e-08, %v6217_v41  ;;  %5741 = vlog2.f32 %v3831_v1  ;;  %v3799_v14 = vcombine.low %v3790_v13, %v3797_v51 }
 0x59b   :  { %v5726_v30 = vpop.eup %5725  ;;  %v3839_v3 = vmul.f32 0.6931472, %v5724_v52  ;;  %v3834_v5 = vadd.f32 1e-08, %v6220_v58  ;;  %v3835_v16 = vadd.f32 1e-08, %v6223_v59  ;;  %5743 = vlog2.f32 %v3832_v4 }
 0x59c   :  { %v5728_v47 = vpop.eup %5727  ;;  %v3841_v49 = vmul.f32 0.6931472, %v5726_v30  ;;  %v3610_v6 = vadd.f32 %v3609_v48, %v3608_v61  ;;  %v3836_v22 = vadd.f32 1e-08, %v6226_v34  ;;  %5745 = vlog2.f32 %v3833_v62 }
 0x59d   :  { %v5730_v35 = vpop.eup %5729  ;;  %v3843_v42 = vmul.f32 0.6931472, %v5728_v47  ;;  %v3870_v32 = vmul.f32 %v3839_v3, %v6252_v25  ;;  %5747 = vlog2.f32 %v3834_v5  ;;  %v3764_v0 = vrot.slane %v3750_v40, %v6248_v44 }
 0x59e   :  { %v5732_v15 = vpop.eup %5731  ;;  %v3845_v9 = vmul.f32 0.6931472, %v5730_v35  ;;  %v3871_v2 = vmul.f32 %v3841_v49, %v6196_v57  ;;  %v3717_v20 = vcombine.low %v3610_v6, %v3616_v55  ;;  %v3837_v57 = vadd.f32 1e-08, %v6229_v60 }
 0x59f   :  { %v5734_v17 = vpop.eup %5733  ;;  %v3847_v23 = vmul.f32 0.6931472, %v5732_v15  ;;  %v3872_v29 = vmul.f32 %v3843_v42, %v6167_v43  ;;  %v3886_v37 = vmul.f32 %v6172_v10, %v3870_v32  ;;  %5749 = vlog2.f32 %v3835_v16 }
 0x5a0   :  { %v5736_v63 = vpop.eup %5735  ;;  %v3849_v27 = vmul.f32 0.6931472, %v5734_v17  ;;  %v3873_v21 = vmul.f32 %v3845_v9, %v6175_v18  ;;  %v3887_v25 = vmul.f32 %v6172_v10, %v3871_v2  ;;  %v3727_v39 = vrot.slane %v3717_v20, %v6248_v44 }
 0x5a1   :  { %v5738_v28 = vpop.eup %5737  ;;  %v3851_v7 = vmul.f32 0.6931472, %v5736_v63  ;;  %v3874_v43 = vmul.f32 %v3847_v23, %v6178_v11  ;;  %v3888_v12 = vmul.f32 %v6172_v10, %v3872_v29  ;;  %v3806_v36 = vrot.slane %v3798_v54, %v6248_v44 }
 0x5a2   :  { %v3902_v31 = vadd.f32 %v3887_v25, %v3886_v37  ;;  %v5740_v33 = vpop.eup %5739  ;;  %v3813_v18 = vrot.slane %v3799_v14, %v6248_v44  ;;  %5751 = vlog2.f32 %v3836_v22  ;;  %v3749_v19 = vcombine.low %v3727_v39, %v3734_v26 }
 0x5a3   :  { %v3853_v8 = vmul.f32 0.6931472, %v5738_v28  ;;  %v3875_v1 = vmul.f32 %v3849_v27, %v6181_v24  ;;  %v3889_v13 = vmul.f32 %v6172_v10, %v3873_v21  ;;  %5753 = vlog2.f32 %v3837_v57 }
 0x5a4   :  { %v3903_v51 = vadd.f32 %v3902_v31, %v3888_v12  ;;  %v5742_v61 = vpop.eup %5741  ;;  %v3757_v11 = vrot.slane %v3749_v19, %v6248_v44  ;;  %v3855_v4 = vmul.f32 0.6931472, %v5740_v33  ;;  %v3876_v52 = vmul.f32 %v3851_v7, %v6184_v45 }
 0x5a5   :  { %v3890_v55 = vmul.f32 %v6172_v10, %v3874_v43  ;;  %v5744_v48 = vpop.eup %5743  ;;  %v6300_v30 = vcombine.low %v3806_v36, %v3813_v18  ;;  %v3857_v54 = vmul.f32 0.6931472, %v5742_v61  ;;  %v3877_v24 = vmul.f32 %v3853_v8, %v6187_v46 }
 0x5a6   :  { %v3904_v40 = vadd.f32 %v3903_v51, %v3889_v13  ;;  %v3765_v26 = vcombine.low %v3757_v11, %v3764_v0  ;;  %v3891_v62 = vmul.f32 %v6172_v10, %v3875_v1  ;;  %v5746_v47 = vpop.eup %5745  ;;  %v3859_v44 = vmul.f32 0.6931472, %v5744_v48  ;;  %v6401_v51 = vld [vmem:[#allocation15_spill] sm:$0xff]  ;;  %v6402_v11 = vld [vmem:[#allocation14_spill] sm:$0xff] }
 0x5a7   :  { %v5748_v5 = vpop.eup %5747  ;;  %v3878_v49 = vmul.f32 %v3855_v4, %v6190_v38  ;;  %v3892_v45 = vmul.f32 %v6172_v10, %v3876_v52  ;;  %v3936_v16 = vmul.f32 0.5, %v6300_v30  ;;  %v3861_v32 = vmul.f32 0.6931472, %v5746_v47 }
 0x5a8   :  { %v3905_v3 = vadd.f32 %v3904_v40, %v3890_v55  ;;  %v3935_v14 = vmul.f32 0.5, %v3765_v26  ;;  %v3879_v15 = vmul.f32 %v3857_v54, %v6205_v53  ;;  %v3893_v46 = vmul.f32 %v6172_v10, %v3877_v24  ;;  %v6403_v55 = vld [vmem:[#allocation16_spill] sm:$0xff] }
 0x5a9   :  { %v5750_v35 = vpop.eup %5749  ;;  %v3863_v2 = vmul.f32 0.6931472, %v5748_v5  ;;  %v3880_v20 = vmul.f32 %v3859_v44, %v6214_v56  ;;  %v3894_v38 = vmul.f32 %v6172_v10, %v3878_v49  ;;  %v3938_v29 = vadd.f32 1e-08, %v3936_v16 }
 0x5aa   :  { %v3906_v6 = vadd.f32 %v3905_v3, %v3891_v62  ;;  %v3937_v42 = vadd.f32 1e-08, %v3935_v14  ;;  %v3865_v37 = vmul.f32 0.6931472, %v5750_v35  ;;  %v3881_v63 = vmul.f32 %v3861_v32, %v6217_v41  ;;  %v6405_v14 = vld [vmem:[#allocation19_spill] sm:$0xff]  ;;  %v6407_v32 = vld [vmem:[#allocation20_spill] sm:$0xff] }
 0x5ab   :  { %v3895_v27 = vmul.f32 %v6172_v10, %v3879_v15  ;;  %v3882_v25 = vmul.f32 %v3863_v2, %v6220_v58  ;;  %v3896_v28 = vmul.f32 %v6172_v10, %v3880_v20 }
 0x5ac   :  { %v3907_v22 = vadd.f32 %v3906_v6, %v3892_v45  ;;  %v5752_v9 = vpop.eup %5751  ;;  %5755 = vlog2.f32 %v3937_v42  ;;  %v3883_v56 = vmul.f32 %v3865_v37, %v6223_v59  ;;  %v3897_v39 = vmul.f32 %v6172_v10, %v3881_v63  ;;  %v6406_v6 = vld [vmem:[#allocation18_spill] sm:$0xff] }
 0x5ad   :  { %v5754_v23 = vpop.eup %5753  ;;  %v3867_v53 = vmul.f32 0.6931472, %v5752_v9  ;;  %5757 = vlog2.f32 %v3938_v29  ;;  %v3898_v41 = vmul.f32 %v6172_v10, %v3882_v25 }
 0x5ae   :  { %v3908_v17 = vadd.f32 %v3907_v22, %v3893_v46  ;;  %v3869_v57 = vmul.f32 0.6931472, %v5754_v23  ;;  %v3899_v58 = vmul.f32 %v6172_v10, %v3883_v56 }
 0x5af   :  { %v3884_v43 = vmul.f32 %v3867_v53, %v6226_v34 }
 0x5b0   :  { %v3909_v21 = vadd.f32 %v3908_v17, %v3894_v38  ;;  %v3885_v33 = vmul.f32 %v3869_v57, %v6229_v60 }
 0x5b1   :  { %v3900_v19 = vmul.f32 %v6172_v10, %v3884_v43 }
 0x5b2   :  { %v3910_v0 = vadd.f32 %v3909_v21, %v3895_v27  ;;  %v3901_v59 = vmul.f32 %v6172_v10, %v3885_v33  ;;  %v6404_v10 = vld [vmem:[#allocation17_spill] sm:$0xff] }
 0x5b4   :  { %v3911_v7 = vadd.f32 %v3910_v0, %v3896_v28 }
 0x5b6   :  { %v3912_v12 = vadd.f32 %v3911_v7, %v3897_v39  ;;  %v5756_v31 = vpop.eup %5755 }
 0x5b7   :  { %v3940_v18 = vmul.f32 0.6931472, %v5756_v31  ;;  %v5758_v52 = vpop.eup %5757 }
 0x5b8   :  { %v3913_v36 = vadd.f32 %v3912_v12, %v3898_v41 }
 0x5b9   :  { %v3943_v1 = vmul.f32 %v3940_v18, %v3765_v26  ;;  %v3942_v26 = vmul.f32 0.6931472, %v5758_v52  ;;  %v6408_v18 = vmov 0.0  }
 0x5ba   :  { %v3914_v8 = vadd.f32 %v3913_v36, %v3899_v58  ;;  %61 = vst.msk [vmem:[#allocation3] sm:$0x1] %vm60_vm2, %v6408_v18  ;;  %62 = vst.msk [vmem:[#allocation10] sm:$0x1] %vm60_vm2, %v6408_v18 }
 0x5bb   :  { %v3950_v34 = vrot.slane %v3943_v1, %v6034_v50  ;;  %v3954_v61 = vrot.slane %v3943_v1, %v6401_v51  ;;  %v3958_v4 = vrot.slane %v3943_v1, %v6402_v11  ;;  %v3962_v40 = vrot.slane %v3943_v1, %v6403_v55 }
 0x5bc   :  { %v3915_v13 = vadd.f32 %v3914_v8, %v3900_v19  ;;  %v3966_v62 = vrot.slane %v3943_v1, %v6404_v10  ;;  %v3970_v5 = vrot.slane %v3943_v1, %v6405_v14  ;;  %v3944_v45 = vmul.f32 %v3942_v26, %v6300_v30 }
 0x5bd   :  { %v4028_v48 = vsel %vm4027_vm1, %v3950_v34, 0.0  ;;  %v4029_v54 = vsel %vm4027_vm1, %v3954_v61, 0.0  ;;  %v4031_v3 = vsel %vm4027_vm1, %v3958_v4, 0.0  ;;  %v4033_v44 = vsel %vm4027_vm1, %v3962_v40, 0.0 }
 0x5be   :  { %v3916_v60 = vadd.f32 %v3915_v13, %v3901_v59  ;;  %v4030_v24 = vadd.f32 %v4029_v54, %v4028_v48  ;;  %v3974_v35 = vrot.slane %v3943_v1, %v6406_v6  ;;  %v4035_v16 = vsel %vm4027_vm1, %v3966_v62, 0.0 }
 0x5bf   :  { %v3978_v15 = vrot.slane %v3943_v1, %v6407_v32  ;;  %v4037_v46 = vsel %vm4027_vm1, %v3970_v5, 0.0  ;;  %v3982_v9 = vrot.slane %v3944_v45, %v6034_v50  ;;  %v3986_v38 = vrot.slane %v3944_v45, %v6401_v51 }
 0x5c0   :  { %3917 = vadd.xlane.f32.xlu1 %v3916_v60  ;;  %v4032_v47 = vadd.f32 %v4031_v3, %v4030_v24  ;;  %v4039_v2 = vsel %vm4027_vm1, %v3974_v35, 0.0  ;;  %v3990_v23 = vrot.slane %v3944_v45, %v6402_v11  ;;  %v3994_v63 = vrot.slane %v3944_v45, %v6403_v55 }
 0x5c1   :  { %v4041_v17 = vsel %vm4027_vm1, %v3978_v15, 0.0  ;;  %v4043_v29 = vsel %vm4027_vm1, %v3982_v9, 0.0  ;;  %v4045_v27 = vsel %vm4027_vm1, %v3986_v38, 0.0  ;;  %v3998_v50 = vrot.slane %v3944_v45, %v6404_v10  ;;  %v3821_v61 = vld [vmem:[#allocation3] sm:$0x1] }
 0x5c2   :  { %v4034_v49 = vadd.f32 %v4033_v44, %v4032_v47  ;;  %v4047_v53 = vsel %vm4027_vm1, %v3990_v23, 0.0  ;;  %v4002_v28 = vrot.slane %v3944_v45, %v6405_v14  ;;  %v4049_v0 = vsel %vm4027_vm1, %v3994_v63, 0.0 }
 0x5c3   :  { %v4006_v56 = vrot.slane %v3944_v45, %v6406_v6  ;;  %v4051_v39 = vsel %vm4027_vm1, %v3998_v50, 0.0  ;;  %v4010_v43 = vrot.slane %v3944_v45, %v6407_v32 }
 0x5c4   :  { %v4036_v42 = vadd.f32 %v4035_v16, %v4034_v49  ;;  %v4053_v41 = vsel %vm4027_vm1, %v4002_v28, 0.0 }
 0x5c5   :  { %v4055_v31 = vsel %vm4027_vm1, %v4006_v56, 0.0  ;;  %v4057_v58 = vsel %vm4027_vm1, %v4010_v43, 0.0 }
 0x5c6   :  { %v4038_v22 = vadd.f32 %v4037_v46, %v4036_v42 }
 0x5c8   :  { %v4040_v20 = vadd.f32 %v4039_v2, %v4038_v22 }
 0x5ca   :  { %v4042_v30 = vadd.f32 %v4041_v17, %v4040_v20 }
 0x5cc   :  { %v4044_v37 = vadd.f32 %v4043_v29, %v4042_v30 }
 0x5ce   :  { %v4046_v21 = vadd.f32 %v4045_v27, %v4044_v37 }
 0x5d0   :  { %v4048_v25 = vadd.f32 %v4047_v53, %v4046_v21 }
 0x5d2   :  { %v4050_v57 = vadd.f32 %v4049_v0, %v4048_v25 }
 0x5d4   :  { %v4052_v7 = vadd.f32 %v4051_v39, %v4050_v57 }
 0x5d6   :  { %v4054_v12 = vadd.f32 %v4053_v41, %v4052_v7 }
 0x5d8   :  { %v4056_v33 = vadd.f32 %v4055_v31, %v4054_v12 }
 0x5da   :  { %v4058_v36 = vadd.f32 %v4057_v58, %v4056_v33 }
 0x5dc   :  { %4059 = vadd.xlane.f32.xlu1 %v4058_v36 }
 0x64d   :  { %v3918_v19 = vpop.xlane.xlu1 %3917 }
 0x64e   :  { %v3919_v8 = vrot.slane %v3918_v19, 4 }
 0x650   :  { %v3920_v1 = vadd.f32 %v3919_v8, %v3918_v19 }
 0x652   :  { %v3921_v59 = vrot.slane %v3920_v1, 2 }
 0x654   :  { %v3922_v13 = vadd.f32 %v3921_v59, %v3920_v1 }
 0x656   :  { %v3923_v34 = vrot.slane %v3922_v13, 1 }
 0x658   :  { %v3924_v51 = vadd.f32 %v3923_v34, %v3922_v13 }
 0x65a   :  { %5668 = vpush %v3924_v51 }
 0x669   :  { %v4060_v52 = vpop.xlane.xlu1 %4059 }
 0x68b   :  { %s5669_s2 = spop %5668 }
 0x68c   :  { %v3926_v11 = vstv %s5669_s2 }
 0x68d   :  { %v3927_v4 = vadd.f32 %v3926_v11, %v3821_v61 }
 0x68f   :  { %3929 = vst.msk [vmem:[#allocation3] sm:$0x1] %vm60_vm2, %v3927_v4 }
 0x696   :  { %v4061_v60 = vld [vmem:[#allocation3] sm:$0x1] }
 0x697   :  { %v4062_v55 = vsub.f32 %v4061_v60, %v4060_v52 }
 0x699   :  { %v4063_v40 = vmul.f32 0.5, %v4062_v55 }
 0x69b   :  { %v4064_v48 = vmul.f32 1.442695, %v4063_v40 }
 0x69d   :  { %5759 = vpow2.f32 %v4064_v48 }
 0x6a7   :  { %v5760_v54 = vpop.eup %5759 }
 0x6a8   :  { %4066 = vst.msk [vmem:[#allocation10] sm:$0x1] %vm60_vm2, %v5760_v54 }
 0x6a9   :  { %5838 = shalt.err (!%p5835_p0)
}
 0x6aa   :  { %s5839_s30 = scalar_lea.hbm %s6377_s3, 16 }
 0x6ab   :  { %p5840_p1 = scmp.ne.s32.totalorder %s6377_s3, %s5839_s30  ;;  %p5843_p2 = scmp.lt.u32.totalorder %s5839_s30, %s6377_s3 }
 0x6ad   :  { %p5845_p3 = pnand %p5843_p2, %p5840_p1 }
 0x6af   :  { %5848 = shalt.err (!%p5845_p3)
}
 0x6b0   :  { %4076 = dma.vmem_to_hbm [thread:$0]  %s4074_s25, 16, %s6377_s3, [#allocation6]  }
 0x6b1   :  { %5853 = dma.done.wait [#allocation6], 16  }
 0x6b2   :  { %5854 = vsyncadd [#allocation6], 4294967280 }
 0x6b3   :  { %4080 = vsyncpa [#allocation5], 1 }
 0x6b4   :  { %4081 = vsyncpa [#allocation8], 1 }
 0x6b5   :  { %4082 = vsyncpa [#allocation6], 1 }

</bundles_post_ra>
